<compile_context>
chip_gen: v7x
topology: tpu7x:2x2x1
jax: 0.10.0
libtpu: 0.0.40
codegen_flags: <defaults>
</compile_context>

<pallas_src>
import jax
import jax.numpy as jnp
from jax import lax
from jax.experimental import pallas as pl

SOS_TOKEN = 128


# ------------------------ fused encoder+decoder kernel ----------------------

def seq2seq_kernel(x_ref, enc_wx_ref, enc_wh_ref, enc_b_ref,
                   emb_proj_ref, dec_wh_ref, dec_b_ref,
                   fc_w_ref, fc_b_ref, out_ref):
    """x_ref:      (S, B, E)  bf16  encoder-embedded input, time-major
    enc_wx_ref: (E, 4H) bf16, enc_wh_ref: (H, 4H) bf16, enc_b_ref: (1, 4H) f32
    emb_proj_ref: (V, 4H) bf16  (= emb_dec @ dec_wx, pre-folded)
    dec_wh_ref: (H, 4H) bf16, dec_b_ref: (1, 4H) f32
    fc_w_ref:   (H, V)  bf16, fc_b_ref: (1, V)  f32
    out_ref:    (B, T, V) f32 logits (resident, lane-dense V)."""
    S, B, _E = x_ref.shape
    H = enc_wh_ref.shape[0]
    V = emb_proj_ref.shape[0]
    T = out_ref.shape[1]

    def lstm_cell(gates, c):
        i = jax.nn.sigmoid(gates[:, 0:H])
        f = jax.nn.sigmoid(gates[:, H:2 * H])
        g = jnp.tanh(gates[:, 2 * H:3 * H])
        o = jax.nn.sigmoid(gates[:, 3 * H:4 * H])
        c_new = f * c + i * g
        h_new = o * jnp.tanh(c_new)
        return h_new, c_new

    # ---------------- encoder ----------------
    # Hoisted input projection: one MXU matmul for ALL timesteps (+ bias once).
    x_all = x_ref[...].reshape(S * B, x_ref.shape[2])            # bf16 (S*B, E)
    gx = jnp.dot(x_all, enc_wx_ref[...],
                 preferred_element_type=jnp.float32)             # (S*B, 4H) f32
    gx = (gx + enc_b_ref[...]).reshape(S, B, 4 * H)

    enc_wh = enc_wh_ref[...]                                     # (H, 4H) bf16
    h = jnp.zeros((B, H), jnp.float32)
    c = jnp.zeros((B, H), jnp.float32)
    # Static trip count -> fully unrolled; per-step serial chain is only h @ Wh.
    for t in range(S):
        gates = gx[t] + jnp.dot(h.astype(jnp.bfloat16), enc_wh,
                                preferred_element_type=jnp.float32)
        h, c = lstm_cell(gates, c)

    # initialize_decoder_state (1-layer LSTM encoder -> LSTM decoder):
    # decoder_cell = decoder_state = encoder final hidden state.
    dh = h
    dc = h

    # ---------------- decoder (greedy feedback) ----------------
    emb_proj = emb_proj_ref[...]                                 # (V, 4H) bf16
    dec_wh = dec_wh_ref[...]                                     # (H, 4H) bf16
    dec_b = dec_b_ref[...]                                       # (1, 4H) f32
    fc_w = fc_w_ref[...]                                         # (H, V)  bf16
    fc_b = fc_b_ref[...]                                         # (1, V)  f32

    iota_v = lax.broadcasted_iota(jnp.int32, (B, V), 1)
    onehot = (iota_v == SOS_TOKEN).astype(jnp.bfloat16)          # SOS feedback

    for t in range(T):
        # Embedding lookup + input projection fused: onehot @ (emb_dec @ Wx).
        gates = (jnp.dot(onehot, emb_proj, preferred_element_type=jnp.float32)
                 + jnp.dot(dh.astype(jnp.bfloat16), dec_wh,
                           preferred_element_type=jnp.float32)
                 + dec_b)                                        # (B, 4H)
        dh, dc = lstm_cell(gates, dc)

        # fc1 output projection (lane-dense V).
        logits = (jnp.dot(dh.astype(jnp.bfloat16), fc_w,
                          preferred_element_type=jnp.float32)
                  + fc_b)                                        # (B, V)
        out_ref[:, t, :] = logits                                # (B, T, V) direct

        # Greedy feedback: argmax over V (first index on ties), kept as a
        # one-hot row so the next step's embedding+Wx is one MXU matmul.
        m = jnp.max(logits, axis=1, keepdims=True)
        idx = jnp.min(jnp.where(logits == m, iota_v, V), axis=1, keepdims=True)
        onehot = (iota_v == idx).astype(jnp.bfloat16)


def run_seq2seq(x_emb_tbe, enc_wx, enc_wh, enc_b,
                emb_proj, dec_wh, dec_b, fc_w, fc_b, max_seq_size):
    _S, B, _E = x_emb_tbe.shape
    V = emb_proj.shape[0]
    # Tiny model: everything is a whole-array VMEM block; single call, no grid.
    return pl.pallas_call(
        seq2seq_kernel,
        out_shape=jax.ShapeDtypeStruct((B, max_seq_size, V), jnp.float32),
    )(x_emb_tbe, enc_wx, enc_wh, enc_b, emb_proj, dec_wh, dec_b, fc_w, fc_b)


# --------------------------------- wrapper ----------------------------------

def seq2seq_forward(x_tokens, y_tokens, params, max_seq_size):
    """x_tokens: (B, S) int32; y_tokens: (B, T) int32 (unused, teacher forcing
    prob = 0). Returns (B, max_seq_size, vocab_size) float32 logits."""
    del y_tokens  # teacher_forcing = 0.0 -> always greedy feedback
    B = x_tokens.shape[0]
    B_pad = max(8, ((B + 7) // 8) * 8)          # pad batch to 8 sublanes
    if B_pad != B:
        x_tokens = jnp.pad(x_tokens, ((0, B_pad - B), (0, 0)))

    # Encoder embedding lookup (glue), time-major, bf16 matmul operand.
    x_emb = jnp.take(params["emb_enc"], x_tokens, axis=0)        # (B_pad, S, E)
    x_emb_tbe = jnp.transpose(x_emb, (1, 0, 2)).astype(jnp.bfloat16)

    # Pre-fold decoder embedding into the decoder input projection (V, 4H).
    emb_proj = jnp.dot(params["emb_dec"], params["dec_wx"]).astype(jnp.bfloat16)

    out = run_seq2seq(
        x_emb_tbe,
        params["enc_wx"].astype(jnp.bfloat16),
        params["enc_wh"].astype(jnp.bfloat16),
        params["enc_b"],
        emb_proj,
        params["dec_wh"].astype(jnp.bfloat16),
        params["dec_b"],
        params["fc_w"].astype(jnp.bfloat16),
        params["fc_b"],
        max_seq_size,
    )                                                            # (B_pad, T, V)
    return out[:B]


def init_params(key, vocab_size, embedding_dim, hidden_dim):
    V, E, H = vocab_size, embedding_dim, hidden_dim
    ks = jax.random.split(key, 8)
    s = 0.1
    return {
        "emb_enc": jax.random.normal(ks[0], (V, E), jnp.float32) * s,
        "emb_dec": jax.random.normal(ks[1], (V, E), jnp.float32) * s,
        # Fused LSTM weights, gate order [i | f | g | o] along the 4H axis
        # (PyTorch order); bias = b_ih + b_hh combined, lane-dense (1, 4H).
        "enc_wx": jax.random.normal(ks[2], (E, 4 * H), jnp.float32) * s,
        "enc_wh": jax.random.normal(ks[3], (H, 4 * H), jnp.float32) * s,
        "enc_b": jnp.zeros((1, 4 * H), jnp.float32),
        "dec_wx": jax.random.normal(ks[4], (E, 4 * H), jnp.float32) * s,
        "dec_wh": jax.random.normal(ks[5], (H, 4 * H), jnp.float32) * s,
        "dec_b": jnp.zeros((1, 4 * H), jnp.float32),
        "fc_w": jax.random.normal(ks[6], (H, V), jnp.float32) * s,
        "fc_b": jnp.zeros((1, V), jnp.float32),
    }


if __name__ == "__main__":
    vocab_size = 256      # must cover SOS_TOKEN = 128
    embedding_dim = 32
    hidden_dim = 32       # 4H = 128 -> lane-dense fused gates
    batch_size = 2
    seq_len = 8
    max_seq_size = 8

    key = jax.random.PRNGKey(0)
    kp, kx, ky = jax.random.split(key, 3)
    params = init_params(kp, vocab_size, embedding_dim, hidden_dim)

    x = jax.random.randint(kx, (batch_size, seq_len), 0, vocab_size,
                           dtype=jnp.int32)
    y = jax.random.randint(ky, (batch_size, max_seq_size), 0, vocab_size,
                           dtype=jnp.int32)

    fwd = jax.jit(seq2seq_forward, static_argnames=("max_seq_size",))
    out = fwd(x, y, params, max_seq_size=max_seq_size)
    out = jax.block_until_ready(out)

    assert out.shape == (batch_size, max_seq_size, vocab_size)
    assert bool(jnp.all(jnp.isfinite(out)))
    print("KERNEL_OK")
</pallas_src>

<mosaic_0001>
module attributes {stable_mosaic.version = 11 : i64} {
  func.func @seq2seq_kernel(%arg0: memref<8x8x32xbf16, #tpu.memory_space<vmem>>, %arg1: memref<32x128xbf16, #tpu.memory_space<vmem>>, %arg2: memref<32x128xbf16, #tpu.memory_space<vmem>>, %arg3: memref<1x128xf32, #tpu.memory_space<vmem>>, %arg4: memref<256x128xbf16, #tpu.memory_space<vmem>>, %arg5: memref<32x128xbf16, #tpu.memory_space<vmem>>, %arg6: memref<1x128xf32, #tpu.memory_space<vmem>>, %arg7: memref<32x256xbf16, #tpu.memory_space<vmem>>, %arg8: memref<1x256xf32, #tpu.memory_space<vmem>>, %arg9: memref<8x8x256xf32, #tpu.memory_space<vmem>>) attributes {dimension_semantics = [], scalar_prefetch = 0 : i64, scratch_operands = 0 : i64, tpu.core_type = #tpu.core_type<tc>} {
    %c0 = arith.constant 0 : index
    %c0_0 = arith.constant 0 : index
    %c0_1 = arith.constant 0 : index
    %0 = vector.load %arg0[%c0, %c0_0, %c0_1] : memref<8x8x32xbf16, #tpu.memory_space<vmem>>, vector<8x8x32xbf16>
    %1 = vector.shape_cast %0 : vector<8x8x32xbf16> to vector<64x32xbf16>
    %c0_2 = arith.constant 0 : index
    %c0_3 = arith.constant 0 : index
    %2 = vector.load %arg1[%c0_2, %c0_3] : memref<32x128xbf16, #tpu.memory_space<vmem>>, vector<32x128xbf16>
    %cst = arith.constant dense<0.000000e+00> : vector<64x128xf32>
    %3 = tpu.matmul %1, %2, %cst {dimension_numbers = #tpu.dot_dimension_numbers<[1], [0], [0], [1], [0, 0, 1, 1], [], []>} : vector<64x32xbf16>, vector<32x128xbf16>, vector<64x128xf32> -> vector<64x128xf32>
    %c0_4 = arith.constant 0 : index
    %c0_5 = arith.constant 0 : index
    %4 = vector.load %arg3[%c0_4, %c0_5] : memref<1x128xf32, #tpu.memory_space<vmem>>, vector<1x128xf32>
    %5 = vector.broadcast %4 : vector<1x128xf32> to vector<64x128xf32>
    %6 = arith.addf %3, %5 : vector<64x128xf32>
    %7 = vector.shape_cast %6 : vector<64x128xf32> to vector<8x8x128xf32>
    %c0_6 = arith.constant 0 : index
    %c0_7 = arith.constant 0 : index
    %8 = vector.load %arg2[%c0_6, %c0_7] : memref<32x128xbf16, #tpu.memory_space<vmem>>, vector<32x128xbf16>
    %cst_8 = arith.constant 0.000000e+00 : f32
    %9 = vector.broadcast %cst_8 : f32 to vector<8x32xf32>
    %cst_9 = arith.constant 0.000000e+00 : f32
    %10 = vector.broadcast %cst_9 : f32 to vector<8x32xf32>
    %11 = vector.extract_strided_slice %7 {offsets = [0, 0, 0], sizes = [1, 8, 128], strides = [1, 1, 1]} : vector<8x8x128xf32> to vector<1x8x128xf32>
    %12 = vector.shape_cast %11 : vector<1x8x128xf32> to vector<8x128xf32>
    %13 = arith.truncf %9 : vector<8x32xf32> to vector<8x32xbf16>
    %cst_10 = arith.constant dense<0.000000e+00> : vector<8x128xf32>
    %14 = tpu.matmul %13, %8, %cst_10 {dimension_numbers = #tpu.dot_dimension_numbers<[1], [0], [0], [1], [0, 0, 1, 1], [], []>} : vector<8x32xbf16>, vector<32x128xbf16>, vector<8x128xf32> -> vector<8x128xf32>
    %15 = arith.addf %12, %14 : vector<8x128xf32>
    %16 = vector.extract_strided_slice %15 {offsets = [0, 0], sizes = [8, 32], strides = [1, 1]} : vector<8x128xf32> to vector<8x32xf32>
    %17 = arith.negf %16 : vector<8x32xf32>
    %18 = math.exp %17 : vector<8x32xf32>
    %cst_11 = arith.constant 1.000000e+00 : f32
    %19 = vector.broadcast %cst_11 : f32 to vector<8x32xf32>
    %20 = arith.addf %19, %18 : vector<8x32xf32>
    %21 = arith.divf %19, %20 : vector<8x32xf32>
    %22 = vector.extract_strided_slice %15 {offsets = [0, 32], sizes = [8, 32], strides = [1, 1]} : vector<8x128xf32> to vector<8x32xf32>
    %23 = arith.negf %22 : vector<8x32xf32>
    %24 = math.exp %23 : vector<8x32xf32>
    %cst_12 = arith.constant 1.000000e+00 : f32
    %25 = vector.broadcast %cst_12 : f32 to vector<8x32xf32>
    %26 = arith.addf %25, %24 : vector<8x32xf32>
    %27 = arith.divf %25, %26 : vector<8x32xf32>
    %28 = vector.extract_strided_slice %15 {offsets = [0, 64], sizes = [8, 32], strides = [1, 1]} : vector<8x128xf32> to vector<8x32xf32>
    %29 = math.tanh %28 : vector<8x32xf32>
    %30 = vector.extract_strided_slice %15 {offsets = [0, 96], sizes = [8, 32], strides = [1, 1]} : vector<8x128xf32> to vector<8x32xf32>
    %31 = arith.negf %30 : vector<8x32xf32>
    %32 = math.exp %31 : vector<8x32xf32>
    %cst_13 = arith.constant 1.000000e+00 : f32
    %33 = vector.broadcast %cst_13 : f32 to vector<8x32xf32>
    %34 = arith.addf %33, %32 : vector<8x32xf32>
    %35 = arith.divf %33, %34 : vector<8x32xf32>
    %36 = arith.mulf %27, %10 : vector<8x32xf32>
    %37 = arith.mulf %21, %29 : vector<8x32xf32>
    %38 = arith.addf %36, %37 : vector<8x32xf32>
    %39 = math.tanh %38 : vector<8x32xf32>
    %40 = arith.mulf %35, %39 : vector<8x32xf32>
    %41 = vector.extract_strided_slice %7 {offsets = [1, 0, 0], sizes = [1, 8, 128], strides = [1, 1, 1]} : vector<8x8x128xf32> to vector<1x8x128xf32>
    %42 = vector.shape_cast %41 : vector<1x8x128xf32> to vector<8x128xf32>
    %43 = arith.truncf %40 : vector<8x32xf32> to vector<8x32xbf16>
    %cst_14 = arith.constant dense<0.000000e+00> : vector<8x128xf32>
    %44 = tpu.matmul %43, %8, %cst_14 {dimension_numbers = #tpu.dot_dimension_numbers<[1], [0], [0], [1], [0, 0, 1, 1], [], []>} : vector<8x32xbf16>, vector<32x128xbf16>, vector<8x128xf32> -> vector<8x128xf32>
    %45 = arith.addf %42, %44 : vector<8x128xf32>
    %46 = vector.extract_strided_slice %45 {offsets = [0, 0], sizes = [8, 32], strides = [1, 1]} : vector<8x128xf32> to vector<8x32xf32>
    %47 = arith.negf %46 : vector<8x32xf32>
    %48 = math.exp %47 : vector<8x32xf32>
    %cst_15 = arith.constant 1.000000e+00 : f32
    %49 = vector.broadcast %cst_15 : f32 to vector<8x32xf32>
    %50 = arith.addf %49, %48 : vector<8x32xf32>
    %51 = arith.divf %49, %50 : vector<8x32xf32>
    %52 = vector.extract_strided_slice %45 {offsets = [0, 32], sizes = [8, 32], strides = [1, 1]} : vector<8x128xf32> to vector<8x32xf32>
    %53 = arith.negf %52 : vector<8x32xf32>
    %54 = math.exp %53 : vector<8x32xf32>
    %cst_16 = arith.constant 1.000000e+00 : f32
    %55 = vector.broadcast %cst_16 : f32 to vector<8x32xf32>
    %56 = arith.addf %55, %54 : vector<8x32xf32>
    %57 = arith.divf %55, %56 : vector<8x32xf32>
    %58 = vector.extract_strided_slice %45 {offsets = [0, 64], sizes = [8, 32], strides = [1, 1]} : vector<8x128xf32> to vector<8x32xf32>
    %59 = math.tanh %58 : vector<8x32xf32>
    %60 = vector.extract_strided_slice %45 {offsets = [0, 96], sizes = [8, 32], strides = [1, 1]} : vector<8x128xf32> to vector<8x32xf32>
    %61 = arith.negf %60 : vector<8x32xf32>
    %62 = math.exp %61 : vector<8x32xf32>
    %cst_17 = arith.constant 1.000000e+00 : f32
    %63 = vector.broadcast %cst_17 : f32 to vector<8x32xf32>
    %64 = arith.addf %63, %62 : vector<8x32xf32>
    %65 = arith.divf %63, %64 : vector<8x32xf32>
    %66 = arith.mulf %57, %38 : vector<8x32xf32>
    %67 = arith.mulf %51, %59 : vector<8x32xf32>
    %68 = arith.addf %66, %67 : vector<8x32xf32>
    %69 = math.tanh %68 : vector<8x32xf32>
    %70 = arith.mulf %65, %69 : vector<8x32xf32>
    %71 = vector.extract_strided_slice %7 {offsets = [2, 0, 0], sizes = [1, 8, 128], strides = [1, 1, 1]} : vector<8x8x128xf32> to vector<1x8x128xf32>
    %72 = vector.shape_cast %71 : vector<1x8x128xf32> to vector<8x128xf32>
    %73 = arith.truncf %70 : vector<8x32xf32> to vector<8x32xbf16>
    %cst_18 = arith.constant dense<0.000000e+00> : vector<8x128xf32>
    %74 = tpu.matmul %73, %8, %cst_18 {dimension_numbers = #tpu.dot_dimension_numbers<[1], [0], [0], [1], [0, 0, 1, 1], [], []>} : vector<8x32xbf16>, vector<32x128xbf16>, vector<8x128xf32> -> vector<8x128xf32>
    %75 = arith.addf %72, %74 : vector<8x128xf32>
    %76 = vector.extract_strided_slice %75 {offsets = [0, 0], sizes = [8, 32], strides = [1, 1]} : vector<8x128xf32> to vector<8x32xf32>
    %77 = arith.negf %76 : vector<8x32xf32>
    %78 = math.exp %77 : vector<8x32xf32>
    %cst_19 = arith.constant 1.000000e+00 : f32
    %79 = vector.broadcast %cst_19 : f32 to vector<8x32xf32>
    %80 = arith.addf %79, %78 : vector<8x32xf32>
    %81 = arith.divf %79, %80 : vector<8x32xf32>
    %82 = vector.extract_strided_slice %75 {offsets = [0, 32], sizes = [8, 32], strides = [1, 1]} : vector<8x128xf32> to vector<8x32xf32>
    %83 = arith.negf %82 : vector<8x32xf32>
    %84 = math.exp %83 : vector<8x32xf32>
    %cst_20 = arith.constant 1.000000e+00 : f32
    %85 = vector.broadcast %cst_20 : f32 to vector<8x32xf32>
    %86 = arith.addf %85, %84 : vector<8x32xf32>
    %87 = arith.divf %85, %86 : vector<8x32xf32>
    %88 = vector.extract_strided_slice %75 {offsets = [0, 64], sizes = [8, 32], strides = [1, 1]} : vector<8x128xf32> to vector<8x32xf32>
    %89 = math.tanh %88 : vector<8x32xf32>
    %90 = vector.extract_strided_slice %75 {offsets = [0, 96], sizes = [8, 32], strides = [1, 1]} : vector<8x128xf32> to vector<8x32xf32>
    %91 = arith.negf %90 : vector<8x32xf32>
    %92 = math.exp %91 : vector<8x32xf32>
    %cst_21 = arith.constant 1.000000e+00 : f32
    %93 = vector.broadcast %cst_21 : f32 to vector<8x32xf32>
    %94 = arith.addf %93, %92 : vector<8x32xf32>
    %95 = arith.divf %93, %94 : vector<8x32xf32>
    %96 = arith.mulf %87, %68 : vector<8x32xf32>
    %97 = arith.mulf %81, %89 : vector<8x32xf32>
    %98 = arith.addf %96, %97 : vector<8x32xf32>
    %99 = math.tanh %98 : vector<8x32xf32>
    %100 = arith.mulf %95, %99 : vector<8x32xf32>
    %101 = vector.extract_strided_slice %7 {offsets = [3, 0, 0], sizes = [1, 8, 128], strides = [1, 1, 1]} : vector<8x8x128xf32> to vector<1x8x128xf32>
    %102 = vector.shape_cast %101 : vector<1x8x128xf32> to vector<8x128xf32>
    %103 = arith.truncf %100 : vector<8x32xf32> to vector<8x32xbf16>
    %cst_22 = arith.constant dense<0.000000e+00> : vector<8x128xf32>
    %104 = tpu.matmul %103, %8, %cst_22 {dimension_numbers = #tpu.dot_dimension_numbers<[1], [0], [0], [1], [0, 0, 1, 1], [], []>} : vector<8x32xbf16>, vector<32x128xbf16>, vector<8x128xf32> -> vector<8x128xf32>
    %105 = arith.addf %102, %104 : vector<8x128xf32>
    %106 = vector.extract_strided_slice %105 {offsets = [0, 0], sizes = [8, 32], strides = [1, 1]} : vector<8x128xf32> to vector<8x32xf32>
    %107 = arith.negf %106 : vector<8x32xf32>
    %108 = math.exp %107 : vector<8x32xf32>
    %cst_23 = arith.constant 1.000000e+00 : f32
    %109 = vector.broadcast %cst_23 : f32 to vector<8x32xf32>
    %110 = arith.addf %109, %108 : vector<8x32xf32>
    %111 = arith.divf %109, %110 : vector<8x32xf32>
    %112 = vector.extract_strided_slice %105 {offsets = [0, 32], sizes = [8, 32], strides = [1, 1]} : vector<8x128xf32> to vector<8x32xf32>
    %113 = arith.negf %112 : vector<8x32xf32>
    %114 = math.exp %113 : vector<8x32xf32>
    %cst_24 = arith.constant 1.000000e+00 : f32
    %115 = vector.broadcast %cst_24 : f32 to vector<8x32xf32>
    %116 = arith.addf %115, %114 : vector<8x32xf32>
    %117 = arith.divf %115, %116 : vector<8x32xf32>
    %118 = vector.extract_strided_slice %105 {offsets = [0, 64], sizes = [8, 32], strides = [1, 1]} : vector<8x128xf32> to vector<8x32xf32>
    %119 = math.tanh %118 : vector<8x32xf32>
    %120 = vector.extract_strided_slice %105 {offsets = [0, 96], sizes = [8, 32], strides = [1, 1]} : vector<8x128xf32> to vector<8x32xf32>
    %121 = arith.negf %120 : vector<8x32xf32>
    %122 = math.exp %121 : vector<8x32xf32>
    %cst_25 = arith.constant 1.000000e+00 : f32
    %123 = vector.broadcast %cst_25 : f32 to vector<8x32xf32>
    %124 = arith.addf %123, %122 : vector<8x32xf32>
    %125 = arith.divf %123, %124 : vector<8x32xf32>
    %126 = arith.mulf %117, %98 : vector<8x32xf32>
    %127 = arith.mulf %111, %119 : vector<8x32xf32>
    %128 = arith.addf %126, %127 : vector<8x32xf32>
    %129 = math.tanh %128 : vector<8x32xf32>
    %130 = arith.mulf %125, %129 : vector<8x32xf32>
    %131 = vector.extract_strided_slice %7 {offsets = [4, 0, 0], sizes = [1, 8, 128], strides = [1, 1, 1]} : vector<8x8x128xf32> to vector<1x8x128xf32>
    %132 = vector.shape_cast %131 : vector<1x8x128xf32> to vector<8x128xf32>
    %133 = arith.truncf %130 : vector<8x32xf32> to vector<8x32xbf16>
    %cst_26 = arith.constant dense<0.000000e+00> : vector<8x128xf32>
    %134 = tpu.matmul %133, %8, %cst_26 {dimension_numbers = #tpu.dot_dimension_numbers<[1], [0], [0], [1], [0, 0, 1, 1], [], []>} : vector<8x32xbf16>, vector<32x128xbf16>, vector<8x128xf32> -> vector<8x128xf32>
    %135 = arith.addf %132, %134 : vector<8x128xf32>
    %136 = vector.extract_strided_slice %135 {offsets = [0, 0], sizes = [8, 32], strides = [1, 1]} : vector<8x128xf32> to vector<8x32xf32>
    %137 = arith.negf %136 : vector<8x32xf32>
    %138 = math.exp %137 : vector<8x32xf32>
    %cst_27 = arith.constant 1.000000e+00 : f32
    %139 = vector.broadcast %cst_27 : f32 to vector<8x32xf32>
    %140 = arith.addf %139, %138 : vector<8x32xf32>
    %141 = arith.divf %139, %140 : vector<8x32xf32>
    %142 = vector.extract_strided_slice %135 {offsets = [0, 32], sizes = [8, 32], strides = [1, 1]} : vector<8x128xf32> to vector<8x32xf32>
    %143 = arith.negf %142 : vector<8x32xf32>
    %144 = math.exp %143 : vector<8x32xf32>
    %cst_28 = arith.constant 1.000000e+00 : f32
    %145 = vector.broadcast %cst_28 : f32 to vector<8x32xf32>
    %146 = arith.addf %145, %144 : vector<8x32xf32>
    %147 = arith.divf %145, %146 : vector<8x32xf32>
    %148 = vector.extract_strided_slice %135 {offsets = [0, 64], sizes = [8, 32], strides = [1, 1]} : vector<8x128xf32> to vector<8x32xf32>
    %149 = math.tanh %148 : vector<8x32xf32>
    %150 = vector.extract_strided_slice %135 {offsets = [0, 96], sizes = [8, 32], strides = [1, 1]} : vector<8x128xf32> to vector<8x32xf32>
    %151 = arith.negf %150 : vector<8x32xf32>
    %152 = math.exp %151 : vector<8x32xf32>
    %cst_29 = arith.constant 1.000000e+00 : f32
    %153 = vector.broadcast %cst_29 : f32 to vector<8x32xf32>
    %154 = arith.addf %153, %152 : vector<8x32xf32>
    %155 = arith.divf %153, %154 : vector<8x32xf32>
    %156 = arith.mulf %147, %128 : vector<8x32xf32>
    %157 = arith.mulf %141, %149 : vector<8x32xf32>
    %158 = arith.addf %156, %157 : vector<8x32xf32>
    %159 = math.tanh %158 : vector<8x32xf32>
    %160 = arith.mulf %155, %159 : vector<8x32xf32>
    %161 = vector.extract_strided_slice %7 {offsets = [5, 0, 0], sizes = [1, 8, 128], strides = [1, 1, 1]} : vector<8x8x128xf32> to vector<1x8x128xf32>
    %162 = vector.shape_cast %161 : vector<1x8x128xf32> to vector<8x128xf32>
    %163 = arith.truncf %160 : vector<8x32xf32> to vector<8x32xbf16>
    %cst_30 = arith.constant dense<0.000000e+00> : vector<8x128xf32>
    %164 = tpu.matmul %163, %8, %cst_30 {dimension_numbers = #tpu.dot_dimension_numbers<[1], [0], [0], [1], [0, 0, 1, 1], [], []>} : vector<8x32xbf16>, vector<32x128xbf16>, vector<8x128xf32> -> vector<8x128xf32>
    %165 = arith.addf %162, %164 : vector<8x128xf32>
    %166 = vector.extract_strided_slice %165 {offsets = [0, 0], sizes = [8, 32], strides = [1, 1]} : vector<8x128xf32> to vector<8x32xf32>
    %167 = arith.negf %166 : vector<8x32xf32>
    %168 = math.exp %167 : vector<8x32xf32>
    %cst_31 = arith.constant 1.000000e+00 : f32
    %169 = vector.broadcast %cst_31 : f32 to vector<8x32xf32>
    %170 = arith.addf %169, %168 : vector<8x32xf32>
    %171 = arith.divf %169, %170 : vector<8x32xf32>
    %172 = vector.extract_strided_slice %165 {offsets = [0, 32], sizes = [8, 32], strides = [1, 1]} : vector<8x128xf32> to vector<8x32xf32>
    %173 = arith.negf %172 : vector<8x32xf32>
    %174 = math.exp %173 : vector<8x32xf32>
    %cst_32 = arith.constant 1.000000e+00 : f32
    %175 = vector.broadcast %cst_32 : f32 to vector<8x32xf32>
    %176 = arith.addf %175, %174 : vector<8x32xf32>
    %177 = arith.divf %175, %176 : vector<8x32xf32>
    %178 = vector.extract_strided_slice %165 {offsets = [0, 64], sizes = [8, 32], strides = [1, 1]} : vector<8x128xf32> to vector<8x32xf32>
    %179 = math.tanh %178 : vector<8x32xf32>
    %180 = vector.extract_strided_slice %165 {offsets = [0, 96], sizes = [8, 32], strides = [1, 1]} : vector<8x128xf32> to vector<8x32xf32>
    %181 = arith.negf %180 : vector<8x32xf32>
    %182 = math.exp %181 : vector<8x32xf32>
    %cst_33 = arith.constant 1.000000e+00 : f32
    %183 = vector.broadcast %cst_33 : f32 to vector<8x32xf32>
    %184 = arith.addf %183, %182 : vector<8x32xf32>
    %185 = arith.divf %183, %184 : vector<8x32xf32>
    %186 = arith.mulf %177, %158 : vector<8x32xf32>
    %187 = arith.mulf %171, %179 : vector<8x32xf32>
    %188 = arith.addf %186, %187 : vector<8x32xf32>
    %189 = math.tanh %188 : vector<8x32xf32>
    %190 = arith.mulf %185, %189 : vector<8x32xf32>
    %191 = vector.extract_strided_slice %7 {offsets = [6, 0, 0], sizes = [1, 8, 128], strides = [1, 1, 1]} : vector<8x8x128xf32> to vector<1x8x128xf32>
    %192 = vector.shape_cast %191 : vector<1x8x128xf32> to vector<8x128xf32>
    %193 = arith.truncf %190 : vector<8x32xf32> to vector<8x32xbf16>
    %cst_34 = arith.constant dense<0.000000e+00> : vector<8x128xf32>
    %194 = tpu.matmul %193, %8, %cst_34 {dimension_numbers = #tpu.dot_dimension_numbers<[1], [0], [0], [1], [0, 0, 1, 1], [], []>} : vector<8x32xbf16>, vector<32x128xbf16>, vector<8x128xf32> -> vector<8x128xf32>
    %195 = arith.addf %192, %194 : vector<8x128xf32>
    %196 = vector.extract_strided_slice %195 {offsets = [0, 0], sizes = [8, 32], strides = [1, 1]} : vector<8x128xf32> to vector<8x32xf32>
    %197 = arith.negf %196 : vector<8x32xf32>
    %198 = math.exp %197 : vector<8x32xf32>
    %cst_35 = arith.constant 1.000000e+00 : f32
    %199 = vector.broadcast %cst_35 : f32 to vector<8x32xf32>
    %200 = arith.addf %199, %198 : vector<8x32xf32>
    %201 = arith.divf %199, %200 : vector<8x32xf32>
    %202 = vector.extract_strided_slice %195 {offsets = [0, 32], sizes = [8, 32], strides = [1, 1]} : vector<8x128xf32> to vector<8x32xf32>
    %203 = arith.negf %202 : vector<8x32xf32>
    %204 = math.exp %203 : vector<8x32xf32>
    %cst_36 = arith.constant 1.000000e+00 : f32
    %205 = vector.broadcast %cst_36 : f32 to vector<8x32xf32>
    %206 = arith.addf %205, %204 : vector<8x32xf32>
    %207 = arith.divf %205, %206 : vector<8x32xf32>
    %208 = vector.extract_strided_slice %195 {offsets = [0, 64], sizes = [8, 32], strides = [1, 1]} : vector<8x128xf32> to vector<8x32xf32>
    %209 = math.tanh %208 : vector<8x32xf32>
    %210 = vector.extract_strided_slice %195 {offsets = [0, 96], sizes = [8, 32], strides = [1, 1]} : vector<8x128xf32> to vector<8x32xf32>
    %211 = arith.negf %210 : vector<8x32xf32>
    %212 = math.exp %211 : vector<8x32xf32>
    %cst_37 = arith.constant 1.000000e+00 : f32
    %213 = vector.broadcast %cst_37 : f32 to vector<8x32xf32>
    %214 = arith.addf %213, %212 : vector<8x32xf32>
    %215 = arith.divf %213, %214 : vector<8x32xf32>
    %216 = arith.mulf %207, %188 : vector<8x32xf32>
    %217 = arith.mulf %201, %209 : vector<8x32xf32>
    %218 = arith.addf %216, %217 : vector<8x32xf32>
    %219 = math.tanh %218 : vector<8x32xf32>
    %220 = arith.mulf %215, %219 : vector<8x32xf32>
    %221 = vector.extract_strided_slice %7 {offsets = [7, 0, 0], sizes = [1, 8, 128], strides = [1, 1, 1]} : vector<8x8x128xf32> to vector<1x8x128xf32>
    %222 = vector.shape_cast %221 : vector<1x8x128xf32> to vector<8x128xf32>
    %223 = arith.truncf %220 : vector<8x32xf32> to vector<8x32xbf16>
    %cst_38 = arith.constant dense<0.000000e+00> : vector<8x128xf32>
    %224 = tpu.matmul %223, %8, %cst_38 {dimension_numbers = #tpu.dot_dimension_numbers<[1], [0], [0], [1], [0, 0, 1, 1], [], []>} : vector<8x32xbf16>, vector<32x128xbf16>, vector<8x128xf32> -> vector<8x128xf32>
    %225 = arith.addf %222, %224 : vector<8x128xf32>
    %226 = vector.extract_strided_slice %225 {offsets = [0, 0], sizes = [8, 32], strides = [1, 1]} : vector<8x128xf32> to vector<8x32xf32>
    %227 = arith.negf %226 : vector<8x32xf32>
    %228 = math.exp %227 : vector<8x32xf32>
    %cst_39 = arith.constant 1.000000e+00 : f32
    %229 = vector.broadcast %cst_39 : f32 to vector<8x32xf32>
    %230 = arith.addf %229, %228 : vector<8x32xf32>
    %231 = arith.divf %229, %230 : vector<8x32xf32>
    %232 = vector.extract_strided_slice %225 {offsets = [0, 32], sizes = [8, 32], strides = [1, 1]} : vector<8x128xf32> to vector<8x32xf32>
    %233 = arith.negf %232 : vector<8x32xf32>
    %234 = math.exp %233 : vector<8x32xf32>
    %cst_40 = arith.constant 1.000000e+00 : f32
    %235 = vector.broadcast %cst_40 : f32 to vector<8x32xf32>
    %236 = arith.addf %235, %234 : vector<8x32xf32>
    %237 = arith.divf %235, %236 : vector<8x32xf32>
    %238 = vector.extract_strided_slice %225 {offsets = [0, 64], sizes = [8, 32], strides = [1, 1]} : vector<8x128xf32> to vector<8x32xf32>
    %239 = math.tanh %238 : vector<8x32xf32>
    %240 = vector.extract_strided_slice %225 {offsets = [0, 96], sizes = [8, 32], strides = [1, 1]} : vector<8x128xf32> to vector<8x32xf32>
    %241 = arith.negf %240 : vector<8x32xf32>
    %242 = math.exp %241 : vector<8x32xf32>
    %cst_41 = arith.constant 1.000000e+00 : f32
    %243 = vector.broadcast %cst_41 : f32 to vector<8x32xf32>
    %244 = arith.addf %243, %242 : vector<8x32xf32>
    %245 = arith.divf %243, %244 : vector<8x32xf32>
    %246 = arith.mulf %237, %218 : vector<8x32xf32>
    %247 = arith.mulf %231, %239 : vector<8x32xf32>
    %248 = arith.addf %246, %247 : vector<8x32xf32>
    %249 = math.tanh %248 : vector<8x32xf32>
    %250 = arith.mulf %245, %249 : vector<8x32xf32>
    %c0_42 = arith.constant 0 : index
    %c0_43 = arith.constant 0 : index
    %251 = vector.load %arg4[%c0_42, %c0_43] : memref<256x128xbf16, #tpu.memory_space<vmem>>, vector<256x128xbf16>
    %c0_44 = arith.constant 0 : index
    %c0_45 = arith.constant 0 : index
    %252 = vector.load %arg5[%c0_44, %c0_45] : memref<32x128xbf16, #tpu.memory_space<vmem>>, vector<32x128xbf16>
    %c0_46 = arith.constant 0 : index
    %c0_47 = arith.constant 0 : index
    %253 = vector.load %arg6[%c0_46, %c0_47] : memref<1x128xf32, #tpu.memory_space<vmem>>, vector<1x128xf32>
    %c0_48 = arith.constant 0 : index
    %c0_49 = arith.constant 0 : index
    %254 = vector.load %arg7[%c0_48, %c0_49] : memref<32x256xbf16, #tpu.memory_space<vmem>>, vector<32x256xbf16>
    %c0_50 = arith.constant 0 : index
    %c0_51 = arith.constant 0 : index
    %255 = vector.load %arg8[%c0_50, %c0_51] : memref<1x256xf32, #tpu.memory_space<vmem>>, vector<1x256xf32>
    %256 = tpu.iota {dimensions = array<i32: 1>} : vector<8x256xi32>
    %c128_i32 = arith.constant 128 : i32
    %257 = vector.broadcast %c128_i32 : i32 to vector<8x256xi32>
    %258 = arith.cmpi eq, %256, %257 : vector<8x256xi32>
    %259 = arith.extui %258 : vector<8x256xi1> to vector<8x256xi32>
    %260 = arith.sitofp %259 : vector<8x256xi32> to vector<8x256xf32>
    %261 = arith.truncf %260 : vector<8x256xf32> to vector<8x256xbf16>
    %cst_52 = arith.constant dense<0.000000e+00> : vector<8x128xf32>
    %262 = tpu.matmul %261, %251, %cst_52 {dimension_numbers = #tpu.dot_dimension_numbers<[1], [0], [0], [1], [0, 0, 1, 1], [], []>} : vector<8x256xbf16>, vector<256x128xbf16>, vector<8x128xf32> -> vector<8x128xf32>
    %263 = arith.truncf %250 : vector<8x32xf32> to vector<8x32xbf16>
    %cst_53 = arith.constant dense<0.000000e+00> : vector<8x128xf32>
    %264 = tpu.matmul %263, %252, %cst_53 {dimension_numbers = #tpu.dot_dimension_numbers<[1], [0], [0], [1], [0, 0, 1, 1], [], []>} : vector<8x32xbf16>, vector<32x128xbf16>, vector<8x128xf32> -> vector<8x128xf32>
    %265 = arith.addf %262, %264 : vector<8x128xf32>
    %266 = vector.broadcast %253 : vector<1x128xf32> to vector<8x128xf32>
    %267 = arith.addf %265, %266 : vector<8x128xf32>
    %268 = vector.extract_strided_slice %267 {offsets = [0, 0], sizes = [8, 32], strides = [1, 1]} : vector<8x128xf32> to vector<8x32xf32>
    %269 = arith.negf %268 : vector<8x32xf32>
    %270 = math.exp %269 : vector<8x32xf32>
    %cst_54 = arith.constant 1.000000e+00 : f32
    %271 = vector.broadcast %cst_54 : f32 to vector<8x32xf32>
    %272 = arith.addf %271, %270 : vector<8x32xf32>
    %273 = arith.divf %271, %272 : vector<8x32xf32>
    %274 = vector.extract_strided_slice %267 {offsets = [0, 32], sizes = [8, 32], strides = [1, 1]} : vector<8x128xf32> to vector<8x32xf32>
    %275 = arith.negf %274 : vector<8x32xf32>
    %276 = math.exp %275 : vector<8x32xf32>
    %cst_55 = arith.constant 1.000000e+00 : f32
    %277 = vector.broadcast %cst_55 : f32 to vector<8x32xf32>
    %278 = arith.addf %277, %276 : vector<8x32xf32>
    %279 = arith.divf %277, %278 : vector<8x32xf32>
    %280 = vector.extract_strided_slice %267 {offsets = [0, 64], sizes = [8, 32], strides = [1, 1]} : vector<8x128xf32> to vector<8x32xf32>
    %281 = math.tanh %280 : vector<8x32xf32>
    %282 = vector.extract_strided_slice %267 {offsets = [0, 96], sizes = [8, 32], strides = [1, 1]} : vector<8x128xf32> to vector<8x32xf32>
    %283 = arith.negf %282 : vector<8x32xf32>
    %284 = math.exp %283 : vector<8x32xf32>
    %cst_56 = arith.constant 1.000000e+00 : f32
    %285 = vector.broadcast %cst_56 : f32 to vector<8x32xf32>
    %286 = arith.addf %285, %284 : vector<8x32xf32>
    %287 = arith.divf %285, %286 : vector<8x32xf32>
    %288 = arith.mulf %279, %250 : vector<8x32xf32>
    %289 = arith.mulf %273, %281 : vector<8x32xf32>
    %290 = arith.addf %288, %289 : vector<8x32xf32>
    %291 = math.tanh %290 : vector<8x32xf32>
    %292 = arith.mulf %287, %291 : vector<8x32xf32>
    %293 = arith.truncf %292 : vector<8x32xf32> to vector<8x32xbf16>
    %cst_57 = arith.constant dense<0.000000e+00> : vector<8x256xf32>
    %294 = tpu.matmul %293, %254, %cst_57 {dimension_numbers = #tpu.dot_dimension_numbers<[1], [0], [0], [1], [0, 0, 1, 1], [], []>} : vector<8x32xbf16>, vector<32x256xbf16>, vector<8x256xf32> -> vector<8x256xf32>
    %295 = vector.broadcast %255 : vector<1x256xf32> to vector<8x256xf32>
    %296 = arith.addf %294, %295 : vector<8x256xf32>
    %c0_58 = arith.constant 0 : index
    %c0_59 = arith.constant 0 : index
    %c0_60 = arith.constant 0 : index
    %297 = vector.load %arg9[%c0_58, %c0_59, %c0_60] : memref<8x8x256xf32, #tpu.memory_space<vmem>>, vector<8x1x256xf32>
    %298 = vector.shape_cast %297 : vector<8x1x256xf32> to vector<8x256xf32>
    %299 = vector.shape_cast %296 : vector<8x256xf32> to vector<8x1x256xf32>
    tpu.vector_store %arg9[%c0_58, %c0_59, %c0_60], %299 {strides = array<i32>} : memref<8x8x256xf32, #tpu.memory_space<vmem>>, vector<8x1x256xf32>,
    %cst_61 = arith.constant dense<0xFF800000> : vector<8xf32>
    %300 = vector.multi_reduction <maximumf>, %296, %cst_61 [1] : vector<8x256xf32> to vector<8xf32>
    %301 = vector.shape_cast %300 : vector<8xf32> to vector<8x1xf32>
    %302 = vector.broadcast %301 : vector<8x1xf32> to vector<8x256xf32>
    %303 = arith.cmpf oeq, %296, %302 : vector<8x256xf32>
    %c256_i32 = arith.constant 256 : i32
    %304 = vector.broadcast %c256_i32 : i32 to vector<8x256xi32>
    %305 = arith.select %303, %256, %304 : vector<8x256xi1>, vector<8x256xi32>
    %cst_62 = arith.constant dense<2147483647> : vector<8xi32>
    %306 = vector.multi_reduction <minsi>, %305, %cst_62 [1] : vector<8x256xi32> to vector<8xi32>
    %307 = vector.shape_cast %306 : vector<8xi32> to vector<8x1xi32>
    %308 = vector.broadcast %307 : vector<8x1xi32> to vector<8x256xi32>
    %309 = arith.cmpi eq, %256, %308 : vector<8x256xi32>
    %310 = arith.extui %309 : vector<8x256xi1> to vector<8x256xi32>
    %311 = arith.sitofp %310 : vector<8x256xi32> to vector<8x256xf32>
    %312 = arith.truncf %311 : vector<8x256xf32> to vector<8x256xbf16>
    %cst_63 = arith.constant dense<0.000000e+00> : vector<8x128xf32>
    %313 = tpu.matmul %312, %251, %cst_63 {dimension_numbers = #tpu.dot_dimension_numbers<[1], [0], [0], [1], [0, 0, 1, 1], [], []>} : vector<8x256xbf16>, vector<256x128xbf16>, vector<8x128xf32> -> vector<8x128xf32>
    %314 = arith.truncf %292 : vector<8x32xf32> to vector<8x32xbf16>
    %cst_64 = arith.constant dense<0.000000e+00> : vector<8x128xf32>
    %315 = tpu.matmul %314, %252, %cst_64 {dimension_numbers = #tpu.dot_dimension_numbers<[1], [0], [0], [1], [0, 0, 1, 1], [], []>} : vector<8x32xbf16>, vector<32x128xbf16>, vector<8x128xf32> -> vector<8x128xf32>
    %316 = arith.addf %313, %315 : vector<8x128xf32>
    %317 = vector.broadcast %253 : vector<1x128xf32> to vector<8x128xf32>
    %318 = arith.addf %316, %317 : vector<8x128xf32>
    %319 = vector.extract_strided_slice %318 {offsets = [0, 0], sizes = [8, 32], strides = [1, 1]} : vector<8x128xf32> to vector<8x32xf32>
    %320 = arith.negf %319 : vector<8x32xf32>
    %321 = math.exp %320 : vector<8x32xf32>
    %cst_65 = arith.constant 1.000000e+00 : f32
    %322 = vector.broadcast %cst_65 : f32 to vector<8x32xf32>
    %323 = arith.addf %322, %321 : vector<8x32xf32>
    %324 = arith.divf %322, %323 : vector<8x32xf32>
    %325 = vector.extract_strided_slice %318 {offsets = [0, 32], sizes = [8, 32], strides = [1, 1]} : vector<8x128xf32> to vector<8x32xf32>
    %326 = arith.negf %325 : vector<8x32xf32>
    %327 = math.exp %326 : vector<8x32xf32>
    %cst_66 = arith.constant 1.000000e+00 : f32
    %328 = vector.broadcast %cst_66 : f32 to vector<8x32xf32>
    %329 = arith.addf %328, %327 : vector<8x32xf32>
    %330 = arith.divf %328, %329 : vector<8x32xf32>
    %331 = vector.extract_strided_slice %318 {offsets = [0, 64], sizes = [8, 32], strides = [1, 1]} : vector<8x128xf32> to vector<8x32xf32>
    %332 = math.tanh %331 : vector<8x32xf32>
    %333 = vector.extract_strided_slice %318 {offsets = [0, 96], sizes = [8, 32], strides = [1, 1]} : vector<8x128xf32> to vector<8x32xf32>
    %334 = arith.negf %333 : vector<8x32xf32>
    %335 = math.exp %334 : vector<8x32xf32>
    %cst_67 = arith.constant 1.000000e+00 : f32
    %336 = vector.broadcast %cst_67 : f32 to vector<8x32xf32>
    %337 = arith.addf %336, %335 : vector<8x32xf32>
    %338 = arith.divf %336, %337 : vector<8x32xf32>
    %339 = arith.mulf %330, %290 : vector<8x32xf32>
    %340 = arith.mulf %324, %332 : vector<8x32xf32>
    %341 = arith.addf %339, %340 : vector<8x32xf32>
    %342 = math.tanh %341 : vector<8x32xf32>
    %343 = arith.mulf %338, %342 : vector<8x32xf32>
    %344 = arith.truncf %343 : vector<8x32xf32> to vector<8x32xbf16>
    %cst_68 = arith.constant dense<0.000000e+00> : vector<8x256xf32>
    %345 = tpu.matmul %344, %254, %cst_68 {dimension_numbers = #tpu.dot_dimension_numbers<[1], [0], [0], [1], [0, 0, 1, 1], [], []>} : vector<8x32xbf16>, vector<32x256xbf16>, vector<8x256xf32> -> vector<8x256xf32>
    %346 = vector.broadcast %255 : vector<1x256xf32> to vector<8x256xf32>
    %347 = arith.addf %345, %346 : vector<8x256xf32>
    %c0_69 = arith.constant 0 : index
    %c1 = arith.constant 1 : index
    %c0_70 = arith.constant 0 : index
    %348 = vector.load %arg9[%c0_69, %c1, %c0_70] : memref<8x8x256xf32, #tpu.memory_space<vmem>>, vector<8x1x256xf32>
    %349 = vector.shape_cast %348 : vector<8x1x256xf32> to vector<8x256xf32>
    %350 = vector.shape_cast %347 : vector<8x256xf32> to vector<8x1x256xf32>
    tpu.vector_store %arg9[%c0_69, %c1, %c0_70], %350 {strides = array<i32>} : memref<8x8x256xf32, #tpu.memory_space<vmem>>, vector<8x1x256xf32>,
    %cst_71 = arith.constant dense<0xFF800000> : vector<8xf32>
    %351 = vector.multi_reduction <maximumf>, %347, %cst_71 [1] : vector<8x256xf32> to vector<8xf32>
    %352 = vector.shape_cast %351 : vector<8xf32> to vector<8x1xf32>
    %353 = vector.broadcast %352 : vector<8x1xf32> to vector<8x256xf32>
    %354 = arith.cmpf oeq, %347, %353 : vector<8x256xf32>
    %c256_i32_72 = arith.constant 256 : i32
    %355 = vector.broadcast %c256_i32_72 : i32 to vector<8x256xi32>
    %356 = arith.select %354, %256, %355 : vector<8x256xi1>, vector<8x256xi32>
    %cst_73 = arith.constant dense<2147483647> : vector<8xi32>
    %357 = vector.multi_reduction <minsi>, %356, %cst_73 [1] : vector<8x256xi32> to vector<8xi32>
    %358 = vector.shape_cast %357 : vector<8xi32> to vector<8x1xi32>
    %359 = vector.broadcast %358 : vector<8x1xi32> to vector<8x256xi32>
    %360 = arith.cmpi eq, %256, %359 : vector<8x256xi32>
    %361 = arith.extui %360 : vector<8x256xi1> to vector<8x256xi32>
    %362 = arith.sitofp %361 : vector<8x256xi32> to vector<8x256xf32>
    %363 = arith.truncf %362 : vector<8x256xf32> to vector<8x256xbf16>
    %cst_74 = arith.constant dense<0.000000e+00> : vector<8x128xf32>
    %364 = tpu.matmul %363, %251, %cst_74 {dimension_numbers = #tpu.dot_dimension_numbers<[1], [0], [0], [1], [0, 0, 1, 1], [], []>} : vector<8x256xbf16>, vector<256x128xbf16>, vector<8x128xf32> -> vector<8x128xf32>
    %365 = arith.truncf %343 : vector<8x32xf32> to vector<8x32xbf16>
    %cst_75 = arith.constant dense<0.000000e+00> : vector<8x128xf32>
    %366 = tpu.matmul %365, %252, %cst_75 {dimension_numbers = #tpu.dot_dimension_numbers<[1], [0], [0], [1], [0, 0, 1, 1], [], []>} : vector<8x32xbf16>, vector<32x128xbf16>, vector<8x128xf32> -> vector<8x128xf32>
    %367 = arith.addf %364, %366 : vector<8x128xf32>
    %368 = vector.broadcast %253 : vector<1x128xf32> to vector<8x128xf32>
    %369 = arith.addf %367, %368 : vector<8x128xf32>
    %370 = vector.extract_strided_slice %369 {offsets = [0, 0], sizes = [8, 32], strides = [1, 1]} : vector<8x128xf32> to vector<8x32xf32>
    %371 = arith.negf %370 : vector<8x32xf32>
    %372 = math.exp %371 : vector<8x32xf32>
    %cst_76 = arith.constant 1.000000e+00 : f32
    %373 = vector.broadcast %cst_76 : f32 to vector<8x32xf32>
    %374 = arith.addf %373, %372 : vector<8x32xf32>
    %375 = arith.divf %373, %374 : vector<8x32xf32>
    %376 = vector.extract_strided_slice %369 {offsets = [0, 32], sizes = [8, 32], strides = [1, 1]} : vector<8x128xf32> to vector<8x32xf32>
    %377 = arith.negf %376 : vector<8x32xf32>
    %378 = math.exp %377 : vector<8x32xf32>
    %cst_77 = arith.constant 1.000000e+00 : f32
    %379 = vector.broadcast %cst_77 : f32 to vector<8x32xf32>
    %380 = arith.addf %379, %378 : vector<8x32xf32>
    %381 = arith.divf %379, %380 : vector<8x32xf32>
    %382 = vector.extract_strided_slice %369 {offsets = [0, 64], sizes = [8, 32], strides = [1, 1]} : vector<8x128xf32> to vector<8x32xf32>
    %383 = math.tanh %382 : vector<8x32xf32>
    %384 = vector.extract_strided_slice %369 {offsets = [0, 96], sizes = [8, 32], strides = [1, 1]} : vector<8x128xf32> to vector<8x32xf32>
    %385 = arith.negf %384 : vector<8x32xf32>
    %386 = math.exp %385 : vector<8x32xf32>
    %cst_78 = arith.constant 1.000000e+00 : f32
    %387 = vector.broadcast %cst_78 : f32 to vector<8x32xf32>
    %388 = arith.addf %387, %386 : vector<8x32xf32>
    %389 = arith.divf %387, %388 : vector<8x32xf32>
    %390 = arith.mulf %381, %341 : vector<8x32xf32>
    %391 = arith.mulf %375, %383 : vector<8x32xf32>
    %392 = arith.addf %390, %391 : vector<8x32xf32>
    %393 = math.tanh %392 : vector<8x32xf32>
    %394 = arith.mulf %389, %393 : vector<8x32xf32>
    %395 = arith.truncf %394 : vector<8x32xf32> to vector<8x32xbf16>
    %cst_79 = arith.constant dense<0.000000e+00> : vector<8x256xf32>
    %396 = tpu.matmul %395, %254, %cst_79 {dimension_numbers = #tpu.dot_dimension_numbers<[1], [0], [0], [1], [0, 0, 1, 1], [], []>} : vector<8x32xbf16>, vector<32x256xbf16>, vector<8x256xf32> -> vector<8x256xf32>
    %397 = vector.broadcast %255 : vector<1x256xf32> to vector<8x256xf32>
    %398 = arith.addf %396, %397 : vector<8x256xf32>
    %c0_80 = arith.constant 0 : index
    %c2 = arith.constant 2 : index
    %c0_81 = arith.constant 0 : index
    %399 = vector.load %arg9[%c0_80, %c2, %c0_81] : memref<8x8x256xf32, #tpu.memory_space<vmem>>, vector<8x1x256xf32>
    %400 = vector.shape_cast %399 : vector<8x1x256xf32> to vector<8x256xf32>
    %401 = vector.shape_cast %398 : vector<8x256xf32> to vector<8x1x256xf32>
    tpu.vector_store %arg9[%c0_80, %c2, %c0_81], %401 {strides = array<i32>} : memref<8x8x256xf32, #tpu.memory_space<vmem>>, vector<8x1x256xf32>,
    %cst_82 = arith.constant dense<0xFF800000> : vector<8xf32>
    %402 = vector.multi_reduction <maximumf>, %398, %cst_82 [1] : vector<8x256xf32> to vector<8xf32>
    %403 = vector.shape_cast %402 : vector<8xf32> to vector<8x1xf32>
    %404 = vector.broadcast %403 : vector<8x1xf32> to vector<8x256xf32>
    %405 = arith.cmpf oeq, %398, %404 : vector<8x256xf32>
    %c256_i32_83 = arith.constant 256 : i32
    %406 = vector.broadcast %c256_i32_83 : i32 to vector<8x256xi32>
    %407 = arith.select %405, %256, %406 : vector<8x256xi1>, vector<8x256xi32>
    %cst_84 = arith.constant dense<2147483647> : vector<8xi32>
    %408 = vector.multi_reduction <minsi>, %407, %cst_84 [1] : vector<8x256xi32> to vector<8xi32>
    %409 = vector.shape_cast %408 : vector<8xi32> to vector<8x1xi32>
    %410 = vector.broadcast %409 : vector<8x1xi32> to vector<8x256xi32>
    %411 = arith.cmpi eq, %256, %410 : vector<8x256xi32>
    %412 = arith.extui %411 : vector<8x256xi1> to vector<8x256xi32>
    %413 = arith.sitofp %412 : vector<8x256xi32> to vector<8x256xf32>
    %414 = arith.truncf %413 : vector<8x256xf32> to vector<8x256xbf16>
    %cst_85 = arith.constant dense<0.000000e+00> : vector<8x128xf32>
    %415 = tpu.matmul %414, %251, %cst_85 {dimension_numbers = #tpu.dot_dimension_numbers<[1], [0], [0], [1], [0, 0, 1, 1], [], []>} : vector<8x256xbf16>, vector<256x128xbf16>, vector<8x128xf32> -> vector<8x128xf32>
    %416 = arith.truncf %394 : vector<8x32xf32> to vector<8x32xbf16>
    %cst_86 = arith.constant dense<0.000000e+00> : vector<8x128xf32>
    %417 = tpu.matmul %416, %252, %cst_86 {dimension_numbers = #tpu.dot_dimension_numbers<[1], [0], [0], [1], [0, 0, 1, 1], [], []>} : vector<8x32xbf16>, vector<32x128xbf16>, vector<8x128xf32> -> vector<8x128xf32>
    %418 = arith.addf %415, %417 : vector<8x128xf32>
    %419 = vector.broadcast %253 : vector<1x128xf32> to vector<8x128xf32>
    %420 = arith.addf %418, %419 : vector<8x128xf32>
    %421 = vector.extract_strided_slice %420 {offsets = [0, 0], sizes = [8, 32], strides = [1, 1]} : vector<8x128xf32> to vector<8x32xf32>
    %422 = arith.negf %421 : vector<8x32xf32>
    %423 = math.exp %422 : vector<8x32xf32>
    %cst_87 = arith.constant 1.000000e+00 : f32
    %424 = vector.broadcast %cst_87 : f32 to vector<8x32xf32>
    %425 = arith.addf %424, %423 : vector<8x32xf32>
    %426 = arith.divf %424, %425 : vector<8x32xf32>
    %427 = vector.extract_strided_slice %420 {offsets = [0, 32], sizes = [8, 32], strides = [1, 1]} : vector<8x128xf32> to vector<8x32xf32>
    %428 = arith.negf %427 : vector<8x32xf32>
    %429 = math.exp %428 : vector<8x32xf32>
    %cst_88 = arith.constant 1.000000e+00 : f32
    %430 = vector.broadcast %cst_88 : f32 to vector<8x32xf32>
    %431 = arith.addf %430, %429 : vector<8x32xf32>
    %432 = arith.divf %430, %431 : vector<8x32xf32>
    %433 = vector.extract_strided_slice %420 {offsets = [0, 64], sizes = [8, 32], strides = [1, 1]} : vector<8x128xf32> to vector<8x32xf32>
    %434 = math.tanh %433 : vector<8x32xf32>
    %435 = vector.extract_strided_slice %420 {offsets = [0, 96], sizes = [8, 32], strides = [1, 1]} : vector<8x128xf32> to vector<8x32xf32>
    %436 = arith.negf %435 : vector<8x32xf32>
    %437 = math.exp %436 : vector<8x32xf32>
    %cst_89 = arith.constant 1.000000e+00 : f32
    %438 = vector.broadcast %cst_89 : f32 to vector<8x32xf32>
    %439 = arith.addf %438, %437 : vector<8x32xf32>
    %440 = arith.divf %438, %439 : vector<8x32xf32>
    %441 = arith.mulf %432, %392 : vector<8x32xf32>
    %442 = arith.mulf %426, %434 : vector<8x32xf32>
    %443 = arith.addf %441, %442 : vector<8x32xf32>
    %444 = math.tanh %443 : vector<8x32xf32>
    %445 = arith.mulf %440, %444 : vector<8x32xf32>
    %446 = arith.truncf %445 : vector<8x32xf32> to vector<8x32xbf16>
    %cst_90 = arith.constant dense<0.000000e+00> : vector<8x256xf32>
    %447 = tpu.matmul %446, %254, %cst_90 {dimension_numbers = #tpu.dot_dimension_numbers<[1], [0], [0], [1], [0, 0, 1, 1], [], []>} : vector<8x32xbf16>, vector<32x256xbf16>, vector<8x256xf32> -> vector<8x256xf32>
    %448 = vector.broadcast %255 : vector<1x256xf32> to vector<8x256xf32>
    %449 = arith.addf %447, %448 : vector<8x256xf32>
    %c0_91 = arith.constant 0 : index
    %c3 = arith.constant 3 : index
    %c0_92 = arith.constant 0 : index
    %450 = vector.load %arg9[%c0_91, %c3, %c0_92] : memref<8x8x256xf32, #tpu.memory_space<vmem>>, vector<8x1x256xf32>
    %451 = vector.shape_cast %450 : vector<8x1x256xf32> to vector<8x256xf32>
    %452 = vector.shape_cast %449 : vector<8x256xf32> to vector<8x1x256xf32>
    tpu.vector_store %arg9[%c0_91, %c3, %c0_92], %452 {strides = array<i32>} : memref<8x8x256xf32, #tpu.memory_space<vmem>>, vector<8x1x256xf32>,
    %cst_93 = arith.constant dense<0xFF800000> : vector<8xf32>
    %453 = vector.multi_reduction <maximumf>, %449, %cst_93 [1] : vector<8x256xf32> to vector<8xf32>
    %454 = vector.shape_cast %453 : vector<8xf32> to vector<8x1xf32>
    %455 = vector.broadcast %454 : vector<8x1xf32> to vector<8x256xf32>
    %456 = arith.cmpf oeq, %449, %455 : vector<8x256xf32>
    %c256_i32_94 = arith.constant 256 : i32
    %457 = vector.broadcast %c256_i32_94 : i32 to vector<8x256xi32>
    %458 = arith.select %456, %256, %457 : vector<8x256xi1>, vector<8x256xi32>
    %cst_95 = arith.constant dense<2147483647> : vector<8xi32>
    %459 = vector.multi_reduction <minsi>, %458, %cst_95 [1] : vector<8x256xi32> to vector<8xi32>
    %460 = vector.shape_cast %459 : vector<8xi32> to vector<8x1xi32>
    %461 = vector.broadcast %460 : vector<8x1xi32> to vector<8x256xi32>
    %462 = arith.cmpi eq, %256, %461 : vector<8x256xi32>
    %463 = arith.extui %462 : vector<8x256xi1> to vector<8x256xi32>
    %464 = arith.sitofp %463 : vector<8x256xi32> to vector<8x256xf32>
    %465 = arith.truncf %464 : vector<8x256xf32> to vector<8x256xbf16>
    %cst_96 = arith.constant dense<0.000000e+00> : vector<8x128xf32>
    %466 = tpu.matmul %465, %251, %cst_96 {dimension_numbers = #tpu.dot_dimension_numbers<[1], [0], [0], [1], [0, 0, 1, 1], [], []>} : vector<8x256xbf16>, vector<256x128xbf16>, vector<8x128xf32> -> vector<8x128xf32>
    %467 = arith.truncf %445 : vector<8x32xf32> to vector<8x32xbf16>
    %cst_97 = arith.constant dense<0.000000e+00> : vector<8x128xf32>
    %468 = tpu.matmul %467, %252, %cst_97 {dimension_numbers = #tpu.dot_dimension_numbers<[1], [0], [0], [1], [0, 0, 1, 1], [], []>} : vector<8x32xbf16>, vector<32x128xbf16>, vector<8x128xf32> -> vector<8x128xf32>
    %469 = arith.addf %466, %468 : vector<8x128xf32>
    %470 = vector.broadcast %253 : vector<1x128xf32> to vector<8x128xf32>
    %471 = arith.addf %469, %470 : vector<8x128xf32>
    %472 = vector.extract_strided_slice %471 {offsets = [0, 0], sizes = [8, 32], strides = [1, 1]} : vector<8x128xf32> to vector<8x32xf32>
    %473 = arith.negf %472 : vector<8x32xf32>
    %474 = math.exp %473 : vector<8x32xf32>
    %cst_98 = arith.constant 1.000000e+00 : f32
    %475 = vector.broadcast %cst_98 : f32 to vector<8x32xf32>
    %476 = arith.addf %475, %474 : vector<8x32xf32>
    %477 = arith.divf %475, %476 : vector<8x32xf32>
    %478 = vector.extract_strided_slice %471 {offsets = [0, 32], sizes = [8, 32], strides = [1, 1]} : vector<8x128xf32> to vector<8x32xf32>
    %479 = arith.negf %478 : vector<8x32xf32>
    %480 = math.exp %479 : vector<8x32xf32>
    %cst_99 = arith.constant 1.000000e+00 : f32
    %481 = vector.broadcast %cst_99 : f32 to vector<8x32xf32>
    %482 = arith.addf %481, %480 : vector<8x32xf32>
    %483 = arith.divf %481, %482 : vector<8x32xf32>
    %484 = vector.extract_strided_slice %471 {offsets = [0, 64], sizes = [8, 32], strides = [1, 1]} : vector<8x128xf32> to vector<8x32xf32>
    %485 = math.tanh %484 : vector<8x32xf32>
    %486 = vector.extract_strided_slice %471 {offsets = [0, 96], sizes = [8, 32], strides = [1, 1]} : vector<8x128xf32> to vector<8x32xf32>
    %487 = arith.negf %486 : vector<8x32xf32>
    %488 = math.exp %487 : vector<8x32xf32>
    %cst_100 = arith.constant 1.000000e+00 : f32
    %489 = vector.broadcast %cst_100 : f32 to vector<8x32xf32>
    %490 = arith.addf %489, %488 : vector<8x32xf32>
    %491 = arith.divf %489, %490 : vector<8x32xf32>
    %492 = arith.mulf %483, %443 : vector<8x32xf32>
    %493 = arith.mulf %477, %485 : vector<8x32xf32>
    %494 = arith.addf %492, %493 : vector<8x32xf32>
    %495 = math.tanh %494 : vector<8x32xf32>
    %496 = arith.mulf %491, %495 : vector<8x32xf32>
    %497 = arith.truncf %496 : vector<8x32xf32> to vector<8x32xbf16>
    %cst_101 = arith.constant dense<0.000000e+00> : vector<8x256xf32>
    %498 = tpu.matmul %497, %254, %cst_101 {dimension_numbers = #tpu.dot_dimension_numbers<[1], [0], [0], [1], [0, 0, 1, 1], [], []>} : vector<8x32xbf16>, vector<32x256xbf16>, vector<8x256xf32> -> vector<8x256xf32>
    %499 = vector.broadcast %255 : vector<1x256xf32> to vector<8x256xf32>
    %500 = arith.addf %498, %499 : vector<8x256xf32>
    %c0_102 = arith.constant 0 : index
    %c4 = arith.constant 4 : index
    %c0_103 = arith.constant 0 : index
    %501 = vector.load %arg9[%c0_102, %c4, %c0_103] : memref<8x8x256xf32, #tpu.memory_space<vmem>>, vector<8x1x256xf32>
    %502 = vector.shape_cast %501 : vector<8x1x256xf32> to vector<8x256xf32>
    %503 = vector.shape_cast %500 : vector<8x256xf32> to vector<8x1x256xf32>
    tpu.vector_store %arg9[%c0_102, %c4, %c0_103], %503 {strides = array<i32>} : memref<8x8x256xf32, #tpu.memory_space<vmem>>, vector<8x1x256xf32>,
    %cst_104 = arith.constant dense<0xFF800000> : vector<8xf32>
    %504 = vector.multi_reduction <maximumf>, %500, %cst_104 [1] : vector<8x256xf32> to vector<8xf32>
    %505 = vector.shape_cast %504 : vector<8xf32> to vector<8x1xf32>
    %506 = vector.broadcast %505 : vector<8x1xf32> to vector<8x256xf32>
    %507 = arith.cmpf oeq, %500, %506 : vector<8x256xf32>
    %c256_i32_105 = arith.constant 256 : i32
    %508 = vector.broadcast %c256_i32_105 : i32 to vector<8x256xi32>
    %509 = arith.select %507, %256, %508 : vector<8x256xi1>, vector<8x256xi32>
    %cst_106 = arith.constant dense<2147483647> : vector<8xi32>
    %510 = vector.multi_reduction <minsi>, %509, %cst_106 [1] : vector<8x256xi32> to vector<8xi32>
    %511 = vector.shape_cast %510 : vector<8xi32> to vector<8x1xi32>
    %512 = vector.broadcast %511 : vector<8x1xi32> to vector<8x256xi32>
    %513 = arith.cmpi eq, %256, %512 : vector<8x256xi32>
    %514 = arith.extui %513 : vector<8x256xi1> to vector<8x256xi32>
    %515 = arith.sitofp %514 : vector<8x256xi32> to vector<8x256xf32>
    %516 = arith.truncf %515 : vector<8x256xf32> to vector<8x256xbf16>
    %cst_107 = arith.constant dense<0.000000e+00> : vector<8x128xf32>
    %517 = tpu.matmul %516, %251, %cst_107 {dimension_numbers = #tpu.dot_dimension_numbers<[1], [0], [0], [1], [0, 0, 1, 1], [], []>} : vector<8x256xbf16>, vector<256x128xbf16>, vector<8x128xf32> -> vector<8x128xf32>
    %518 = arith.truncf %496 : vector<8x32xf32> to vector<8x32xbf16>
    %cst_108 = arith.constant dense<0.000000e+00> : vector<8x128xf32>
    %519 = tpu.matmul %518, %252, %cst_108 {dimension_numbers = #tpu.dot_dimension_numbers<[1], [0], [0], [1], [0, 0, 1, 1], [], []>} : vector<8x32xbf16>, vector<32x128xbf16>, vector<8x128xf32> -> vector<8x128xf32>
    %520 = arith.addf %517, %519 : vector<8x128xf32>
    %521 = vector.broadcast %253 : vector<1x128xf32> to vector<8x128xf32>
    %522 = arith.addf %520, %521 : vector<8x128xf32>
    %523 = vector.extract_strided_slice %522 {offsets = [0, 0], sizes = [8, 32], strides = [1, 1]} : vector<8x128xf32> to vector<8x32xf32>
    %524 = arith.negf %523 : vector<8x32xf32>
    %525 = math.exp %524 : vector<8x32xf32>
    %cst_109 = arith.constant 1.000000e+00 : f32
    %526 = vector.broadcast %cst_109 : f32 to vector<8x32xf32>
    %527 = arith.addf %526, %525 : vector<8x32xf32>
    %528 = arith.divf %526, %527 : vector<8x32xf32>
    %529 = vector.extract_strided_slice %522 {offsets = [0, 32], sizes = [8, 32], strides = [1, 1]} : vector<8x128xf32> to vector<8x32xf32>
    %530 = arith.negf %529 : vector<8x32xf32>
    %531 = math.exp %530 : vector<8x32xf32>
    %cst_110 = arith.constant 1.000000e+00 : f32
    %532 = vector.broadcast %cst_110 : f32 to vector<8x32xf32>
    %533 = arith.addf %532, %531 : vector<8x32xf32>
    %534 = arith.divf %532, %533 : vector<8x32xf32>
    %535 = vector.extract_strided_slice %522 {offsets = [0, 64], sizes = [8, 32], strides = [1, 1]} : vector<8x128xf32> to vector<8x32xf32>
    %536 = math.tanh %535 : vector<8x32xf32>
    %537 = vector.extract_strided_slice %522 {offsets = [0, 96], sizes = [8, 32], strides = [1, 1]} : vector<8x128xf32> to vector<8x32xf32>
    %538 = arith.negf %537 : vector<8x32xf32>
    %539 = math.exp %538 : vector<8x32xf32>
    %cst_111 = arith.constant 1.000000e+00 : f32
    %540 = vector.broadcast %cst_111 : f32 to vector<8x32xf32>
    %541 = arith.addf %540, %539 : vector<8x32xf32>
    %542 = arith.divf %540, %541 : vector<8x32xf32>
    %543 = arith.mulf %534, %494 : vector<8x32xf32>
    %544 = arith.mulf %528, %536 : vector<8x32xf32>
    %545 = arith.addf %543, %544 : vector<8x32xf32>
    %546 = math.tanh %545 : vector<8x32xf32>
    %547 = arith.mulf %542, %546 : vector<8x32xf32>
    %548 = arith.truncf %547 : vector<8x32xf32> to vector<8x32xbf16>
    %cst_112 = arith.constant dense<0.000000e+00> : vector<8x256xf32>
    %549 = tpu.matmul %548, %254, %cst_112 {dimension_numbers = #tpu.dot_dimension_numbers<[1], [0], [0], [1], [0, 0, 1, 1], [], []>} : vector<8x32xbf16>, vector<32x256xbf16>, vector<8x256xf32> -> vector<8x256xf32>
    %550 = vector.broadcast %255 : vector<1x256xf32> to vector<8x256xf32>
    %551 = arith.addf %549, %550 : vector<8x256xf32>
    %c0_113 = arith.constant 0 : index
    %c5 = arith.constant 5 : index
    %c0_114 = arith.constant 0 : index
    %552 = vector.load %arg9[%c0_113, %c5, %c0_114] : memref<8x8x256xf32, #tpu.memory_space<vmem>>, vector<8x1x256xf32>
    %553 = vector.shape_cast %552 : vector<8x1x256xf32> to vector<8x256xf32>
    %554 = vector.shape_cast %551 : vector<8x256xf32> to vector<8x1x256xf32>
    tpu.vector_store %arg9[%c0_113, %c5, %c0_114], %554 {strides = array<i32>} : memref<8x8x256xf32, #tpu.memory_space<vmem>>, vector<8x1x256xf32>,
    %cst_115 = arith.constant dense<0xFF800000> : vector<8xf32>
    %555 = vector.multi_reduction <maximumf>, %551, %cst_115 [1] : vector<8x256xf32> to vector<8xf32>
    %556 = vector.shape_cast %555 : vector<8xf32> to vector<8x1xf32>
    %557 = vector.broadcast %556 : vector<8x1xf32> to vector<8x256xf32>
    %558 = arith.cmpf oeq, %551, %557 : vector<8x256xf32>
    %c256_i32_116 = arith.constant 256 : i32
    %559 = vector.broadcast %c256_i32_116 : i32 to vector<8x256xi32>
    %560 = arith.select %558, %256, %559 : vector<8x256xi1>, vector<8x256xi32>
    %cst_117 = arith.constant dense<2147483647> : vector<8xi32>
    %561 = vector.multi_reduction <minsi>, %560, %cst_117 [1] : vector<8x256xi32> to vector<8xi32>
    %562 = vector.shape_cast %561 : vector<8xi32> to vector<8x1xi32>
    %563 = vector.broadcast %562 : vector<8x1xi32> to vector<8x256xi32>
    %564 = arith.cmpi eq, %256, %563 : vector<8x256xi32>
    %565 = arith.extui %564 : vector<8x256xi1> to vector<8x256xi32>
    %566 = arith.sitofp %565 : vector<8x256xi32> to vector<8x256xf32>
    %567 = arith.truncf %566 : vector<8x256xf32> to vector<8x256xbf16>
    %cst_118 = arith.constant dense<0.000000e+00> : vector<8x128xf32>
    %568 = tpu.matmul %567, %251, %cst_118 {dimension_numbers = #tpu.dot_dimension_numbers<[1], [0], [0], [1], [0, 0, 1, 1], [], []>} : vector<8x256xbf16>, vector<256x128xbf16>, vector<8x128xf32> -> vector<8x128xf32>
    %569 = arith.truncf %547 : vector<8x32xf32> to vector<8x32xbf16>
    %cst_119 = arith.constant dense<0.000000e+00> : vector<8x128xf32>
    %570 = tpu.matmul %569, %252, %cst_119 {dimension_numbers = #tpu.dot_dimension_numbers<[1], [0], [0], [1], [0, 0, 1, 1], [], []>} : vector<8x32xbf16>, vector<32x128xbf16>, vector<8x128xf32> -> vector<8x128xf32>
    %571 = arith.addf %568, %570 : vector<8x128xf32>
    %572 = vector.broadcast %253 : vector<1x128xf32> to vector<8x128xf32>
    %573 = arith.addf %571, %572 : vector<8x128xf32>
    %574 = vector.extract_strided_slice %573 {offsets = [0, 0], sizes = [8, 32], strides = [1, 1]} : vector<8x128xf32> to vector<8x32xf32>
    %575 = arith.negf %574 : vector<8x32xf32>
    %576 = math.exp %575 : vector<8x32xf32>
    %cst_120 = arith.constant 1.000000e+00 : f32
    %577 = vector.broadcast %cst_120 : f32 to vector<8x32xf32>
    %578 = arith.addf %577, %576 : vector<8x32xf32>
    %579 = arith.divf %577, %578 : vector<8x32xf32>
    %580 = vector.extract_strided_slice %573 {offsets = [0, 32], sizes = [8, 32], strides = [1, 1]} : vector<8x128xf32> to vector<8x32xf32>
    %581 = arith.negf %580 : vector<8x32xf32>
    %582 = math.exp %581 : vector<8x32xf32>
    %cst_121 = arith.constant 1.000000e+00 : f32
    %583 = vector.broadcast %cst_121 : f32 to vector<8x32xf32>
    %584 = arith.addf %583, %582 : vector<8x32xf32>
    %585 = arith.divf %583, %584 : vector<8x32xf32>
    %586 = vector.extract_strided_slice %573 {offsets = [0, 64], sizes = [8, 32], strides = [1, 1]} : vector<8x128xf32> to vector<8x32xf32>
    %587 = math.tanh %586 : vector<8x32xf32>
    %588 = vector.extract_strided_slice %573 {offsets = [0, 96], sizes = [8, 32], strides = [1, 1]} : vector<8x128xf32> to vector<8x32xf32>
    %589 = arith.negf %588 : vector<8x32xf32>
    %590 = math.exp %589 : vector<8x32xf32>
    %cst_122 = arith.constant 1.000000e+00 : f32
    %591 = vector.broadcast %cst_122 : f32 to vector<8x32xf32>
    %592 = arith.addf %591, %590 : vector<8x32xf32>
    %593 = arith.divf %591, %592 : vector<8x32xf32>
    %594 = arith.mulf %585, %545 : vector<8x32xf32>
    %595 = arith.mulf %579, %587 : vector<8x32xf32>
    %596 = arith.addf %594, %595 : vector<8x32xf32>
    %597 = math.tanh %596 : vector<8x32xf32>
    %598 = arith.mulf %593, %597 : vector<8x32xf32>
    %599 = arith.truncf %598 : vector<8x32xf32> to vector<8x32xbf16>
    %cst_123 = arith.constant dense<0.000000e+00> : vector<8x256xf32>
    %600 = tpu.matmul %599, %254, %cst_123 {dimension_numbers = #tpu.dot_dimension_numbers<[1], [0], [0], [1], [0, 0, 1, 1], [], []>} : vector<8x32xbf16>, vector<32x256xbf16>, vector<8x256xf32> -> vector<8x256xf32>
    %601 = vector.broadcast %255 : vector<1x256xf32> to vector<8x256xf32>
    %602 = arith.addf %600, %601 : vector<8x256xf32>
    %c0_124 = arith.constant 0 : index
    %c6 = arith.constant 6 : index
    %c0_125 = arith.constant 0 : index
    %603 = vector.load %arg9[%c0_124, %c6, %c0_125] : memref<8x8x256xf32, #tpu.memory_space<vmem>>, vector<8x1x256xf32>
    %604 = vector.shape_cast %603 : vector<8x1x256xf32> to vector<8x256xf32>
    %605 = vector.shape_cast %602 : vector<8x256xf32> to vector<8x1x256xf32>
    tpu.vector_store %arg9[%c0_124, %c6, %c0_125], %605 {strides = array<i32>} : memref<8x8x256xf32, #tpu.memory_space<vmem>>, vector<8x1x256xf32>,
    %cst_126 = arith.constant dense<0xFF800000> : vector<8xf32>
    %606 = vector.multi_reduction <maximumf>, %602, %cst_126 [1] : vector<8x256xf32> to vector<8xf32>
    %607 = vector.shape_cast %606 : vector<8xf32> to vector<8x1xf32>
    %608 = vector.broadcast %607 : vector<8x1xf32> to vector<8x256xf32>
    %609 = arith.cmpf oeq, %602, %608 : vector<8x256xf32>
    %c256_i32_127 = arith.constant 256 : i32
    %610 = vector.broadcast %c256_i32_127 : i32 to vector<8x256xi32>
    %611 = arith.select %609, %256, %610 : vector<8x256xi1>, vector<8x256xi32>
    %cst_128 = arith.constant dense<2147483647> : vector<8xi32>
    %612 = vector.multi_reduction <minsi>, %611, %cst_128 [1] : vector<8x256xi32> to vector<8xi32>
    %613 = vector.shape_cast %612 : vector<8xi32> to vector<8x1xi32>
    %614 = vector.broadcast %613 : vector<8x1xi32> to vector<8x256xi32>
    %615 = arith.cmpi eq, %256, %614 : vector<8x256xi32>
    %616 = arith.extui %615 : vector<8x256xi1> to vector<8x256xi32>
    %617 = arith.sitofp %616 : vector<8x256xi32> to vector<8x256xf32>
    %618 = arith.truncf %617 : vector<8x256xf32> to vector<8x256xbf16>
    %cst_129 = arith.constant dense<0.000000e+00> : vector<8x128xf32>
    %619 = tpu.matmul %618, %251, %cst_129 {dimension_numbers = #tpu.dot_dimension_numbers<[1], [0], [0], [1], [0, 0, 1, 1], [], []>} : vector<8x256xbf16>, vector<256x128xbf16>, vector<8x128xf32> -> vector<8x128xf32>
    %620 = arith.truncf %598 : vector<8x32xf32> to vector<8x32xbf16>
    %cst_130 = arith.constant dense<0.000000e+00> : vector<8x128xf32>
    %621 = tpu.matmul %620, %252, %cst_130 {dimension_numbers = #tpu.dot_dimension_numbers<[1], [0], [0], [1], [0, 0, 1, 1], [], []>} : vector<8x32xbf16>, vector<32x128xbf16>, vector<8x128xf32> -> vector<8x128xf32>
    %622 = arith.addf %619, %621 : vector<8x128xf32>
    %623 = vector.broadcast %253 : vector<1x128xf32> to vector<8x128xf32>
    %624 = arith.addf %622, %623 : vector<8x128xf32>
    %625 = vector.extract_strided_slice %624 {offsets = [0, 0], sizes = [8, 32], strides = [1, 1]} : vector<8x128xf32> to vector<8x32xf32>
    %626 = arith.negf %625 : vector<8x32xf32>
    %627 = math.exp %626 : vector<8x32xf32>
    %cst_131 = arith.constant 1.000000e+00 : f32
    %628 = vector.broadcast %cst_131 : f32 to vector<8x32xf32>
    %629 = arith.addf %628, %627 : vector<8x32xf32>
    %630 = arith.divf %628, %629 : vector<8x32xf32>
    %631 = vector.extract_strided_slice %624 {offsets = [0, 32], sizes = [8, 32], strides = [1, 1]} : vector<8x128xf32> to vector<8x32xf32>
    %632 = arith.negf %631 : vector<8x32xf32>
    %633 = math.exp %632 : vector<8x32xf32>
    %cst_132 = arith.constant 1.000000e+00 : f32
    %634 = vector.broadcast %cst_132 : f32 to vector<8x32xf32>
    %635 = arith.addf %634, %633 : vector<8x32xf32>
    %636 = arith.divf %634, %635 : vector<8x32xf32>
    %637 = vector.extract_strided_slice %624 {offsets = [0, 64], sizes = [8, 32], strides = [1, 1]} : vector<8x128xf32> to vector<8x32xf32>
    %638 = math.tanh %637 : vector<8x32xf32>
    %639 = vector.extract_strided_slice %624 {offsets = [0, 96], sizes = [8, 32], strides = [1, 1]} : vector<8x128xf32> to vector<8x32xf32>
    %640 = arith.negf %639 : vector<8x32xf32>
    %641 = math.exp %640 : vector<8x32xf32>
    %cst_133 = arith.constant 1.000000e+00 : f32
    %642 = vector.broadcast %cst_133 : f32 to vector<8x32xf32>
    %643 = arith.addf %642, %641 : vector<8x32xf32>
    %644 = arith.divf %642, %643 : vector<8x32xf32>
    %645 = arith.mulf %636, %596 : vector<8x32xf32>
    %646 = arith.mulf %630, %638 : vector<8x32xf32>
    %647 = arith.addf %645, %646 : vector<8x32xf32>
    %648 = math.tanh %647 : vector<8x32xf32>
    %649 = arith.mulf %644, %648 : vector<8x32xf32>
    %650 = arith.truncf %649 : vector<8x32xf32> to vector<8x32xbf16>
    %cst_134 = arith.constant dense<0.000000e+00> : vector<8x256xf32>
    %651 = tpu.matmul %650, %254, %cst_134 {dimension_numbers = #tpu.dot_dimension_numbers<[1], [0], [0], [1], [0, 0, 1, 1], [], []>} : vector<8x32xbf16>, vector<32x256xbf16>, vector<8x256xf32> -> vector<8x256xf32>
    %652 = vector.broadcast %255 : vector<1x256xf32> to vector<8x256xf32>
    %653 = arith.addf %651, %652 : vector<8x256xf32>
    %c0_135 = arith.constant 0 : index
    %c7 = arith.constant 7 : index
    %c0_136 = arith.constant 0 : index
    %654 = vector.load %arg9[%c0_135, %c7, %c0_136] : memref<8x8x256xf32, #tpu.memory_space<vmem>>, vector<8x1x256xf32>
    %655 = vector.shape_cast %654 : vector<8x1x256xf32> to vector<8x256xf32>
    %656 = vector.shape_cast %653 : vector<8x256xf32> to vector<8x1x256xf32>
    tpu.vector_store %arg9[%c0_135, %c7, %c0_136], %656 {strides = array<i32>} : memref<8x8x256xf32, #tpu.memory_space<vmem>>, vector<8x1x256xf32>,
    return
  }
}

</mosaic_0001>

<bundles_post_ra>
// kernel: seq2seq_forward.1
= control target key start
LH: loop header
LB: loop body
LE: loop exit
PB: predicated region body
PF: predicated region fallthrough
CT: control target
= control target key end

     0   :  { %vm84_vm0 = vcmask 261120   ;;  %v3827_v7 = vmov 0.0   ;;  %vm3828_vm1 = vmmov 0   ;;  %v3829_v9 = vmov 0   ;;  %s3831_s24 = smov 32   ;;  %s5006_s1 = inlined_call_operand.vmem [shape: bf16[32,128], index: 1, kind: input, shape index: {}]   ;;  %s5007_s0 = inlined_call_operand.vmem [shape: bf16[8,8,32], index: 0, kind: input, shape index: {}]   ;;  %s5008_s2 = inlined_call_operand.vmem [shape: bf16[32,128], index: 2, kind: input, shape index: {}]   ;;  %s5009_s3 = inlined_call_operand.vmem [shape: f32[1,128], index: 3, kind: input, shape index: {}]   ;;  %s5010_s4 = inlined_call_operand.vmem [shape: bf16[256,128], index: 4, kind: input, shape index: {}]   ;;  %s5011_s5 = inlined_call_operand.vmem [shape: bf16[32,128], index: 5, kind: input, shape index: {}]   ;;  %s5012_s6 = inlined_call_operand.vmem [shape: f32[1,128], index: 6, kind: input, shape index: {}]   ;;  %s5013_s7 = inlined_call_operand.vmem [shape: bf16[32,256], index: 7, kind: input, shape index: {}]   ;;  %s5014_s8 = inlined_call_operand.vmem [shape: f32[1,256], index: 8, kind: input, shape index: {}]   ;;  %s5015_s9 = inlined_call_operand.vmem [shape: f32[8,8,256], index: 9, kind: output, shape index: {}]  }
   0x1   :  { %v3644_v0 = vld [vmem:[%s5006_s1] sm:$0xff]   ;;  %v3645_v1 = vld [vmem:[%s5006_s1 + $0x8] sm:$0xff]   ;;  %v3646_v2 = vld [vmem:[%s5007_s0 + $0x10] sm:$0xff]  }
   0x2   :  { %3632 = vmatprep.subr.bf16.mxu1 %v3644_v0  ;;  %3492 = vmatprep.subr.bf16.mxu0 %v3644_v0  ;;  %v3647_v3 = vld [vmem:[%s5007_s0 + $0x18] sm:$0xff]   ;;  %v3649_v4 = vld [vmem:[%s5007_s0] sm:$0xff]   ;;  %v3650_v5 = vld [vmem:[%s5007_s0 + $0x8] sm:$0xff]  }
   0x3   :  { %3634 = vmatpush3.bf16.msra.mxu1 %v3644_v0  ;;  %3493 = vmatpush3.bf16.msra.mxu0 %v3644_v0  ;;  %v3907_v6 = vld [vmem:[%s5008_s2] sm:$0xff]   ;;  %v3918_v8 = vld [vmem:[%s5008_s2 + $0x8] sm:$0xff]  }
   0x4   :  { %3633 = vmatprep.subr.bf16.mxu1 %v3645_v1  ;;  %3494 = vmatprep.subr.bf16.mxu0 %v3645_v1  ;;  %v3079_v10 = vld [vmem:[%s5009_s3] ss:$0 sm:$0xff]  ;;  %s3830_s3 = smov 64  }
   0x5   :  { %3500 = vmatprep.mubr.msk.bf16.mxu1 %vm84_vm0, %v3646_v2  ;;  %3496 = vmatprep.mubr.msk.bf16.mxu0 %vm84_vm0, %v3649_v4 }
   0x7   :  { %3635 = vmatpush3.bf16.msra.mxu1 %v3645_v1  ;;  %3495 = vmatpush3.bf16.msra.mxu0 %v3645_v1 }
   0x8   :  { %3504 = vmatprep.subr.bf16.mxu1 %v3827_v7  ;;  %3520 = vmatprep.subr.bf16.mxu0 %v3827_v7 }
   0xa   :  { %3501 = vmatmul.mubr.msk.bf16.vlgmr.msra.gmra.mrb[0].mxu1 %vm84_vm0, %v3647_v3  ;;  %3497 = vmatmul.mubr.msk.bf16.vlgmr.msra.gmra.mrb[0].mxu0 %vm84_vm0, %v3650_v5 }
   0xb   :  { %3505 = vmatpush3.bf16.msra.mxu1 %v3907_v6  ;;  %3508 = vmatprep.mubr.msk.bf16.mxu1 %vm3828_vm1, %v3827_v7 }
   0xc   :  { %3506 = vmatprep.subr.bf16.mxu1 %v3827_v7  ;;  %3521 = vmatpush3.bf16.msra.mxu0 %v3907_v6 }
   0xd   :  { %3522 = vmatprep.subr.bf16.mxu0 %v3827_v7  ;;  %3524 = vmatprep.mubr.msk.bf16.mxu0 %vm3828_vm1, %v3827_v7 }
   0xf   :  { %3507 = vmatpush3.bf16.msra.mxu1 %v3918_v8 }
  0x10   :  { %3512 = vmatprep.subr.bf16.mxu1 %v3827_v7  ;;  %3523 = vmatpush3.bf16.msra.mxu0 %v3918_v8 }
  0x11   :  { %3536 = vmatprep.subr.bf16.mxu0 %v3827_v7 }
  0x12   :  { %3509 = vmatmul.mubr.bf16.vlgmr.msra.gmra.mrb[4].mxu1 %v3829_v9 }
  0x13   :  { %3513 = vmatpush3.bf16.msra.mxu1 %v3907_v6  ;;  %3516 = vmatprep.mubr.msk.bf16.mxu1 %vm3828_vm1, %v3827_v7 }
  0x14   :  { %3514 = vmatprep.subr.bf16.mxu1 %v3827_v7 }
  0x17   :  { %3515 = vmatpush3.bf16.msra.mxu1 %v3918_v8 }
  0x18   :  { %3528 = vmatprep.subr.bf16.mxu1 %v3827_v7 }
  0xdd   :  { %v3502_v11 = vpop.f32.mrb[0].mxu1  ;;  %v3498_v12 = vpop.f32.mrb[0].mxu0 }
  0xde   :  { %v3941_v13 = vadd.f32 %v3502_v11, %v3079_v10  ;;  %v147_v14 = vpop.f32.mrb[1].mxu1  ;;  %v3943_v15 = vadd.f32 %v3498_v12, %v3079_v10  ;;  %v131_v16 = vpop.f32.mrb[1].mxu0 }
  0xdf   :  { %v3945_v17 = vadd.f32 %v3079_v10, %v147_v14  ;;  %v3503_v18 = vpop.f32.mrb[2].mxu1  ;;  %v3499_v19 = vpop.f32.mrb[2].mxu0  ;;  %v132_v26 = vadd.f32 %v3079_v10, %v131_v16 }
  0xe0   :  { %v3947_v20 = vadd.f32 %v3503_v18, %v3079_v10  ;;  %v150_v21 = vpop.f32.mrb[3].mxu1  ;;  %v3949_v22 = vadd.f32 %v3499_v19, %v3079_v10  ;;  %v134_v23 = vpop.f32.mrb[3].mxu0 }
  0xe1   :  { %v3951_v24 = vadd.f32 %v3079_v10, %v150_v21  ;;  %v135_v25 = vadd.f32 %v3079_v10, %v134_v23 }
  0xe5   :  { %v215_v27 = vpop.f32.mrb[4].mxu1 }
  0xe6   :  { %v221_v28 = vadd.f32 %v215_v27, %v132_v26  ;;  %v3510_v29 = vpop.f32.mrb[5].mxu1 }
  0xe7   :  { %v218_v30 = vpop.f32.mrb[6].mxu1 }
  0xe8   :  { %3676 = vtanh.f32 %v221_v28  ;;  %v3511_v31 = vpop.f32.mrb[7].mxu1  ;;  %v3092_v33 = vmul.f32 -1.442695, %v221_v28 }
  0xea   :  { %3678 = vpow2.f32 %v3092_v33 }
  0xf2   :  { %v3677_v32 = vpop.eup %3676 }
  0xf3   :  { %231 = vrot.lane.b32.xlu0 %v3677_v32, %s3830_s3 }
  0xf4   :  { %v3679_v34 = vpop.eup %3678 }
  0xf5   :  { %v225_v35 = vadd.f32 1.0, %v3679_v34 }
  0xf7   :  { %3680 = vrcp.f32 %v225_v35 }
 0x101   :  { %v3681_v36 = vpop.eup %3680 }
 0x102   :  { %v229_v39 = vmul.f32 0.0, %v3681_v36 }
 0x165   :  { %v232_v37 = vpop.permute.xlu0 %231 }
 0x166   :  { %v234_v38 = vmul.f32 %v3681_v36, %v232_v37 }
 0x168   :  { %236 = vrot.lane.b32.xlu0 %v234_v38, %s3831_s24 }
 0x1da   :  { %v237_v40 = vpop.permute.xlu0 %236 }
 0x1db   :  { %v239_v41 = vadd.f32 %v237_v40, %v229_v39 }
 0x1dd   :  { %3682 = vtanh.f32 %v239_v41 }
 0x1e7   :  { %v3683_v42 = vpop.eup %3682 }
 0x1e8   :  { %242 = vrot.lane.b32.xlu1 %v3683_v42, %s3830_s3 }
 0x25a   :  { %v243_v43 = vpop.permute.xlu1 %242 }
 0x25b   :  { %v245_v44 = vmul.f32 %v3681_v36, %v243_v43 }
 0x25d   :  { %v246_v45 = vpack.c.bf16 %v245_v44, %v245_v44 }
 0x25f   :  { %248 = vrot.lane.b32.xlu1 %v246_v45, %s3831_s24 }
 0x2d1   :  { %v249_v46 = vpop.permute.xlu1 %248 }
 0x2d2   :  { %3517 = vmatmul.mubr.msk.bf16.vlgmr.msra.gmra.mrb[8].mxu1 %vm84_vm0, %v249_v46 }
 0x2d3   :  { %3529 = vmatpush3.bf16.msra.mxu1 %v3907_v6  ;;  %3532 = vmatprep.mubr.msk.bf16.mxu1 %vm3828_vm1, %v3827_v7 }
 0x2d4   :  { %3530 = vmatprep.subr.bf16.mxu1 %v3827_v7 }
 0x2d7   :  { %3531 = vmatpush3.bf16.msra.mxu1 %v3918_v8 }
 0x2d8   :  { %3544 = vmatprep.subr.bf16.mxu1 %v3827_v7 }
 0x3a5   :  { %v287_v47 = vpop.f32.mrb[8].mxu1 }
 0x3a6   :  { %v293_v48 = vadd.f32 %v287_v47, %v135_v25  ;;  %v3518_v49 = vpop.f32.mrb[9].mxu1 }
 0x3a7   :  { %v290_v50 = vpop.f32.mrb[10].mxu1 }
 0x3a8   :  { %3684 = vtanh.f32 %v293_v48  ;;  %v3519_v51 = vpop.f32.mrb[11].mxu1  ;;  %v3094_v53 = vmul.f32 -1.442695, %v293_v48 }
 0x3aa   :  { %3686 = vpow2.f32 %v3094_v53 }
 0x3b2   :  { %v3685_v52 = vpop.eup %3684 }
 0x3b3   :  { %303 = vrot.lane.b32.xlu0 %v3685_v52, %s3830_s3 }
 0x3b4   :  { %v3687_v54 = vpop.eup %3686 }
 0x3b5   :  { %v297_v55 = vadd.f32 1.0, %v3687_v54 }
 0x3b7   :  { %3688 = vrcp.f32 %v297_v55 }
 0x3c1   :  { %v3689_v56 = vpop.eup %3688 }
 0x3c2   :  { %v301_v59 = vmul.f32 %v3689_v56, %v239_v41 }
 0x425   :  { %v304_v57 = vpop.permute.xlu0 %303 }
 0x426   :  { %v306_v58 = vmul.f32 %v3689_v56, %v304_v57 }
 0x428   :  { %308 = vrot.lane.b32.xlu1 %v306_v58, %s3831_s24 }
 0x49a   :  { %v309_v60 = vpop.permute.xlu1 %308 }
 0x49b   :  { %v311_v61 = vadd.f32 %v309_v60, %v301_v59 }
 0x49d   :  { %3690 = vtanh.f32 %v311_v61 }
 0x4a7   :  { %v3691_v62 = vpop.eup %3690 }
 0x4a8   :  { %314 = vrot.lane.b32.xlu0 %v3691_v62, %s3830_s3 }
 0x51a   :  { %v315_v63 = vpop.permute.xlu0 %314 }
 0x51b   :  { %v317_v0 = vmul.f32 %v3689_v56, %v315_v63 }
 0x51d   :  { %v318_v1 = vpack.c.bf16 %v317_v0, %v317_v0 }
 0x51f   :  { %320 = vrot.lane.b32.xlu1 %v318_v1, %s3831_s24 }
 0x591   :  { %v321_v2 = vpop.permute.xlu1 %320 }
 0x592   :  { %3525 = vmatmul.mubr.msk.bf16.vlgmr.msra.gmra.mrb[4].mxu0 %vm84_vm0, %v321_v2 }
 0x593   :  { %3537 = vmatpush3.bf16.msra.mxu0 %v3907_v6  ;;  %3540 = vmatprep.mubr.msk.bf16.mxu0 %vm3828_vm1, %v3827_v7 }
 0x594   :  { %3538 = vmatprep.subr.bf16.mxu0 %v3827_v7 }
 0x597   :  { %3539 = vmatpush3.bf16.msra.mxu0 %v3918_v8 }
 0x598   :  { %3552 = vmatprep.subr.bf16.mxu0 %v3827_v7 }
 0x665   :  { %v359_v3 = vpop.f32.mrb[4].mxu0 }
 0x666   :  { %v365_v4 = vadd.f32 %v359_v3, %v3943_v15  ;;  %v3526_v5 = vpop.f32.mrb[5].mxu0 }
 0x667   :  { %v362_v10 = vpop.f32.mrb[6].mxu0 }
 0x668   :  { %3692 = vtanh.f32 %v365_v4  ;;  %v3527_v11 = vpop.f32.mrb[7].mxu0  ;;  %v3096_v14 = vmul.f32 -1.442695, %v365_v4 }
 0x66a   :  { %3694 = vpow2.f32 %v3096_v14 }
 0x672   :  { %v3693_v12 = vpop.eup %3692 }
 0x673   :  { %375 = vrot.lane.b32.xlu0 %v3693_v12, %s3830_s3 }
 0x674   :  { %v3695_v16 = vpop.eup %3694 }
 0x675   :  { %v369_v18 = vadd.f32 1.0, %v3695_v16 }
 0x677   :  { %3696 = vrcp.f32 %v369_v18 }
 0x681   :  { %v3697_v19 = vpop.eup %3696 }
 0x682   :  { %v373_v25 = vmul.f32 %v3697_v19, %v311_v61 }
 0x6e5   :  { %v376_v21 = vpop.permute.xlu0 %375 }
 0x6e6   :  { %v378_v23 = vmul.f32 %v3697_v19, %v376_v21 }
 0x6e8   :  { %380 = vrot.lane.b32.xlu1 %v378_v23, %s3831_s24 }
 0x75a   :  { %v381_v26 = vpop.permute.xlu1 %380 }
 0x75b   :  { %v383_v15 = vadd.f32 %v381_v26, %v373_v25 }
 0x75d   :  { %3698 = vtanh.f32 %v383_v15 }
 0x767   :  { %v3699_v27 = vpop.eup %3698 }
 0x768   :  { %386 = vrot.lane.b32.xlu0 %v3699_v27, %s3830_s3 }
 0x7da   :  { %v387_v28 = vpop.permute.xlu0 %386 }
 0x7db   :  { %v389_v29 = vmul.f32 %v3697_v19, %v387_v28 }
 0x7dd   :  { %v390_v30 = vpack.c.bf16 %v389_v29, %v389_v29 }
 0x7df   :  { %392 = vrot.lane.b32.xlu1 %v390_v30, %s3831_s24 }
 0x851   :  { %v393_v31 = vpop.permute.xlu1 %392 }
 0x852   :  { %3533 = vmatmul.mubr.msk.bf16.vlgmr.msra.gmra.mrb[12].mxu1 %vm84_vm0, %v393_v31 }
 0x853   :  { %3545 = vmatpush3.bf16.msra.mxu1 %v3907_v6  ;;  %3548 = vmatprep.mubr.msk.bf16.mxu1 %vm3828_vm1, %v3827_v7 }
 0x854   :  { %3546 = vmatprep.subr.bf16.mxu1 %v3827_v7 }
 0x857   :  { %3547 = vmatpush3.bf16.msra.mxu1 %v3918_v8 }
 0x858   :  { %3560 = vmatprep.subr.bf16.mxu1 %v3827_v7 }
 0x925   :  { %v431_v32 = vpop.f32.mrb[12].mxu1 }
 0x926   :  { %v437_v33 = vadd.f32 %v431_v32, %v3949_v22  ;;  %v3534_v34 = vpop.f32.mrb[13].mxu1 }
 0x927   :  { %v434_v35 = vpop.f32.mrb[14].mxu1 }
 0x928   :  { %3700 = vtanh.f32 %v437_v33  ;;  %v3535_v36 = vpop.f32.mrb[15].mxu1  ;;  %v3098_v38 = vmul.f32 -1.442695, %v437_v33 }
 0x92a   :  { %3702 = vpow2.f32 %v3098_v38 }
 0x932   :  { %v3701_v37 = vpop.eup %3700 }
 0x933   :  { %447 = vrot.lane.b32.xlu0 %v3701_v37, %s3830_s3 }
 0x934   :  { %v3703_v39 = vpop.eup %3702 }
 0x935   :  { %v441_v40 = vadd.f32 1.0, %v3703_v39 }
 0x937   :  { %3704 = vrcp.f32 %v441_v40 }
 0x941   :  { %v3705_v41 = vpop.eup %3704 }
 0x942   :  { %v445_v44 = vmul.f32 %v3705_v41, %v383_v15 }
 0x9a5   :  { %v448_v42 = vpop.permute.xlu0 %447 }
 0x9a6   :  { %v450_v43 = vmul.f32 %v3705_v41, %v448_v42 }
 0x9a8   :  { %452 = vrot.lane.b32.xlu1 %v450_v43, %s3831_s24 }
 0xa1a   :  { %v453_v45 = vpop.permute.xlu1 %452 }
 0xa1b   :  { %v455_v22 = vadd.f32 %v453_v45, %v445_v44 }
 0xa1d   :  { %3706 = vtanh.f32 %v455_v22 }
 0xa27   :  { %v3707_v46 = vpop.eup %3706 }
 0xa28   :  { %458 = vrot.lane.b32.xlu0 %v3707_v46, %s3830_s3 }
 0xa9a   :  { %v459_v47 = vpop.permute.xlu0 %458 }
 0xa9b   :  { %v461_v48 = vmul.f32 %v3705_v41, %v459_v47 }
 0xa9d   :  { %v462_v49 = vpack.c.bf16 %v461_v48, %v461_v48 }
 0xa9f   :  { %464 = vrot.lane.b32.xlu1 %v462_v49, %s3831_s24 }
 0xb11   :  { %v465_v50 = vpop.permute.xlu1 %464 }
 0xb12   :  { %3541 = vmatmul.mubr.msk.bf16.vlgmr.msra.gmra.mrb[8].mxu0 %vm84_vm0, %v465_v50 }
 0xb13   :  { %3553 = vmatpush3.bf16.msra.mxu0 %v3907_v6  ;;  %3556 = vmatprep.mubr.msk.bf16.mxu0 %vm3828_vm1, %v3827_v7 }
 0xb14   :  { %3554 = vmatprep.subr.bf16.mxu0 %v3827_v7 }
 0xb17   :  { %3555 = vmatpush3.bf16.msra.mxu0 %v3918_v8 }
 0xb18   :  { %3568 = vmatprep.subr.bf16.mxu0 %v3827_v7 }
 0xbe5   :  { %v503_v51 = vpop.f32.mrb[8].mxu0 }
 0xbe6   :  { %v509_v52 = vadd.f32 %v503_v51, %v3945_v17  ;;  %v3542_v53 = vpop.f32.mrb[9].mxu0 }
 0xbe7   :  { %v506_v54 = vpop.f32.mrb[10].mxu0 }
 0xbe8   :  { %3708 = vtanh.f32 %v509_v52  ;;  %v3543_v55 = vpop.f32.mrb[11].mxu0  ;;  %v3100_v57 = vmul.f32 -1.442695, %v509_v52 }
 0xbea   :  { %3710 = vpow2.f32 %v3100_v57 }
 0xbf2   :  { %v3709_v56 = vpop.eup %3708 }
 0xbf3   :  { %519 = vrot.lane.b32.xlu0 %v3709_v56, %s3830_s3 }
 0xbf4   :  { %v3711_v58 = vpop.eup %3710 }
 0xbf5   :  { %v513_v59 = vadd.f32 1.0, %v3711_v58 }
 0xbf7   :  { %3712 = vrcp.f32 %v513_v59 }
 0xc01   :  { %v3713_v60 = vpop.eup %3712 }
 0xc02   :  { %v517_v63 = vmul.f32 %v3713_v60, %v455_v22 }
 0xc65   :  { %v520_v61 = vpop.permute.xlu0 %519 }
 0xc66   :  { %v522_v62 = vmul.f32 %v3713_v60, %v520_v61 }
 0xc68   :  { %524 = vrot.lane.b32.xlu1 %v522_v62, %s3831_s24 }
 0xcda   :  { %v525_v0 = vpop.permute.xlu1 %524 }
 0xcdb   :  { %v527_v17 = vadd.f32 %v525_v0, %v517_v63  ;;  %v4030_v0 = vld [vmem:[%s5010_s4 + $0x40] sm:$0xff]  }
 0xcdd   :  { %3714 = vtanh.f32 %v527_v17 }
 0xce7   :  { %v3715_v1 = vpop.eup %3714 }
 0xce8   :  { %530 = vrot.lane.b32.xlu0 %v3715_v1, %s3830_s3  ;;  %v4041_v1 = vld [vmem:[%s5010_s4 + $0x48] sm:$0xff]  }
 0xd5a   :  { %v531_v2 = vpop.permute.xlu0 %530 }
 0xd5b   :  { %v533_v3 = vmul.f32 %v3713_v60, %v531_v2  ;;  %v792_v2 = vlaneseq }
 0xd5d   :  { %v534_v4 = vpack.c.bf16 %v533_v3, %v533_v3  ;;  %vm4232_vm4 = vcmp.lt.s32.totalorder %v792_v2, 256 }
 0xd5f   :  { %536 = vrot.lane.b32.xlu1 %v534_v4, %s3831_s24  ;;  %v4047_v4 = vld [vmem:[%s5010_s4 + $0x8] sm:$0xff]  }
 0xdd1   :  { %v537_v5 = vpop.permute.xlu1 %536 }
 0xdd2   :  { %3549 = vmatmul.mubr.msk.bf16.vlgmr.msra.gmra.mrb[16].mxu1 %vm84_vm0, %v537_v5  ;;  %v4054_v5 = vld [vmem:[%s5010_s4 + $0x50] sm:$0xff]  }
 0xdd3   :  { %3561 = vmatpush3.bf16.msra.mxu1 %v3907_v6  ;;  %3564 = vmatprep.mubr.msk.bf16.mxu1 %vm3828_vm1, %v3827_v7 }
 0xdd4   :  { %3562 = vmatprep.subr.bf16.mxu1 %v3827_v7 }
 0xdd7   :  { %3563 = vmatpush3.bf16.msra.mxu1 %v3918_v8 }
 0xdd8   :  { %3295 = vmatprep.subr.bf16.mxu1 %v4030_v0 }
 0xea5   :  { %v575_v10 = vpop.f32.mrb[16].mxu1 }
 0xea6   :  { %v581_v11 = vadd.f32 %v575_v10, %v3951_v24  ;;  %v3550_v12 = vpop.f32.mrb[17].mxu1  ;;  %v4057_v10 = vand.u32 127, %v792_v2 }
 0xea7   :  { %v578_v14 = vpop.f32.mrb[18].mxu1  ;;  %v4069_v12 = vld [vmem:[%s5010_s4 + $0x58] sm:$0xff]  }
 0xea8   :  { %3716 = vtanh.f32 %v581_v11  ;;  %v3551_v16 = vpop.f32.mrb[19].mxu1  ;;  %v3102_v19 = vmul.f32 -1.442695, %v581_v11  ;;  %v4063_v11 = vld [vmem:[%s5010_s4 + $0x10] sm:$0xff]   ;;  %v4072_v14 = vadd.s32 128, %v4057_v10 }
 0xea9   :  { %v4078_v16 = vld [vmem:[%s5010_s4 + $0x18] sm:$0xff]  }
 0xeaa   :  { %3718 = vpow2.f32 %v3102_v19  ;;  %v4089_v19 = vld [vmem:[%s5010_s4 + $0x20] sm:$0xff]   ;;  %vm796_vm2 = vcmp.eq.s32.totalorder %v4072_v14, 128 }
 0xeab   :  { %vm3127_vm3 = vmpackc.low %vm796_vm2, %vm796_vm2 }
 0xeb2   :  { %v3717_v18 = vpop.eup %3716 }
 0xeb3   :  { %591 = vrot.lane.b32.xlu0 %v3717_v18, %s3830_s3  ;;  %v4084_v18 = vld [vmem:[%s5010_s4 + $0x60] sm:$0xff]  }
 0xeb4   :  { %v3719_v6 = vpop.eup %3718 }
 0xeb5   :  { %v585_v21 = vadd.f32 1.0, %v3719_v6  ;;  %v4096_v6 = vld [vmem:[%s5010_s4 + $0x68] sm:$0xff]  }
 0xeb7   :  { %3720 = vrcp.f32 %v585_v21  ;;  %v4102_v21 = vld [vmem:[%s5011_s5] sm:$0xff]  }
 0xec1   :  { %v3721_v23 = vpop.eup %3720 }
 0xec2   :  { %v589_v8 = vmul.f32 %v3721_v23, %v527_v17  ;;  %v4035_v17 = vld [vmem:[%s5010_s4] sm:$0xff]  }
 0xf25   :  { %v592_v25 = vpop.permute.xlu0 %591 }
 0xf26   :  { %v594_v26 = vmul.f32 %v3721_v23, %v592_v25  ;;  %v4109_v25 = vld [vmem:[%s5011_s5 + $0x8] sm:$0xff]  }
 0xf28   :  { %596 = vrot.lane.b32.xlu1 %v594_v26, %s3831_s24  ;;  %v4115_v26 = vld [vmem:[%s5010_s4 + $0x28] sm:$0xff]  }
 0xf9a   :  { %v597_v15 = vpop.permute.xlu1 %596 }
 0xf9b   :  { %v599_v24 = vadd.f32 %v597_v15, %v589_v8  ;;  %v4122_v8 = vld [vmem:[%s5010_s4 + $0x70] sm:$0xff]  }
 0xf9c   :  { %v4129_v15 = vld [vmem:[%s5010_s4 + $0x30] sm:$0xff]  }
 0xf9d   :  { %3722 = vtanh.f32 %v599_v24 }
 0xfa7   :  { %v3723_v27 = vpop.eup %3722 }
 0xfa8   :  { %602 = vrot.lane.b32.xlu0 %v3723_v27, %s3830_s3  ;;  %v4141_v27 = vld [vmem:[%s5010_s4 + $0x38] sm:$0xff]  }
0x101a   :  { %v603_v28 = vpop.permute.xlu0 %602 }
0x101b   :  { %v605_v29 = vmul.f32 %v3721_v23, %v603_v28  ;;  %v3832_v23 = vmov 1.0|1.0   ;;  %v3833_v28 = vmov 0.0|0.0  }
0x101d   :  { %v606_v30 = vpack.c.bf16 %v605_v29, %v605_v29 }
0x101f   :  { %608 = vrot.lane.b32.xlu1 %v606_v30, %s3831_s24 }
0x1091   :  { %v609_v31 = vpop.permute.xlu1 %608 }
0x1092   :  { %3557 = vmatmul.mubr.msk.bf16.vlgmr.msra.gmra.mrb[12].mxu0 %vm84_vm0, %v609_v31 }
0x1093   :  { %3572 = vmatprep.mubr.msk.bf16.mxu0 %vm3828_vm1, %v3827_v7  ;;  %3569 = vmatpush3.bf16.msra.mxu0 %v4102_v21 }
0x1094   :  { %3570 = vmatprep.subr.bf16.mxu0 %v3827_v7 }
0x1097   :  { %3571 = vmatpush3.bf16.msra.mxu0 %v4109_v25 }
0x1165   :  { %v647_v32 = vpop.f32.mrb[12].mxu0 }
0x1166   :  { %v653_v33 = vadd.f32 %v647_v32, %v3941_v13  ;;  %v3558_v34 = vpop.f32.mrb[13].mxu0 }
0x1167   :  { %v650_v35 = vpop.f32.mrb[14].mxu0 }
0x1168   :  { %3724 = vtanh.f32 %v653_v33  ;;  %v3559_v36 = vpop.f32.mrb[15].mxu0  ;;  %v3104_v38 = vmul.f32 -1.442695, %v653_v33 }
0x116a   :  { %3726 = vpow2.f32 %v3104_v38  ;;  %v4153_v38 = vld [vmem:[%s5012_s6] ss:$0 sm:$0xff] }
0x1172   :  { %v3725_v37 = vpop.eup %3724 }
0x1173   :  { %663 = vrot.lane.b32.xlu0 %v3725_v37, %s3830_s3 }
0x1174   :  { %v3727_v39 = vpop.eup %3726 }
0x1175   :  { %v657_v40 = vadd.f32 1.0, %v3727_v39 }
0x1177   :  { %3728 = vrcp.f32 %v657_v40 }
0x1181   :  { %v3729_v41 = vpop.eup %3728 }
0x1182   :  { %v661_v44 = vmul.f32 %v3729_v41, %v599_v24  ;;  %v4135_v24 = vld [vmem:[%s5010_s4 + $0x78] sm:$0xff]  }
0x11e5   :  { %v664_v42 = vpop.permute.xlu0 %663 }
0x11e6   :  { %v666_v43 = vmul.f32 %v3729_v41, %v664_v42 }
0x11e8   :  { %668 = vrot.lane.b32.xlu1 %v666_v43, %s3831_s24 }
0x125a   :  { %v669_v45 = vpop.permute.xlu1 %668 }
0x125b   :  { %v671_v13 = vadd.f32 %v669_v45, %v661_v44 }
0x125d   :  { %3730 = vtanh.f32 %v671_v13 }
0x1267   :  { %v3731_v22 = vpop.eup %3730 }
0x1268   :  { %674 = vrot.lane.b32.xlu0 %v3731_v22, %s3830_s3 }
0x12da   :  { %v675_v46 = vpop.permute.xlu0 %674 }
0x12db   :  { %v677_v47 = vmul.f32 %v3729_v41, %v675_v46 }
0x12dd   :  { %v678_v48 = vpack.c.bf16 %v677_v47, %v677_v47 }
0x12df   :  { %680 = vrot.lane.b32.xlu1 %v678_v48, %s3831_s24 }
0x1351   :  { %v681_v49 = vpop.permute.xlu1 %680 }
0x1352   :  { %3565 = vmatmul.mubr.msk.bf16.vlgmr.msra.gmra.mrb[20].mxu1 %vm84_vm0, %v681_v49 }
0x1353   :  { %3296 = vmatpush3.bf16.msra.mxu1 %v4035_v17  ;;  %3128 = vmatprep.mubr.msk.bf16.mxu1 %vm3127_vm3, %v3832_v23 }
0x1354   :  { %3297 = vmatprep.subr.bf16.mxu1 %v4041_v1 }
0x1357   :  { %3298 = vmatpush3.bf16.msra.mxu1 %v4047_v4 }
0x1358   :  { %3299 = vmatprep.subr.bf16.mxu1 %v4054_v5 }
0x135b   :  { %3300 = vmatpush3.bf16.msra.mxu1 %v4063_v11 }
0x135c   :  { %3301 = vmatprep.subr.bf16.mxu1 %v4069_v12 }
0x135f   :  { %3302 = vmatpush3.bf16.msra.mxu1 %v4078_v16 }
0x1360   :  { %3303 = vmatprep.subr.bf16.mxu1 %v4084_v18 }
0x1363   :  { %3304 = vmatpush3.bf16.msra.mxu1 %v4089_v19 }
0x1364   :  { %3305 = vmatprep.subr.bf16.mxu1 %v4096_v6 }
0x1367   :  { %3306 = vmatpush3.bf16.msra.mxu1 %v4115_v26 }
0x1368   :  { %3307 = vmatprep.subr.bf16.mxu1 %v4122_v8 }
0x136b   :  { %3308 = vmatpush3.bf16.msra.mxu1 %v4129_v15 }
0x136c   :  { %3309 = vmatprep.subr.bf16.mxu1 %v4135_v24 }
0x136f   :  { %3310 = vmatpush3.bf16.msra.mxu1 %v4141_v27 }
0x1372   :  { %991 = vmatmul.mubr.bf16.vlgmr.msra.gmra.mrb[24].mxu1 %v3833_v28  ;;  %v3834_v28 = vmov 1966171168  }
0x1373   :  { %1374 = vmatprep.mubr.bf16.mxu1 %v3829_v9 }
0x1425   :  { %v719_v50 = vpop.f32.mrb[20].mxu1 }
0x1426   :  { %v725_v51 = vadd.f32 %v719_v50, %v3947_v20  ;;  %v3566_v52 = vpop.f32.mrb[21].mxu1 }
0x1427   :  { %v722_v53 = vpop.f32.mrb[22].mxu1 }
0x1428   :  { %3732 = vtanh.f32 %v725_v51  ;;  %v3567_v54 = vpop.f32.mrb[23].mxu1  ;;  %v3106_v56 = vmul.f32 -1.442695, %v725_v51 }
0x1429   :  { %v4164_v54 = vld [vmem:[%s5013_s7 + $0x4] ss:$8 sps:$4 sm:$0xff]  }
0x142a   :  { %3734 = vpow2.f32 %v3106_v56  ;;  %1071 = vmatprep.subr.bf16.mxu0 %v4164_v54  ;;  %v4175_v56 = vld [vmem:[%s5013_s7 + $0x14] ss:$8 sps:$4 sm:$0xff]   ;;  %1342 = vmatprep.subr.bf16.mxu1 %v4164_v54 }
0x1432   :  { %v3733_v55 = vpop.eup %3732 }
0x1433   :  { %735 = vrot.lane.b32.xlu0 %v3733_v55, %s3830_s3  ;;  %v4169_v55 = vld [vmem:[%s5013_s7] ss:$8 sps:$4 sm:$0xff]  }
0x1434   :  { %v3735_v57 = vpop.eup %3734  ;;  %1343 = vmatpush1.bf16.msra.mxu1 %v4169_v55 }
0x1435   :  { %v729_v58 = vadd.f32 1.0, %v3735_v57  ;;  %v4182_v57 = vld [vmem:[%s5013_s7 + $0x10] ss:$8 sps:$4 sm:$0xff]   ;;  %1344 = vmatprep.subr.bf16.mxu1 %v4175_v56 }
0x1437   :  { %3736 = vrcp.f32 %v729_v58 }
0x1438   :  { %1345 = vmatpush1.bf16.msra.mxu1 %v4182_v57 }
0x1439   :  { %3584 = vmatprep.subr.bf16.mxu1 %v3827_v7 }
0x1441   :  { %v3737_v59 = vpop.eup %3736 }
0x1442   :  { %v733_v62 = vmul.f32 %v3737_v59, %v671_v13 }
0x1445   :  { %v3311_v33 = vpop.f32.mrb[24].mxu1 }
0x1446   :  { %v3312_v34 = vpop.f32.mrb[25].mxu1 }
0x1447   :  { %v3313_v35 = vadd.f32 %v3312_v34, %v3311_v33  ;;  %v3314_v36 = vpop.f32.mrb[26].mxu1 }
0x1448   :  { %v3315_v37 = vpop.f32.mrb[27].mxu1 }
0x14a5   :  { %v736_v60 = vpop.permute.xlu0 %735 }
0x14a6   :  { %v738_v61 = vmul.f32 %v3737_v59, %v736_v60 }
0x14a8   :  { %740 = vrot.lane.b32.xlu1 %v738_v61, %s3831_s24 }
0x151a   :  { %v741_v63 = vpop.permute.xlu1 %740 }
0x151b   :  { %v743_v20 = vadd.f32 %v741_v63, %v733_v62  ;;  %v1036_v63 = vshrl.u32 %v792_v2, 7 }
0x151d   :  { %3738 = vtanh.f32 %v743_v20  ;;  %v1037_v20 = vsub.s32 0, %v1036_v63 }
0x1527   :  { %v3739_v3 = vpop.eup %3738 }
0x1528   :  { %746 = vrot.lane.b32.xlu0 %v3739_v3, %s3830_s3  ;;  %v791_v3 = vld [vmem:[%s5014_s8] sm:$0x3] }
0x159a   :  { %v747_v29 = vpop.permute.xlu0 %746 }
0x159b   :  { %v749_v30 = vmul.f32 %v3737_v59, %v747_v29  ;;  %v1117_v29 = vunpack.c.l.s4 %v3834_v28 }
0x159d   :  { %v803_v31 = vpack.c.bf16 %v749_v30, %v749_v30 }
0x159f   :  { %805 = vrot.lane.b32.xlu1 %v803_v31, %s3831_s24  ;;  %v4221_v31 = vrot.slane %v791_v3, %v1037_v20 }
0x15a3   :  { %1013 = vrot.lane.b32.xlu1 %v749_v30, %s3830_s3  ;;  %v1041_v30 = vsub.s32 1, %v1036_v63 }
0x15a5   :  { %v4223_v33 = vrot.slane %v791_v3, %v1041_v30 }
0x1611   :  { %v806_v32 = vpop.permute.xlu1 %805 }
0x1612   :  { %3573 = vmatmul.mubr.msk.bf16.vlgmr.msra.gmra.mrb[16].mxu0 %vm84_vm0, %v806_v32  ;;  %v1118_v32 = vunpack.c.0.s8 %v1117_v29 }
0x1613   :  { %1103 = vmatprep.mubr.bf16.mxu0 %v3829_v9  ;;  %1072 = vmatpush1.bf16.msra.mxu0 %v4169_v55 }
0x1614   :  { %1073 = vmatprep.subr.bf16.mxu0 %v4175_v56  ;;  %v4226_v37 = vsub.s32 %v1118_v32, %v1036_v63 }
0x1615   :  { %v1014_v50 = vpop.permute.xlu1 %1013 }
0x1617   :  { %1074 = vmatpush1.bf16.msra.mxu0 %v4182_v57 }
0x1618   :  { %3576 = vmatprep.subr.bf16.mxu0 %v3827_v7 }
0x16e5   :  { %v856_v39 = vpop.f32.mrb[16].mxu0 }
0x16e6   :  { %v993_v40 = vadd.f32 %v3313_v35, %v856_v39  ;;  %v3574_v41 = vpop.f32.mrb[17].mxu0 }
0x16e7   :  { %v859_v42 = vpop.f32.mrb[18].mxu0 }
0x16e8   :  { %v1004_v43 = vadd.f32 %v4153_v38, %v993_v40  ;;  %v3575_v44 = vpop.f32.mrb[19].mxu0 }
0x16ea   :  { %3740 = vtanh.f32 %v1004_v43  ;;  %v3130_v13 = vmul.f32 -1.442695, %v1004_v43 }
0x16ec   :  { %3742 = vpow2.f32 %v3130_v13 }
0x16f4   :  { %v3741_v45 = vpop.eup %3740 }
0x16f5   :  { %1018 = vrot.lane.b32.xlu0 %v3741_v45, %s3830_s3 }
0x16f6   :  { %v3743_v22 = vpop.eup %3742 }
0x16f7   :  { %v1008_v46 = vadd.f32 1.0, %v3743_v22 }
0x16f9   :  { %3744 = vrcp.f32 %v1008_v46 }
0x1703   :  { %v3745_v47 = vpop.eup %3744 }
0x1704   :  { %v1016_v51 = vmul.f32 %v3745_v47, %v1014_v50 }
0x1767   :  { %v1019_v48 = vpop.permute.xlu0 %1018 }
0x1768   :  { %v1021_v49 = vmul.f32 %v3745_v47, %v1019_v48 }
0x176a   :  { %1023 = vrot.lane.b32.xlu0 %v1021_v49, %s3831_s24 }
0x17dc   :  { %v1024_v52 = vpop.permute.xlu0 %1023 }
0x17dd   :  { %v4158_v53 = vadd.f32 %v1024_v52, %v1016_v51 }
0x17df   :  { %3746 = vtanh.f32 %v4158_v53 }
0x17e9   :  { %v3747_v58 = vpop.eup %3746 }
0x17ea   :  { %1029 = vrot.lane.b32.xlu1 %v3747_v58, %s3830_s3 }
0x185c   :  { %v1030_v59 = vpop.permute.xlu1 %1029 }
0x185d   :  { %v1032_v60 = vmul.f32 %v3745_v47, %v1030_v59 }
0x185f   :  { %v1033_v61 = vpack.c.bf16 %v1032_v60, %v1032_v60 }
0x1861   :  { %1046 = vrot.lane.b32.xlu0 %v1033_v61, %s3831_s24 }
0x18d3   :  { %v1047_v62 = vpop.permute.xlu0 %1046 }
0x18d4   :  { %3135 = vmatmul.mubr.msk.bf16.vlgmr.msra.gmra.mrb[20].mxu0 %vm84_vm0, %v1047_v62 }
0x18d5   :  { %3577 = vmatpush3.bf16.msra.mxu0 %v4102_v21  ;;  %3580 = vmatprep.mubr.msk.bf16.mxu0 %vm3828_vm1, %v3827_v7 }
0x18d6   :  { %3578 = vmatprep.subr.bf16.mxu0 %v3827_v7 }
0x18d9   :  { %3579 = vmatpush3.bf16.msra.mxu0 %v4109_v25 }
0x18da   :  { %3320 = vmatprep.subr.bf16.mxu0 %v4030_v0 }
0x18dc   :  { %3581 = vmatmul.mubr.msk.bf16.vlgmr.msra.gmra.mrb[24].mxu0 %vm84_vm0, %v1047_v62 }
0x18dd   :  { %3321 = vmatpush3.bf16.msra.mxu0 %v4035_v17 }
0x18de   :  { %3322 = vmatprep.subr.bf16.mxu0 %v4041_v1 }
0x18e1   :  { %3323 = vmatpush3.bf16.msra.mxu0 %v4047_v4 }
0x18e2   :  { %3324 = vmatprep.subr.bf16.mxu0 %v4054_v5 }
0x18e5   :  { %3325 = vmatpush3.bf16.msra.mxu0 %v4063_v11 }
0x18e6   :  { %3326 = vmatprep.subr.bf16.mxu0 %v4069_v12 }
0x18e9   :  { %3327 = vmatpush3.bf16.msra.mxu0 %v4078_v16 }
0x18ea   :  { %3328 = vmatprep.subr.bf16.mxu0 %v4084_v18 }
0x18ed   :  { %3329 = vmatpush3.bf16.msra.mxu0 %v4089_v19 }
0x18ee   :  { %3330 = vmatprep.subr.bf16.mxu0 %v4096_v6 }
0x18f1   :  { %3331 = vmatpush3.bf16.msra.mxu0 %v4115_v26 }
0x18f2   :  { %3332 = vmatprep.subr.bf16.mxu0 %v4122_v8 }
0x18f5   :  { %3333 = vmatpush3.bf16.msra.mxu0 %v4129_v15 }
0x18f6   :  { %3334 = vmatprep.subr.bf16.mxu0 %v4135_v24 }
0x18f9   :  { %3335 = vmatpush3.bf16.msra.mxu0 %v4141_v27 }
0x18fa   :  { %1610 = vmatprep.subr.bf16.mxu0 %v4164_v54 }
0x19a7   :  { %v1105_v34 = vpop.f32.mrb[20].mxu0 }
0x19a8   :  { %v1106_v35 = vadd.f32 %v1105_v34, %v4221_v31  ;;  %v1107_v36 = vpop.f32.mrb[21].mxu0 }
0x19a9   :  { %v1108_v39 = vadd.f32 %v1107_v36, %v4223_v33  ;;  %v1109_v40 = vpop.f32.mrb[22].mxu0 }
0x19aa   :  { %v1110_v41 = vpop.f32.mrb[23].mxu0 }
0x19ab   :  { %v1114_v42 = vcombine.low %v1106_v35, %v1108_v39  ;;  %v1115_v43 = vcombine.high %v1106_v35, %v1108_v39  ;;  %v1199_v44 = vmax.f32 %v1106_v35, %v1108_v39 }
0x19ad   :  { %v1122_v45 = vrot.slane %v1114_v42, %v4226_v37  ;;  %v1129_v13 = vrot.slane %v1115_v43, %v4226_v37  ;;  %1200 = vmax.xlane.f32.xlu1 %v1199_v44 }
0x19af   :  { %v1130_v46 = vcombine.high %v1122_v45, %v1122_v45  ;;  %v1131_v47 = vcombine.high %v1129_v13, %v1129_v13  ;;  %v1138_v48 = vrot.slane %v1122_v45, %v4226_v37  ;;  %v1145_v49 = vrot.slane %v1129_v13, %v4226_v37  ;;  %v1264_v50 = vpop.f32.mrb[24].mxu0 }
0x19b0   :  { %v3582_v51 = vpop.f32.mrb[25].mxu0 }
0x19b1   :  { %v1152_v52 = vrot.slane %v1130_v46, %v4226_v37  ;;  %v1159_v58 = vrot.slane %v1131_v47, %v4226_v37  ;;  %v1160_v59 = vcombine.high %v1138_v48, %v1138_v48  ;;  %v1161_v60 = vcombine.high %v1145_v49, %v1145_v49  ;;  %1176 = vst.msk [vmem:[%s5015_s9] ss:$8 sm:$0x3] %vm4232_vm4, %v1138_v48  ;;  %v1267_v2 = vpop.f32.mrb[26].mxu0 }
0x19b2   :  { %3139 = vst.msk [vmem:[%s5015_s9 + $0x40] ss:$8 sm:$0x3] %vm4232_vm4, %v1145_v49  ;;  %v3583_v61 = vpop.f32.mrb[27].mxu0 }
0x19b3   :  { %v1162_v62 = vcombine.high %v1152_v52, %v1152_v52  ;;  %v1163_v63 = vcombine.high %v1159_v58, %v1159_v58  ;;  %3136 = vst.msk [vmem:[%s5015_s9 + $0x10] ss:$8 sm:$0x3] %vm4232_vm4, %v1152_v52  ;;  %3137 = vst.msk [vmem:[%s5015_s9 + $0x20] ss:$8 sm:$0x3] %vm4232_vm4, %v1160_v59 }
0x19b4   :  { %3140 = vst.msk [vmem:[%s5015_s9 + $0x50] ss:$8 sm:$0x3] %vm4232_vm4, %v1159_v58  ;;  %3141 = vst.msk [vmem:[%s5015_s9 + $0x60] ss:$8 sm:$0x3] %vm4232_vm4, %v1161_v60 }
0x19b5   :  { %3138 = vst.msk [vmem:[%s5015_s9 + $0x30] ss:$8 sm:$0x3] %vm4232_vm4, %v1162_v62  ;;  %3142 = vst.msk [vmem:[%s5015_s9 + $0x70] ss:$8 sm:$0x3] %vm4232_vm4, %v1163_v63 }
0x1a3a   :  { %v1201_v20 = vpop.xlane.xlu1 %1200 }
0x1a3b   :  { %vm1202_vm5 = vcmp.eq.f32.partialorder %v1106_v35, %v1201_v20  ;;  %vm1203_vm6 = vcmp.eq.f32.partialorder %v1108_v39, %v1201_v20 }
0x1a3c   :  { %v1204_v3 = vsel %vm1202_vm5, %v4057_v10, 256  ;;  %v1205_v28 = vsel %vm1203_vm6, %v4072_v14, 256 }
0x1a3d   :  { %vm1206_vm7 = vcmp.lt.s32.totalorder %v1204_v3, %v1205_v28 }
0x1a3e   :  { %v1207_v29 = vsel %vm1206_vm7, %v1204_v3, %v1205_v28 }
0x1a3f   :  { %v1209_v30 = vshra.s32 %v1207_v29, 16  ;;  %v1208_v34 = vand.u32 65535, %v1207_v29 }
0x1a41   :  { %v1211_v32 = vcvt.s32.f32 %v1209_v30  ;;  %v1210_v40 = vcvt.s32.f32 %v1208_v34 }
0x1a43   :  { %1212 = vmin.xlane.f32.xlu0 %v1211_v32 }
0x1ad0   :  { %v1213_v36 = vpop.xlane.xlu0 %1212 }
0x1ad1   :  { %vm1214_vm8 = vcmp.eq.f32.partialorder %v1211_v32, %v1213_v36  ;;  %v1219_v42 = vcvt.f32.s32 %v1213_v36 }
0x1ad2   :  { %v1215_v41 = vsel %vm1214_vm8, %v1210_v40, inf }
0x1ad3   :  { %1216 = vmin.xlane.f32.xlu0 %v1215_v41  ;;  %v1220_v44 = vshll.u32 %v1219_v42, 16 }
0x1b60   :  { %v1217_v43 = vpop.xlane.xlu0 %1216 }
0x1b61   :  { %v1218_v35 = vcvt.f32.s32 %v1217_v43 }
0x1b63   :  { %v1221_v39 = vadd.s32 %v1220_v44, %v1218_v35 }
0x1b65   :  { %vm1222_vm9 = vcmp.eq.s32.totalorder %v4057_v10, %v1221_v39  ;;  %vm1223_vm10 = vcmp.eq.s32.totalorder %v4072_v14, %v1221_v39 }
0x1b66   :  { %vm3148_vm11 = vmpackc.low %vm1222_vm9, %vm1222_vm9 }
0x1b67   :  { %vm3146_vm12 = vmpackc.low %vm1223_vm10, %vm1223_vm10 }
0x1b68   :  { %3147 = vmatprep.mubr.msk.bf16.mxu0 %vm3146_vm12, %v3832_v23 }
0x1b69   :  { %3149 = vmatmul.mubr.msk.bf16.vlgmr.msra.gmra.mrb[28].mxu0 %vm3148_vm11, %v3832_v23 }
0x1b6a   :  { %1611 = vmatpush1.bf16.msra.mxu0 %v4169_v55  ;;  %1642 = vmatprep.mubr.bf16.mxu0 %v3829_v9 }
0x1b6b   :  { %1612 = vmatprep.subr.bf16.mxu0 %v4175_v56 }
0x1b6e   :  { %1613 = vmatpush1.bf16.msra.mxu0 %v4182_v57 }
0x1b6f   :  { %3592 = vmatprep.subr.bf16.mxu0 %v3827_v7 }
0x1c3c   :  { %v3336_v45 = vpop.f32.mrb[28].mxu0 }
0x1c3d   :  { %v3337_v13 = vpop.f32.mrb[29].mxu0 }
0x1c3e   :  { %v3338_v46 = vadd.f32 %v3337_v13, %v3336_v45  ;;  %v3339_v47 = vpop.f32.mrb[30].mxu0 }
0x1c3f   :  { %v3340_v48 = vpop.f32.mrb[31].mxu0 }
0x1c40   :  { %v1305_v49 = vadd.f32 %v3338_v46, %v1264_v50 }
0x1c42   :  { %v1310_v51 = vadd.f32 %v4153_v38, %v1305_v49 }
0x1c44   :  { %3748 = vtanh.f32 %v1310_v51  ;;  %v3150_v58 = vmul.f32 -1.442695, %v1310_v51 }
0x1c46   :  { %3750 = vpow2.f32 %v3150_v58 }
0x1c4e   :  { %v3749_v52 = vpop.eup %3748 }
0x1c4f   :  { %1320 = vrot.lane.b32.xlu1 %v3749_v52, %s3830_s3 }
0x1c50   :  { %v3751_v59 = vpop.eup %3750 }
0x1c51   :  { %v1314_v60 = vadd.f32 1.0, %v3751_v59 }
0x1c53   :  { %3752 = vrcp.f32 %v1314_v60 }
0x1c5d   :  { %v3753_v2 = vpop.eup %3752 }
0x1c5e   :  { %v1318_v63 = vmul.f32 %v3753_v2, %v4158_v53 }
0x1cc1   :  { %v1321_v61 = vpop.permute.xlu1 %1320 }
0x1cc2   :  { %v1323_v62 = vmul.f32 %v3753_v2, %v1321_v61 }
0x1cc4   :  { %1325 = vrot.lane.b32.xlu0 %v1323_v62, %s3831_s24 }
0x1d36   :  { %v1326_v20 = vpop.permute.xlu0 %1325 }
0x1d37   :  { %v4295_v50 = vadd.f32 %v1326_v20, %v1318_v63 }
0x1d39   :  { %3754 = vtanh.f32 %v4295_v50 }
0x1d43   :  { %v3755_v3 = vpop.eup %3754 }
0x1d44   :  { %1331 = vrot.lane.b32.xlu1 %v3755_v3, %s3830_s3 }
0x1db6   :  { %v1332_v28 = vpop.permute.xlu1 %1331 }
0x1db7   :  { %v1334_v29 = vmul.f32 %v3753_v2, %v1332_v28 }
0x1db9   :  { %v1335_v30 = vpack.c.bf16 %v1334_v29, %v1334_v29 }
0x1dbb   :  { %1337 = vrot.lane.b32.xlu1 %v1335_v30, %s3831_s24 }
0x1e2d   :  { %v1338_v32 = vpop.permute.xlu1 %1337 }
0x1e2e   :  { %3151 = vmatmul.mubr.msk.bf16.vlgmr.msra.gmra.mrb[28].mxu1 %vm84_vm0, %v1338_v32 }
0x1e2f   :  { %3585 = vmatpush3.bf16.msra.mxu1 %v4102_v21  ;;  %3588 = vmatprep.mubr.msk.bf16.mxu1 %vm3828_vm1, %v3827_v7 }
0x1e30   :  { %3586 = vmatprep.subr.bf16.mxu1 %v3827_v7 }
0x1e33   :  { %3587 = vmatpush3.bf16.msra.mxu1 %v4109_v25 }
0x1e34   :  { %3345 = vmatprep.subr.bf16.mxu1 %v4030_v0 }
0x1e36   :  { %3589 = vmatmul.mubr.msk.bf16.vlgmr.msra.gmra.mrb[32].mxu1 %vm84_vm0, %v1338_v32 }
0x1e37   :  { %3346 = vmatpush3.bf16.msra.mxu1 %v4035_v17 }
0x1e38   :  { %3347 = vmatprep.subr.bf16.mxu1 %v4041_v1 }
0x1e3b   :  { %3348 = vmatpush3.bf16.msra.mxu1 %v4047_v4 }
0x1e3c   :  { %3349 = vmatprep.subr.bf16.mxu1 %v4054_v5 }
0x1e3f   :  { %3350 = vmatpush3.bf16.msra.mxu1 %v4063_v11 }
0x1e40   :  { %3351 = vmatprep.subr.bf16.mxu1 %v4069_v12 }
0x1e43   :  { %3352 = vmatpush3.bf16.msra.mxu1 %v4078_v16 }
0x1e44   :  { %3353 = vmatprep.subr.bf16.mxu1 %v4084_v18 }
0x1e47   :  { %3354 = vmatpush3.bf16.msra.mxu1 %v4089_v19 }
0x1e48   :  { %3355 = vmatprep.subr.bf16.mxu1 %v4096_v6 }
0x1e4b   :  { %3356 = vmatpush3.bf16.msra.mxu1 %v4115_v26 }
0x1e4c   :  { %3357 = vmatprep.subr.bf16.mxu1 %v4122_v8 }
0x1e4f   :  { %3358 = vmatpush3.bf16.msra.mxu1 %v4129_v15 }
0x1e50   :  { %3359 = vmatprep.subr.bf16.mxu1 %v4135_v24 }
0x1e53   :  { %3360 = vmatpush3.bf16.msra.mxu1 %v4141_v27 }
0x1e54   :  { %1878 = vmatprep.subr.bf16.mxu1 %v4164_v54 }
0x1f01   :  { %v1376_v53 = vpop.f32.mrb[28].mxu1 }
0x1f02   :  { %v1377_v34 = vadd.f32 %v1376_v53, %v4221_v31  ;;  %v1378_v36 = vpop.f32.mrb[29].mxu1 }
0x1f03   :  { %v1379_v40 = vadd.f32 %v1378_v36, %v4223_v33  ;;  %v1380_v41 = vpop.f32.mrb[30].mxu1 }
0x1f04   :  { %v1381_v42 = vpop.f32.mrb[31].mxu1 }
0x1f05   :  { %v1385_v43 = vcombine.low %v1377_v34, %v1379_v40  ;;  %v1386_v44 = vcombine.high %v1377_v34, %v1379_v40  ;;  %v1467_v35 = vmax.f32 %v1377_v34, %v1379_v40 }
0x1f07   :  { %v1393_v39 = vrot.slane %v1385_v43, %v4226_v37  ;;  %v1400_v45 = vrot.slane %v1386_v44, %v4226_v37  ;;  %1468 = vmax.xlane.f32.xlu0 %v1467_v35 }
0x1f09   :  { %v1401_v13 = vcombine.high %v1393_v39, %v1393_v39  ;;  %v1402_v46 = vcombine.high %v1400_v45, %v1400_v45  ;;  %v1409_v47 = vrot.slane %v1393_v39, %v4226_v37  ;;  %v1416_v48 = vrot.slane %v1400_v45, %v4226_v37  ;;  %v1532_v49 = vpop.f32.mrb[32].mxu1 }
0x1f0a   :  { %v3590_v51 = vpop.f32.mrb[33].mxu1 }
0x1f0b   :  { %v1423_v52 = vrot.slane %v1401_v13, %v4226_v37  ;;  %v1430_v58 = vrot.slane %v1402_v46, %v4226_v37  ;;  %v1431_v59 = vcombine.high %v1409_v47, %v1409_v47  ;;  %v1432_v60 = vcombine.high %v1416_v48, %v1416_v48  ;;  %3152 = vst.msk [vmem:[%s5015_s9 + $0x1] ss:$8 sm:$0x3] %vm4232_vm4, %v1409_v47  ;;  %v1535_v2 = vpop.f32.mrb[34].mxu1 }
0x1f0c   :  { %3156 = vst.msk [vmem:[%s5015_s9 + $0x41] ss:$8 sm:$0x3] %vm4232_vm4, %v1416_v48  ;;  %v3591_v61 = vpop.f32.mrb[35].mxu1 }
0x1f0d   :  { %v1433_v62 = vcombine.high %v1423_v52, %v1423_v52  ;;  %v1434_v63 = vcombine.high %v1430_v58, %v1430_v58  ;;  %3153 = vst.msk [vmem:[%s5015_s9 + $0x11] ss:$8 sm:$0x3] %vm4232_vm4, %v1423_v52  ;;  %3154 = vst.msk [vmem:[%s5015_s9 + $0x21] ss:$8 sm:$0x3] %vm4232_vm4, %v1431_v59 }
0x1f0e   :  { %3157 = vst.msk [vmem:[%s5015_s9 + $0x51] ss:$8 sm:$0x3] %vm4232_vm4, %v1430_v58  ;;  %3158 = vst.msk [vmem:[%s5015_s9 + $0x61] ss:$8 sm:$0x3] %vm4232_vm4, %v1432_v60 }
0x1f0f   :  { %3155 = vst.msk [vmem:[%s5015_s9 + $0x31] ss:$8 sm:$0x3] %vm4232_vm4, %v1433_v62  ;;  %3159 = vst.msk [vmem:[%s5015_s9 + $0x71] ss:$8 sm:$0x3] %vm4232_vm4, %v1434_v63 }
0x1f94   :  { %v1469_v20 = vpop.xlane.xlu0 %1468 }
0x1f95   :  { %vm1470_vm13 = vcmp.eq.f32.partialorder %v1377_v34, %v1469_v20  ;;  %vm1471_vm14 = vcmp.eq.f32.partialorder %v1379_v40, %v1469_v20 }
0x1f96   :  { %v1472_v3 = vsel %vm1470_vm13, %v4057_v10, 256  ;;  %v1473_v28 = vsel %vm1471_vm14, %v4072_v14, 256 }
0x1f97   :  { %vm1474_vm15 = vcmp.lt.s32.totalorder %v1472_v3, %v1473_v28 }
0x1f98   :  { %v1475_v29 = vsel %vm1474_vm15, %v1472_v3, %v1473_v28 }
0x1f99   :  { %v1477_v30 = vshra.s32 %v1475_v29, 16  ;;  %v1476_v53 = vand.u32 65535, %v1475_v29 }
0x1f9b   :  { %v1479_v32 = vcvt.s32.f32 %v1477_v30  ;;  %v1478_v41 = vcvt.s32.f32 %v1476_v53 }
0x1f9d   :  { %1480 = vmin.xlane.f32.xlu1 %v1479_v32 }
0x202a   :  { %v1481_v36 = vpop.xlane.xlu1 %1480 }
0x202b   :  { %vm1482_vm2 = vcmp.eq.f32.partialorder %v1479_v32, %v1481_v36  ;;  %v1487_v43 = vcvt.f32.s32 %v1481_v36 }
0x202c   :  { %v1483_v42 = vsel %vm1482_vm2, %v1478_v41, inf }
0x202d   :  { %1484 = vmin.xlane.f32.xlu0 %v1483_v42  ;;  %v1488_v35 = vshll.u32 %v1487_v43, 16 }
0x20ba   :  { %v1485_v44 = vpop.xlane.xlu0 %1484 }
0x20bb   :  { %v1486_v34 = vcvt.f32.s32 %v1485_v44 }
0x20bd   :  { %v1489_v40 = vadd.s32 %v1488_v35, %v1486_v34 }
0x20bf   :  { %vm1490_vm3 = vcmp.eq.s32.totalorder %v4057_v10, %v1489_v40  ;;  %vm1491_vm5 = vcmp.eq.s32.totalorder %v4072_v14, %v1489_v40 }
0x20c0   :  { %vm3165_vm6 = vmpackc.low %vm1490_vm3, %vm1490_vm3 }
0x20c1   :  { %vm3163_vm7 = vmpackc.low %vm1491_vm5, %vm1491_vm5 }
0x20c2   :  { %3164 = vmatprep.mubr.msk.bf16.mxu1 %vm3163_vm7, %v3832_v23 }
0x20c3   :  { %3166 = vmatmul.mubr.msk.bf16.vlgmr.msra.gmra.mrb[36].mxu1 %vm3165_vm6, %v3832_v23 }
0x20c4   :  { %1879 = vmatpush1.bf16.msra.mxu1 %v4169_v55  ;;  %1910 = vmatprep.mubr.bf16.mxu1 %v3829_v9 }
0x20c5   :  { %1880 = vmatprep.subr.bf16.mxu1 %v4175_v56 }
0x20c8   :  { %1881 = vmatpush1.bf16.msra.mxu1 %v4182_v57 }
0x20c9   :  { %3600 = vmatprep.subr.bf16.mxu1 %v3827_v7 }
0x2196   :  { %v3361_v39 = vpop.f32.mrb[36].mxu1 }
0x2197   :  { %v3362_v45 = vpop.f32.mrb[37].mxu1 }
0x2198   :  { %v3363_v13 = vadd.f32 %v3362_v45, %v3361_v39  ;;  %v3364_v46 = vpop.f32.mrb[38].mxu1 }
0x2199   :  { %v3365_v47 = vpop.f32.mrb[39].mxu1 }
0x219a   :  { %v1573_v48 = vadd.f32 %v3363_v13, %v1532_v49 }
0x219c   :  { %v1578_v51 = vadd.f32 %v4153_v38, %v1573_v48 }
0x219e   :  { %3756 = vtanh.f32 %v1578_v51  ;;  %v3167_v58 = vmul.f32 -1.442695, %v1578_v51 }
0x21a0   :  { %3758 = vpow2.f32 %v3167_v58 }
0x21a8   :  { %v3757_v52 = vpop.eup %3756 }
0x21a9   :  { %1588 = vrot.lane.b32.xlu0 %v3757_v52, %s3830_s3 }
0x21aa   :  { %v3759_v59 = vpop.eup %3758 }
0x21ab   :  { %v1582_v60 = vadd.f32 1.0, %v3759_v59 }
0x21ad   :  { %3760 = vrcp.f32 %v1582_v60 }
0x21b7   :  { %v3761_v2 = vpop.eup %3760 }
0x21b8   :  { %v1586_v63 = vmul.f32 %v3761_v2, %v4295_v50 }
0x221b   :  { %v1589_v61 = vpop.permute.xlu0 %1588 }
0x221c   :  { %v1591_v62 = vmul.f32 %v3761_v2, %v1589_v61 }
0x221e   :  { %1593 = vrot.lane.b32.xlu1 %v1591_v62, %s3831_s24 }
0x2290   :  { %v1594_v20 = vpop.permute.xlu1 %1593 }
0x2291   :  { %v4387_v49 = vadd.f32 %v1594_v20, %v1586_v63 }
0x2293   :  { %3762 = vtanh.f32 %v4387_v49 }
0x229d   :  { %v3763_v3 = vpop.eup %3762 }
0x229e   :  { %1599 = vrot.lane.b32.xlu1 %v3763_v3, %s3830_s3 }
0x2310   :  { %v1600_v28 = vpop.permute.xlu1 %1599 }
0x2311   :  { %v1602_v29 = vmul.f32 %v3761_v2, %v1600_v28 }
0x2313   :  { %v1603_v30 = vpack.c.bf16 %v1602_v29, %v1602_v29 }
0x2315   :  { %1605 = vrot.lane.b32.xlu0 %v1603_v30, %s3831_s24 }
0x2387   :  { %v1606_v32 = vpop.permute.xlu0 %1605 }
0x2388   :  { %3168 = vmatmul.mubr.msk.bf16.vlgmr.msra.gmra.mrb[32].mxu0 %vm84_vm0, %v1606_v32 }
0x2389   :  { %3593 = vmatpush3.bf16.msra.mxu0 %v4102_v21  ;;  %3596 = vmatprep.mubr.msk.bf16.mxu0 %vm3828_vm1, %v3827_v7 }
0x238a   :  { %3594 = vmatprep.subr.bf16.mxu0 %v3827_v7 }
0x238d   :  { %3595 = vmatpush3.bf16.msra.mxu0 %v4109_v25 }
0x238e   :  { %3370 = vmatprep.subr.bf16.mxu0 %v4030_v0 }
0x2390   :  { %3597 = vmatmul.mubr.msk.bf16.vlgmr.msra.gmra.mrb[36].mxu0 %vm84_vm0, %v1606_v32 }
0x2391   :  { %3371 = vmatpush3.bf16.msra.mxu0 %v4035_v17 }
0x2392   :  { %3372 = vmatprep.subr.bf16.mxu0 %v4041_v1 }
0x2395   :  { %3373 = vmatpush3.bf16.msra.mxu0 %v4047_v4 }
0x2396   :  { %3374 = vmatprep.subr.bf16.mxu0 %v4054_v5 }
0x2399   :  { %3375 = vmatpush3.bf16.msra.mxu0 %v4063_v11 }
0x239a   :  { %3376 = vmatprep.subr.bf16.mxu0 %v4069_v12 }
0x239d   :  { %3377 = vmatpush3.bf16.msra.mxu0 %v4078_v16 }
0x239e   :  { %3378 = vmatprep.subr.bf16.mxu0 %v4084_v18 }
0x23a1   :  { %3379 = vmatpush3.bf16.msra.mxu0 %v4089_v19 }
0x23a2   :  { %3380 = vmatprep.subr.bf16.mxu0 %v4096_v6 }
0x23a5   :  { %3381 = vmatpush3.bf16.msra.mxu0 %v4115_v26 }
0x23a6   :  { %3382 = vmatprep.subr.bf16.mxu0 %v4122_v8 }
0x23a9   :  { %3383 = vmatpush3.bf16.msra.mxu0 %v4129_v15 }
0x23aa   :  { %3384 = vmatprep.subr.bf16.mxu0 %v4135_v24 }
0x23ad   :  { %3385 = vmatpush3.bf16.msra.mxu0 %v4141_v27 }
0x23ae   :  { %2146 = vmatprep.subr.bf16.mxu0 %v4164_v54 }
0x245b   :  { %v1644_v0 = vpop.f32.mrb[32].mxu0 }
0x245c   :  { %v1645_v17 = vadd.f32 %v1644_v0, %v4221_v31  ;;  %v1646_v1 = vpop.f32.mrb[33].mxu0 }
0x245d   :  { %v1647_v4 = vadd.f32 %v1646_v1, %v4223_v33  ;;  %v1648_v50 = vpop.f32.mrb[34].mxu0 }
0x245e   :  { %v1649_v53 = vpop.f32.mrb[35].mxu0 }
0x245f   :  { %v1653_v36 = vcombine.low %v1645_v17, %v1647_v4  ;;  %v1654_v41 = vcombine.high %v1645_v17, %v1647_v4  ;;  %v1735_v42 = vmax.f32 %v1645_v17, %v1647_v4 }
0x2461   :  { %v1661_v43 = vrot.slane %v1653_v36, %v4226_v37  ;;  %v1668_v44 = vrot.slane %v1654_v41, %v4226_v37  ;;  %1736 = vmax.xlane.f32.xlu1 %v1735_v42 }
0x2463   :  { %v1669_v35 = vcombine.high %v1661_v43, %v1661_v43  ;;  %v1670_v34 = vcombine.high %v1668_v44, %v1668_v44  ;;  %v1677_v40 = vrot.slane %v1661_v43, %v4226_v37  ;;  %v1684_v39 = vrot.slane %v1668_v44, %v4226_v37  ;;  %v1800_v45 = vpop.f32.mrb[36].mxu0 }
0x2464   :  { %v3598_v13 = vpop.f32.mrb[37].mxu0 }
0x2465   :  { %v1691_v46 = vrot.slane %v1669_v35, %v4226_v37  ;;  %v1698_v47 = vrot.slane %v1670_v34, %v4226_v37  ;;  %v1699_v48 = vcombine.high %v1677_v40, %v1677_v40  ;;  %v1700_v51 = vcombine.high %v1684_v39, %v1684_v39  ;;  %3169 = vst.msk [vmem:[%s5015_s9 + $0x2] ss:$8 sm:$0x3] %vm4232_vm4, %v1677_v40  ;;  %v1803_v52 = vpop.f32.mrb[38].mxu0 }
0x2466   :  { %3173 = vst.msk [vmem:[%s5015_s9 + $0x42] ss:$8 sm:$0x3] %vm4232_vm4, %v1684_v39  ;;  %v3599_v58 = vpop.f32.mrb[39].mxu0 }
0x2467   :  { %v1701_v59 = vcombine.high %v1691_v46, %v1691_v46  ;;  %v1702_v60 = vcombine.high %v1698_v47, %v1698_v47  ;;  %3170 = vst.msk [vmem:[%s5015_s9 + $0x12] ss:$8 sm:$0x3] %vm4232_vm4, %v1691_v46  ;;  %3171 = vst.msk [vmem:[%s5015_s9 + $0x22] ss:$8 sm:$0x3] %vm4232_vm4, %v1699_v48 }
0x2468   :  { %3174 = vst.msk [vmem:[%s5015_s9 + $0x52] ss:$8 sm:$0x3] %vm4232_vm4, %v1698_v47  ;;  %3175 = vst.msk [vmem:[%s5015_s9 + $0x62] ss:$8 sm:$0x3] %vm4232_vm4, %v1700_v51 }
0x2469   :  { %3172 = vst.msk [vmem:[%s5015_s9 + $0x32] ss:$8 sm:$0x3] %vm4232_vm4, %v1701_v59  ;;  %3176 = vst.msk [vmem:[%s5015_s9 + $0x72] ss:$8 sm:$0x3] %vm4232_vm4, %v1702_v60 }
0x24ee   :  { %v1737_v2 = vpop.xlane.xlu1 %1736 }
0x24ef   :  { %vm1738_vm8 = vcmp.eq.f32.partialorder %v1645_v17, %v1737_v2  ;;  %vm1739_vm9 = vcmp.eq.f32.partialorder %v1647_v4, %v1737_v2 }
0x24f0   :  { %v1740_v61 = vsel %vm1738_vm8, %v4057_v10, 256  ;;  %v1741_v62 = vsel %vm1739_vm9, %v4072_v14, 256 }
0x24f1   :  { %vm1742_vm10 = vcmp.lt.s32.totalorder %v1740_v61, %v1741_v62 }
0x24f2   :  { %v1743_v63 = vsel %vm1742_vm10, %v1740_v61, %v1741_v62  ;;  %v4512_v61 = vld [vmem:[%s5010_s4 + $0x8] sm:$0xff]  }
0x24f3   :  { %v1745_v20 = vshra.s32 %v1743_v63, 16  ;;  %v1744_v28 = vand.u32 65535, %v1743_v63 }
0x24f5   :  { %v1747_v3 = vcvt.s32.f32 %v1745_v20  ;;  %v1746_v30 = vcvt.s32.f32 %v1744_v28 }
0x24f7   :  { %1748 = vmin.xlane.f32.xlu0 %v1747_v3 }
0x2584   :  { %v1749_v29 = vpop.xlane.xlu0 %1748 }
0x2585   :  { %vm1750_vm11 = vcmp.eq.f32.partialorder %v1747_v3, %v1749_v29  ;;  %v1755_v0 = vcvt.f32.s32 %v1749_v29 }
0x2586   :  { %v1751_v32 = vsel %vm1750_vm11, %v1746_v30, inf }
0x2587   :  { %1752 = vmin.xlane.f32.xlu0 %v1751_v32  ;;  %v1756_v50 = vshll.u32 %v1755_v0, 16 }
0x2614   :  { %v1753_v1 = vpop.xlane.xlu0 %1752 }
0x2615   :  { %v1754_v17 = vcvt.f32.s32 %v1753_v1 }
0x2617   :  { %v1757_v4 = vadd.s32 %v1756_v50, %v1754_v17 }
0x2619   :  { %vm1758_vm12 = vcmp.eq.s32.totalorder %v4057_v10, %v1757_v4  ;;  %vm1759_vm13 = vcmp.eq.s32.totalorder %v4072_v14, %v1757_v4 }
0x261a   :  { %vm3182_vm14 = vmpackc.low %vm1758_vm12, %vm1758_vm12 }
0x261b   :  { %vm3180_vm15 = vmpackc.low %vm1759_vm13, %vm1759_vm13 }
0x261c   :  { %3181 = vmatprep.mubr.msk.bf16.mxu0 %vm3180_vm15, %v3832_v23 }
0x261d   :  { %3183 = vmatmul.mubr.msk.bf16.vlgmr.msra.gmra.mrb[40].mxu0 %vm3182_vm14, %v3832_v23 }
0x261e   :  { %2147 = vmatpush1.bf16.msra.mxu0 %v4169_v55  ;;  %2178 = vmatprep.mubr.bf16.mxu0 %v3829_v9 }
0x261f   :  { %2148 = vmatprep.subr.bf16.mxu0 %v4175_v56 }
0x2622   :  { %2149 = vmatpush1.bf16.msra.mxu0 %v4182_v57 }
0x2623   :  { %3608 = vmatprep.subr.bf16.mxu0 %v3827_v7 }
0x26f0   :  { %v3386_v53 = vpop.f32.mrb[40].mxu0 }
0x26f1   :  { %v3387_v36 = vpop.f32.mrb[41].mxu0 }
0x26f2   :  { %v3388_v41 = vadd.f32 %v3387_v36, %v3386_v53  ;;  %v3389_v42 = vpop.f32.mrb[42].mxu0 }
0x26f3   :  { %v3390_v43 = vpop.f32.mrb[43].mxu0 }
0x26f4   :  { %v1841_v44 = vadd.f32 %v3388_v41, %v1800_v45 }
0x26f6   :  { %v1846_v35 = vadd.f32 %v4153_v38, %v1841_v44 }
0x26f8   :  { %3764 = vtanh.f32 %v1846_v35  ;;  %v3184_v40 = vmul.f32 -1.442695, %v1846_v35 }
0x26fa   :  { %3766 = vpow2.f32 %v3184_v40 }
0x2702   :  { %v3765_v34 = vpop.eup %3764 }
0x2703   :  { %1856 = vrot.lane.b32.xlu1 %v3765_v34, %s3830_s3 }
0x2704   :  { %v3767_v39 = vpop.eup %3766 }
0x2705   :  { %v1850_v13 = vadd.f32 1.0, %v3767_v39 }
0x2707   :  { %3768 = vrcp.f32 %v1850_v13 }
0x2711   :  { %v3769_v46 = vpop.eup %3768 }
0x2712   :  { %v1854_v51 = vmul.f32 %v3769_v46, %v4387_v49  ;;  %v4493_v49 = vld [vmem:[%s5010_s4 + $0x40] sm:$0xff]  }
0x2775   :  { %v1857_v47 = vpop.permute.xlu1 %1856 }
0x2776   :  { %v1859_v48 = vmul.f32 %v3769_v46, %v1857_v47 }
0x2778   :  { %1861 = vrot.lane.b32.xlu0 %v1859_v48, %s3831_s24 }
0x27ea   :  { %v1862_v52 = vpop.permute.xlu0 %1861 }
0x27eb   :  { %v4479_v45 = vadd.f32 %v1862_v52, %v1854_v51 }
0x27ed   :  { %3770 = vtanh.f32 %v4479_v45 }
0x27f7   :  { %v3771_v38 = vpop.eup %3770 }
0x27f8   :  { %1867 = vrot.lane.b32.xlu1 %v3771_v38, %s3830_s3 }
0x286a   :  { %v1868_v58 = vpop.permute.xlu1 %1867 }
0x286b   :  { %v1870_v59 = vmul.f32 %v3769_v46, %v1868_v58 }
0x286d   :  { %v1871_v60 = vpack.c.bf16 %v1870_v59, %v1870_v59 }
0x286f   :  { %1873 = vrot.lane.b32.xlu1 %v1871_v60, %s3831_s24 }
0x28e1   :  { %v1874_v2 = vpop.permute.xlu1 %1873 }
0x28e2   :  { %3185 = vmatmul.mubr.msk.bf16.vlgmr.msra.gmra.mrb[40].mxu1 %vm84_vm0, %v1874_v2 }
0x28e3   :  { %3601 = vmatpush3.bf16.msra.mxu1 %v4102_v21  ;;  %3604 = vmatprep.mubr.msk.bf16.mxu1 %vm3828_vm1, %v3827_v7  ;;  %v4500_v21 = vld [vmem:[%s5010_s4] sm:$0xff]  }
0x28e4   :  { %3602 = vmatprep.subr.bf16.mxu1 %v3827_v7 }
0x28e7   :  { %3603 = vmatpush3.bf16.msra.mxu1 %v4109_v25  ;;  %v4506_v25 = vld [vmem:[%s5010_s4 + $0x48] sm:$0xff]  }
0x28e8   :  { %3395 = vmatprep.subr.bf16.mxu1 %v4493_v49 }
0x28ea   :  { %3605 = vmatmul.mubr.msk.bf16.vlgmr.msra.gmra.mrb[44].mxu1 %vm84_vm0, %v1874_v2  ;;  %v4590_v2 = vld [vmem:[%s5012_s6] ss:$0 sm:$0xff] }
0x28eb   :  { %3396 = vmatpush3.bf16.msra.mxu1 %v4500_v21 }
0x28ec   :  { %3397 = vmatprep.subr.bf16.mxu1 %v4506_v25 }
0x28ef   :  { %3398 = vmatpush3.bf16.msra.mxu1 %v4512_v61 }
0x28f0   :  { %3399 = vmatprep.subr.bf16.mxu1 %v4054_v5 }
0x28f3   :  { %3400 = vmatpush3.bf16.msra.mxu1 %v4063_v11 }
0x28f4   :  { %3401 = vmatprep.subr.bf16.mxu1 %v4069_v12 }
0x28f7   :  { %3402 = vmatpush3.bf16.msra.mxu1 %v4078_v16 }
0x28f8   :  { %3403 = vmatprep.subr.bf16.mxu1 %v4084_v18 }
0x28fb   :  { %3404 = vmatpush3.bf16.msra.mxu1 %v4089_v19 }
0x28fc   :  { %3405 = vmatprep.subr.bf16.mxu1 %v4096_v6 }
0x28ff   :  { %3406 = vmatpush3.bf16.msra.mxu1 %v4115_v26 }
0x2900   :  { %3407 = vmatprep.subr.bf16.mxu1 %v4122_v8 }
0x2903   :  { %3408 = vmatpush3.bf16.msra.mxu1 %v4129_v15 }
0x2904   :  { %3409 = vmatprep.subr.bf16.mxu1 %v4135_v24 }
0x2907   :  { %3410 = vmatpush3.bf16.msra.mxu1 %v4141_v27 }
0x2908   :  { %2414 = vmatprep.subr.bf16.mxu1 %v4164_v54 }
0x29b5   :  { %v1912_v5 = vpop.f32.mrb[40].mxu1 }
0x29b6   :  { %v1913_v11 = vadd.f32 %v1912_v5, %v4221_v31  ;;  %v1914_v12 = vpop.f32.mrb[41].mxu1 }
0x29b7   :  { %v1915_v16 = vadd.f32 %v1914_v12, %v4223_v33  ;;  %v1916_v18 = vpop.f32.mrb[42].mxu1 }
0x29b8   :  { %v1917_v19 = vpop.f32.mrb[43].mxu1 }
0x29b9   :  { %v1921_v6 = vcombine.low %v1913_v11, %v1915_v16  ;;  %v1922_v26 = vcombine.high %v1913_v11, %v1915_v16  ;;  %v2003_v62 = vmax.f32 %v1913_v11, %v1915_v16 }
0x29bb   :  { %v1929_v8 = vrot.slane %v1921_v6, %v4226_v37  ;;  %v1936_v15 = vrot.slane %v1922_v26, %v4226_v37  ;;  %2004 = vmax.xlane.f32.xlu0 %v2003_v62 }
0x29bd   :  { %v1937_v24 = vcombine.high %v1929_v8, %v1929_v8  ;;  %v1938_v27 = vcombine.high %v1936_v15, %v1936_v15  ;;  %v1945_v54 = vrot.slane %v1929_v8, %v4226_v37  ;;  %v1952_v63 = vrot.slane %v1936_v15, %v4226_v37  ;;  %v2068_v20 = vpop.f32.mrb[44].mxu1 }
0x29be   :  { %v3606_v3 = vpop.f32.mrb[45].mxu1 }
0x29bf   :  { %v1959_v28 = vrot.slane %v1937_v24, %v4226_v37  ;;  %v1966_v29 = vrot.slane %v1938_v27, %v4226_v37  ;;  %v1967_v30 = vcombine.high %v1945_v54, %v1945_v54  ;;  %v1968_v32 = vcombine.high %v1952_v63, %v1952_v63  ;;  %3186 = vst.msk [vmem:[%s5015_s9 + $0x3] ss:$8 sm:$0x3] %vm4232_vm4, %v1945_v54  ;;  %v2071_v0 = vpop.f32.mrb[46].mxu1  ;;  %v4614_v54 = vld [vmem:[%s5011_s5 + $0x8] sm:$0xff]   ;;  %v4637_v3 = vld [vmem:[%s5010_s4 + $0x58] sm:$0xff]  }
0x29c0   :  { %3190 = vst.msk [vmem:[%s5015_s9 + $0x43] ss:$8 sm:$0x3] %vm4232_vm4, %v1952_v63  ;;  %v3607_v1 = vpop.f32.mrb[47].mxu1  ;;  %v4625_v63 = vld [vmem:[%s5010_s4 + $0x50] sm:$0xff]   ;;  %v4667_v0 = vld [vmem:[%s5010_s4 + $0x28] sm:$0xff]  }
0x29c1   :  { %v1969_v50 = vcombine.high %v1959_v28, %v1959_v28  ;;  %v1970_v17 = vcombine.high %v1966_v29, %v1966_v29  ;;  %3187 = vst.msk [vmem:[%s5015_s9 + $0x13] ss:$8 sm:$0x3] %vm4232_vm4, %v1959_v28  ;;  %3188 = vst.msk [vmem:[%s5015_s9 + $0x23] ss:$8 sm:$0x3] %vm4232_vm4, %v1967_v30 }
0x29c2   :  { %3191 = vst.msk [vmem:[%s5015_s9 + $0x53] ss:$8 sm:$0x3] %vm4232_vm4, %v1966_v29  ;;  %3192 = vst.msk [vmem:[%s5015_s9 + $0x63] ss:$8 sm:$0x3] %vm4232_vm4, %v1968_v32 }
0x29c3   :  { %3189 = vst.msk [vmem:[%s5015_s9 + $0x33] ss:$8 sm:$0x3] %vm4232_vm4, %v1969_v50  ;;  %3193 = vst.msk [vmem:[%s5015_s9 + $0x73] ss:$8 sm:$0x3] %vm4232_vm4, %v1970_v17 }
0x29c4   :  { %v4643_v28 = vld [vmem:[%s5010_s4 + $0x18] sm:$0xff]   ;;  %v4649_v29 = vld [vmem:[%s5010_s4 + $0x60] sm:$0xff]   ;;  %v4661_v32 = vld [vmem:[%s5010_s4 + $0x68] sm:$0xff]  }
0x29c5   :  { %v4655_v30 = vld [vmem:[%s5010_s4 + $0x20] sm:$0xff]   ;;  %v4673_v1 = vld [vmem:[%s5010_s4 + $0x70] sm:$0xff]   ;;  %v4685_v17 = vld [vmem:[%s5010_s4 + $0x78] sm:$0xff]  }
0x29c6   :  { %v4679_v50 = vld [vmem:[%s5010_s4 + $0x30] sm:$0xff]  }
0x2a48   :  { %v2005_v4 = vpop.xlane.xlu0 %2004 }
0x2a49   :  { %vm2006_vm2 = vcmp.eq.f32.partialorder %v1913_v11, %v2005_v4  ;;  %vm2007_vm3 = vcmp.eq.f32.partialorder %v1915_v16, %v2005_v4  ;;  %v4691_v4 = vld [vmem:[%s5010_s4 + $0x38] sm:$0xff]  }
0x2a4a   :  { %v2008_v53 = vsel %vm2006_vm2, %v4057_v10, 256  ;;  %v2009_v36 = vsel %vm2007_vm3, %v4072_v14, 256 }
0x2a4b   :  { %vm2010_vm5 = vcmp.lt.s32.totalorder %v2008_v53, %v2009_v36 }
0x2a4c   :  { %v2011_v41 = vsel %vm2010_vm5, %v2008_v53, %v2009_v36  ;;  %v4697_v53 = vld [vmem:[%s5013_s7 + $0x4] ss:$8 sps:$4 sm:$0xff]  }
0x2a4d   :  { %v2013_v42 = vshra.s32 %v2011_v41, 16  ;;  %v2012_v44 = vand.u32 65535, %v2011_v41 }
0x2a4f   :  { %v2015_v43 = vcvt.s32.f32 %v2013_v42  ;;  %v2014_v34 = vcvt.s32.f32 %v2012_v44 }
0x2a51   :  { %2016 = vmin.xlane.f32.xlu1 %v2015_v43 }
0x2ade   :  { %v2017_v35 = vpop.xlane.xlu1 %2016 }
0x2adf   :  { %vm2018_vm6 = vcmp.eq.f32.partialorder %v2015_v43, %v2017_v35  ;;  %v2023_v39 = vcvt.f32.s32 %v2017_v35 }
0x2ae0   :  { %v2019_v40 = vsel %vm2018_vm6, %v2014_v34, inf }
0x2ae1   :  { %2020 = vmin.xlane.f32.xlu0 %v2019_v40  ;;  %v2024_v46 = vshll.u32 %v2023_v39, 16 }
0x2b6e   :  { %v2021_v13 = vpop.xlane.xlu0 %2020 }
0x2b6f   :  { %v2022_v47 = vcvt.f32.s32 %v2021_v13 }
0x2b71   :  { %v2025_v48 = vadd.s32 %v2024_v46, %v2022_v47 }
0x2b73   :  { %vm2026_vm7 = vcmp.eq.s32.totalorder %v4057_v10, %v2025_v48  ;;  %vm2027_vm8 = vcmp.eq.s32.totalorder %v4072_v14, %v2025_v48 }
0x2b74   :  { %vm3199_vm9 = vmpackc.low %vm2026_vm7, %vm2026_vm7 }
0x2b75   :  { %vm3197_vm10 = vmpackc.low %vm2027_vm8, %vm2027_vm8 }
0x2b76   :  { %3198 = vmatprep.mubr.msk.bf16.mxu1 %vm3197_vm10, %v3832_v23 }
0x2b77   :  { %3200 = vmatmul.mubr.msk.bf16.vlgmr.msra.gmra.mrb[48].mxu1 %vm3199_vm9, %v3832_v23 }
0x2b78   :  { %2415 = vmatpush1.bf16.msra.mxu1 %v4169_v55  ;;  %2446 = vmatprep.mubr.bf16.mxu1 %v3829_v9 }
0x2b79   :  { %2416 = vmatprep.subr.bf16.mxu1 %v4175_v56 }
0x2b7c   :  { %2417 = vmatpush1.bf16.msra.mxu1 %v4182_v57 }
0x2b7d   :  { %3616 = vmatprep.subr.bf16.mxu1 %v3827_v7 }
0x2c4a   :  { %v3411_v51 = vpop.f32.mrb[48].mxu1 }
0x2c4b   :  { %v3412_v52 = vpop.f32.mrb[49].mxu1 }
0x2c4c   :  { %v3413_v38 = vadd.f32 %v3412_v52, %v3411_v51  ;;  %v3414_v58 = vpop.f32.mrb[50].mxu1 }
0x2c4d   :  { %v3415_v59 = vpop.f32.mrb[51].mxu1 }
0x2c4e   :  { %v2109_v60 = vadd.f32 %v3413_v38, %v2068_v20  ;;  %v4631_v20 = vld [vmem:[%s5010_s4 + $0x10] sm:$0xff]  }
0x2c50   :  { %v2114_v55 = vadd.f32 %v4590_v2, %v2109_v60 }
0x2c52   :  { %3772 = vtanh.f32 %v2114_v55  ;;  %v3201_v56 = vmul.f32 -1.442695, %v2114_v55 }
0x2c54   :  { %3774 = vpow2.f32 %v3201_v56 }
0x2c5c   :  { %v3773_v5 = vpop.eup %3772 }
0x2c5d   :  { %2124 = vrot.lane.b32.xlu0 %v3773_v5, %s3830_s3 }
0x2c5e   :  { %v3775_v57 = vpop.eup %3774 }
0x2c5f   :  { %v2118_v11 = vadd.f32 1.0, %v3775_v57 }
0x2c61   :  { %3776 = vrcp.f32 %v2118_v11 }
0x2c6b   :  { %v3777_v12 = vpop.eup %3776 }
0x2c6c   :  { %v2122_v19 = vmul.f32 %v3777_v12, %v4479_v45  ;;  %v4605_v45 = vld [vmem:[%s5011_s5] sm:$0xff]  }
0x2ccf   :  { %v2125_v16 = vpop.permute.xlu0 %2124 }
0x2cd0   :  { %v2127_v18 = vmul.f32 %v3777_v12, %v2125_v16 }
0x2cd2   :  { %2129 = vrot.lane.b32.xlu1 %v2127_v18, %s3831_s24 }
0x2d44   :  { %v2130_v6 = vpop.permute.xlu1 %2129 }
0x2d45   :  { %v4596_v26 = vadd.f32 %v2130_v6, %v2122_v19 }
0x2d47   :  { %3778 = vtanh.f32 %v4596_v26 }
0x2d51   :  { %v3779_v62 = vpop.eup %3778 }
0x2d52   :  { %2135 = vrot.lane.b32.xlu1 %v3779_v62, %s3830_s3 }
0x2dc4   :  { %v2136_v8 = vpop.permute.xlu1 %2135 }
0x2dc5   :  { %v2138_v15 = vmul.f32 %v3777_v12, %v2136_v8 }
0x2dc7   :  { %v2139_v24 = vpack.c.bf16 %v2138_v15, %v2138_v15 }
0x2dc9   :  { %2141 = vrot.lane.b32.xlu0 %v2139_v24, %s3831_s24 }
0x2e3b   :  { %v2142_v27 = vpop.permute.xlu0 %2141 }
0x2e3c   :  { %3202 = vmatmul.mubr.msk.bf16.vlgmr.msra.gmra.mrb[44].mxu0 %vm84_vm0, %v2142_v27 }
0x2e3d   :  { %3609 = vmatpush3.bf16.msra.mxu0 %v4605_v45  ;;  %3612 = vmatprep.mubr.msk.bf16.mxu0 %vm3828_vm1, %v3827_v7 }
0x2e3e   :  { %3610 = vmatprep.subr.bf16.mxu0 %v3827_v7 }
0x2e41   :  { %3611 = vmatpush3.bf16.msra.mxu0 %v4614_v54 }
0x2e42   :  { %3420 = vmatprep.subr.bf16.mxu0 %v4493_v49 }
0x2e44   :  { %3613 = vmatmul.mubr.msk.bf16.vlgmr.msra.gmra.mrb[48].mxu0 %vm84_vm0, %v2142_v27 }
0x2e45   :  { %3421 = vmatpush3.bf16.msra.mxu0 %v4500_v21 }
0x2e46   :  { %3422 = vmatprep.subr.bf16.mxu0 %v4506_v25 }
0x2e49   :  { %3423 = vmatpush3.bf16.msra.mxu0 %v4512_v61 }
0x2e4a   :  { %3424 = vmatprep.subr.bf16.mxu0 %v4625_v63 }
0x2e4d   :  { %3425 = vmatpush3.bf16.msra.mxu0 %v4631_v20 }
0x2e4e   :  { %3426 = vmatprep.subr.bf16.mxu0 %v4637_v3 }
0x2e51   :  { %3427 = vmatpush3.bf16.msra.mxu0 %v4643_v28 }
0x2e52   :  { %3428 = vmatprep.subr.bf16.mxu0 %v4649_v29 }
0x2e55   :  { %3429 = vmatpush3.bf16.msra.mxu0 %v4655_v30 }
0x2e56   :  { %3430 = vmatprep.subr.bf16.mxu0 %v4661_v32 }
0x2e59   :  { %3431 = vmatpush3.bf16.msra.mxu0 %v4667_v0 }
0x2e5a   :  { %3432 = vmatprep.subr.bf16.mxu0 %v4673_v1 }
0x2e5d   :  { %3433 = vmatpush3.bf16.msra.mxu0 %v4679_v50 }
0x2e5e   :  { %3434 = vmatprep.subr.bf16.mxu0 %v4685_v17 }
0x2e61   :  { %3435 = vmatpush3.bf16.msra.mxu0 %v4691_v4 }
0x2e62   :  { %2682 = vmatprep.subr.bf16.mxu0 %v4697_v53 }
0x2f0f   :  { %v2180_v36 = vpop.f32.mrb[44].mxu0 }
0x2f10   :  { %v2181_v41 = vadd.f32 %v2180_v36, %v4221_v31  ;;  %v2182_v42 = vpop.f32.mrb[45].mxu0 }
0x2f11   :  { %v2183_v43 = vadd.f32 %v2182_v42, %v4223_v33  ;;  %v2184_v44 = vpop.f32.mrb[46].mxu0 }
0x2f12   :  { %v2185_v35 = vpop.f32.mrb[47].mxu0 }
0x2f13   :  { %v2189_v34 = vcombine.low %v2181_v41, %v2183_v43  ;;  %v2190_v40 = vcombine.high %v2181_v41, %v2183_v43  ;;  %v2271_v39 = vmax.f32 %v2181_v41, %v2183_v43 }
0x2f15   :  { %v2197_v13 = vrot.slane %v2189_v34, %v4226_v37  ;;  %v2204_v46 = vrot.slane %v2190_v40, %v4226_v37  ;;  %2272 = vmax.xlane.f32.xlu1 %v2271_v39  ;;  %v4757_v34 = vld [vmem:[%s5013_s7] ss:$8 sps:$4 sm:$0xff]   ;;  %v4764_v40 = vld [vmem:[%s5013_s7 + $0x14] ss:$8 sps:$4 sm:$0xff]   ;;  %v4770_v39 = vld [vmem:[%s5013_s7 + $0x10] ss:$8 sps:$4 sm:$0xff]  }
0x2f17   :  { %v2205_v47 = vcombine.high %v2197_v13, %v2197_v13  ;;  %v2206_v48 = vcombine.high %v2204_v46, %v2204_v46  ;;  %v2213_v51 = vrot.slane %v2197_v13, %v4226_v37  ;;  %v2220_v52 = vrot.slane %v2204_v46, %v4226_v37  ;;  %v2336_v38 = vpop.f32.mrb[48].mxu0 }
0x2f18   :  { %v3614_v58 = vpop.f32.mrb[49].mxu0 }
0x2f19   :  { %v2227_v59 = vrot.slane %v2205_v47, %v4226_v37  ;;  %v2234_v60 = vrot.slane %v2206_v48, %v4226_v37  ;;  %v2235_v55 = vcombine.high %v2213_v51, %v2213_v51  ;;  %v2236_v5 = vcombine.high %v2220_v52, %v2220_v52  ;;  %3203 = vst.msk [vmem:[%s5015_s9 + $0x4] ss:$8 sm:$0x3] %vm4232_vm4, %v2213_v51  ;;  %v2339_v56 = vpop.f32.mrb[50].mxu0 }
0x2f1a   :  { %3207 = vst.msk [vmem:[%s5015_s9 + $0x44] ss:$8 sm:$0x3] %vm4232_vm4, %v2220_v52  ;;  %v3615_v57 = vpop.f32.mrb[51].mxu0 }
0x2f1b   :  { %v2237_v11 = vcombine.high %v2227_v59, %v2227_v59  ;;  %v2238_v12 = vcombine.high %v2234_v60, %v2234_v60  ;;  %3204 = vst.msk [vmem:[%s5015_s9 + $0x14] ss:$8 sm:$0x3] %vm4232_vm4, %v2227_v59  ;;  %3205 = vst.msk [vmem:[%s5015_s9 + $0x24] ss:$8 sm:$0x3] %vm4232_vm4, %v2235_v55 }
0x2f1c   :  { %3208 = vst.msk [vmem:[%s5015_s9 + $0x54] ss:$8 sm:$0x3] %vm4232_vm4, %v2234_v60  ;;  %3209 = vst.msk [vmem:[%s5015_s9 + $0x64] ss:$8 sm:$0x3] %vm4232_vm4, %v2236_v5 }
0x2f1d   :  { %3206 = vst.msk [vmem:[%s5015_s9 + $0x34] ss:$8 sm:$0x3] %vm4232_vm4, %v2237_v11  ;;  %3210 = vst.msk [vmem:[%s5015_s9 + $0x74] ss:$8 sm:$0x3] %vm4232_vm4, %v2238_v12 }
0x2fa2   :  { %v2273_v16 = vpop.xlane.xlu1 %2272 }
0x2fa3   :  { %vm2274_vm11 = vcmp.eq.f32.partialorder %v2181_v41, %v2273_v16  ;;  %vm2275_vm12 = vcmp.eq.f32.partialorder %v2183_v43, %v2273_v16 }
0x2fa4   :  { %v2276_v18 = vsel %vm2274_vm11, %v4057_v10, 256  ;;  %v2277_v19 = vsel %vm2275_vm12, %v4072_v14, 256 }
0x2fa5   :  { %vm2278_vm13 = vcmp.lt.s32.totalorder %v2276_v18, %v2277_v19 }
0x2fa6   :  { %v2279_v6 = vsel %vm2278_vm13, %v2276_v18, %v2277_v19 }
0x2fa7   :  { %v2281_v62 = vshra.s32 %v2279_v6, 16  ;;  %v2280_v15 = vand.u32 65535, %v2279_v6 }
0x2fa9   :  { %v2283_v8 = vcvt.s32.f32 %v2281_v62  ;;  %v2282_v27 = vcvt.s32.f32 %v2280_v15 }
0x2fab   :  { %2284 = vmin.xlane.f32.xlu0 %v2283_v8 }
0x3038   :  { %v2285_v24 = vpop.xlane.xlu0 %2284 }
0x3039   :  { %vm2286_vm14 = vcmp.eq.f32.partialorder %v2283_v8, %v2285_v24  ;;  %v2291_v42 = vcvt.f32.s32 %v2285_v24 }
0x303a   :  { %v2287_v36 = vsel %vm2286_vm14, %v2282_v27, inf }
0x303b   :  { %2288 = vmin.xlane.f32.xlu0 %v2287_v36  ;;  %v2292_v35 = vshll.u32 %v2291_v42, 16 }
0x30c8   :  { %v2289_v44 = vpop.xlane.xlu0 %2288 }
0x30c9   :  { %v2290_v41 = vcvt.f32.s32 %v2289_v44 }
0x30cb   :  { %v2293_v43 = vadd.s32 %v2292_v35, %v2290_v41 }
0x30cd   :  { %vm2294_vm15 = vcmp.eq.s32.totalorder %v4057_v10, %v2293_v43  ;;  %vm2295_vm2 = vcmp.eq.s32.totalorder %v4072_v14, %v2293_v43 }
0x30ce   :  { %vm3216_vm3 = vmpackc.low %vm2294_vm15, %vm2294_vm15 }
0x30cf   :  { %vm3214_vm5 = vmpackc.low %vm2295_vm2, %vm2295_vm2 }
0x30d0   :  { %3215 = vmatprep.mubr.msk.bf16.mxu0 %vm3214_vm5, %v3832_v23 }
0x30d1   :  { %3217 = vmatmul.mubr.msk.bf16.vlgmr.msra.gmra.mrb[52].mxu0 %vm3216_vm3, %v3832_v23 }
0x30d2   :  { %2683 = vmatpush1.bf16.msra.mxu0 %v4757_v34  ;;  %2714 = vmatprep.mubr.bf16.mxu0 %v3829_v9 }
0x30d3   :  { %2684 = vmatprep.subr.bf16.mxu0 %v4764_v40 }
0x30d6   :  { %2685 = vmatpush1.bf16.msra.mxu0 %v4770_v39 }
0x30d7   :  { %3624 = vmatprep.subr.bf16.mxu0 %v3827_v7 }
0x31a4   :  { %v3436_v13 = vpop.f32.mrb[52].mxu0 }
0x31a5   :  { %v3437_v46 = vpop.f32.mrb[53].mxu0 }
0x31a6   :  { %v3438_v47 = vadd.f32 %v3437_v46, %v3436_v13  ;;  %v3439_v48 = vpop.f32.mrb[54].mxu0 }
0x31a7   :  { %v3440_v51 = vpop.f32.mrb[55].mxu0 }
0x31a8   :  { %v2377_v52 = vadd.f32 %v3438_v47, %v2336_v38 }
0x31aa   :  { %v2382_v58 = vadd.f32 %v4590_v2, %v2377_v52 }
0x31ac   :  { %3780 = vtanh.f32 %v2382_v58  ;;  %v3218_v60 = vmul.f32 -1.442695, %v2382_v58 }
0x31ae   :  { %3782 = vpow2.f32 %v3218_v60 }
0x31b6   :  { %v3781_v59 = vpop.eup %3780 }
0x31b7   :  { %2392 = vrot.lane.b32.xlu1 %v3781_v59, %s3830_s3 }
0x31b8   :  { %v3783_v55 = vpop.eup %3782 }
0x31b9   :  { %v2386_v5 = vadd.f32 1.0, %v3783_v55 }
0x31bb   :  { %3784 = vrcp.f32 %v2386_v5 }
0x31c5   :  { %v3785_v56 = vpop.eup %3784 }
0x31c6   :  { %v2390_v12 = vmul.f32 %v3785_v56, %v4596_v26 }
0x3229   :  { %v2393_v57 = vpop.permute.xlu1 %2392 }
0x322a   :  { %v2395_v11 = vmul.f32 %v3785_v56, %v2393_v57 }
0x322c   :  { %2397 = vrot.lane.b32.xlu0 %v2395_v11, %s3831_s24 }
0x329e   :  { %v2398_v16 = vpop.permute.xlu0 %2397 }
0x329f   :  { %v4778_v38 = vadd.f32 %v2398_v16, %v2390_v12 }
0x32a1   :  { %3786 = vtanh.f32 %v4778_v38 }
0x32ab   :  { %v3787_v18 = vpop.eup %3786 }
0x32ac   :  { %2403 = vrot.lane.b32.xlu1 %v3787_v18, %s3830_s3 }
0x331e   :  { %v2404_v19 = vpop.permute.xlu1 %2403 }
0x331f   :  { %v2406_v6 = vmul.f32 %v3785_v56, %v2404_v19 }
0x3321   :  { %v2407_v62 = vpack.c.bf16 %v2406_v6, %v2406_v6 }
0x3323   :  { %2409 = vrot.lane.b32.xlu1 %v2407_v62, %s3831_s24 }
0x3395   :  { %v2410_v8 = vpop.permute.xlu1 %2409 }
0x3396   :  { %3219 = vmatmul.mubr.msk.bf16.vlgmr.msra.gmra.mrb[52].mxu1 %vm84_vm0, %v2410_v8 }
0x3397   :  { %3617 = vmatpush3.bf16.msra.mxu1 %v4605_v45  ;;  %3620 = vmatprep.mubr.msk.bf16.mxu1 %vm3828_vm1, %v3827_v7 }
0x3398   :  { %3618 = vmatprep.subr.bf16.mxu1 %v3827_v7 }
0x339b   :  { %3619 = vmatpush3.bf16.msra.mxu1 %v4614_v54 }
0x339c   :  { %3445 = vmatprep.subr.bf16.mxu1 %v4493_v49 }
0x339e   :  { %3621 = vmatmul.mubr.msk.bf16.vlgmr.msra.gmra.mrb[56].mxu1 %vm84_vm0, %v2410_v8 }
0x339f   :  { %3446 = vmatpush3.bf16.msra.mxu1 %v4500_v21 }
0x33a0   :  { %3447 = vmatprep.subr.bf16.mxu1 %v4506_v25 }
0x33a3   :  { %3448 = vmatpush3.bf16.msra.mxu1 %v4512_v61 }
0x33a4   :  { %3449 = vmatprep.subr.bf16.mxu1 %v4625_v63 }
0x33a7   :  { %3450 = vmatpush3.bf16.msra.mxu1 %v4631_v20 }
0x33a8   :  { %3451 = vmatprep.subr.bf16.mxu1 %v4637_v3 }
0x33ab   :  { %3452 = vmatpush3.bf16.msra.mxu1 %v4643_v28 }
0x33ac   :  { %3453 = vmatprep.subr.bf16.mxu1 %v4649_v29 }
0x33af   :  { %3454 = vmatpush3.bf16.msra.mxu1 %v4655_v30 }
0x33b0   :  { %3455 = vmatprep.subr.bf16.mxu1 %v4661_v32 }
0x33b3   :  { %3456 = vmatpush3.bf16.msra.mxu1 %v4667_v0 }
0x33b4   :  { %3457 = vmatprep.subr.bf16.mxu1 %v4673_v1 }
0x33b7   :  { %3458 = vmatpush3.bf16.msra.mxu1 %v4679_v50 }
0x33b8   :  { %3459 = vmatprep.subr.bf16.mxu1 %v4685_v17 }
0x33bb   :  { %3460 = vmatpush3.bf16.msra.mxu1 %v4691_v4 }
0x33bc   :  { %2950 = vmatprep.subr.bf16.mxu1 %v4697_v53 }
0x3469   :  { %v2448_v26 = vpop.f32.mrb[52].mxu1 }
0x346a   :  { %v2449_v15 = vadd.f32 %v2448_v26, %v4221_v31  ;;  %v2450_v24 = vpop.f32.mrb[53].mxu1 }
0x346b   :  { %v2451_v27 = vadd.f32 %v2450_v24, %v4223_v33  ;;  %v2452_v36 = vpop.f32.mrb[54].mxu1 }
0x346c   :  { %v2453_v42 = vpop.f32.mrb[55].mxu1 }
0x346d   :  { %v2457_v44 = vcombine.low %v2449_v15, %v2451_v27  ;;  %v2458_v35 = vcombine.high %v2449_v15, %v2451_v27  ;;  %v2539_v41 = vmax.f32 %v2449_v15, %v2451_v27 }
0x346f   :  { %v2465_v43 = vrot.slane %v2457_v44, %v4226_v37  ;;  %v2472_v13 = vrot.slane %v2458_v35, %v4226_v37  ;;  %2540 = vmax.xlane.f32.xlu0 %v2539_v41 }
0x3471   :  { %v2473_v46 = vcombine.high %v2465_v43, %v2465_v43  ;;  %v2474_v47 = vcombine.high %v2472_v13, %v2472_v13  ;;  %v2481_v53 = vrot.slane %v2465_v43, %v4226_v37  ;;  %v2488_v48 = vrot.slane %v2472_v13, %v4226_v37  ;;  %v2604_v51 = vpop.f32.mrb[56].mxu1 }
0x3472   :  { %v3622_v52 = vpop.f32.mrb[57].mxu1 }
0x3473   :  { %v2495_v58 = vrot.slane %v2473_v46, %v4226_v37  ;;  %v2502_v59 = vrot.slane %v2474_v47, %v4226_v37  ;;  %v2503_v60 = vcombine.high %v2481_v53, %v2481_v53  ;;  %v2504_v55 = vcombine.high %v2488_v48, %v2488_v48  ;;  %3220 = vst.msk [vmem:[%s5015_s9 + $0x5] ss:$8 sm:$0x3] %vm4232_vm4, %v2481_v53  ;;  %v2607_v5 = vpop.f32.mrb[58].mxu1 }
0x3474   :  { %3224 = vst.msk [vmem:[%s5015_s9 + $0x45] ss:$8 sm:$0x3] %vm4232_vm4, %v2488_v48  ;;  %v3623_v56 = vpop.f32.mrb[59].mxu1 }
0x3475   :  { %v2505_v57 = vcombine.high %v2495_v58, %v2495_v58  ;;  %v2506_v11 = vcombine.high %v2502_v59, %v2502_v59  ;;  %3221 = vst.msk [vmem:[%s5015_s9 + $0x15] ss:$8 sm:$0x3] %vm4232_vm4, %v2495_v58  ;;  %3222 = vst.msk [vmem:[%s5015_s9 + $0x25] ss:$8 sm:$0x3] %vm4232_vm4, %v2503_v60 }
0x3476   :  { %3225 = vst.msk [vmem:[%s5015_s9 + $0x55] ss:$8 sm:$0x3] %vm4232_vm4, %v2502_v59  ;;  %3226 = vst.msk [vmem:[%s5015_s9 + $0x65] ss:$8 sm:$0x3] %vm4232_vm4, %v2504_v55 }
0x3477   :  { %3223 = vst.msk [vmem:[%s5015_s9 + $0x35] ss:$8 sm:$0x3] %vm4232_vm4, %v2505_v57  ;;  %3227 = vst.msk [vmem:[%s5015_s9 + $0x75] ss:$8 sm:$0x3] %vm4232_vm4, %v2506_v11 }
0x34fc   :  { %v2541_v12 = vpop.xlane.xlu0 %2540 }
0x34fd   :  { %vm2542_vm6 = vcmp.eq.f32.partialorder %v2449_v15, %v2541_v12  ;;  %vm2543_vm7 = vcmp.eq.f32.partialorder %v2451_v27, %v2541_v12 }
0x34fe   :  { %v2544_v16 = vsel %vm2542_vm6, %v4057_v10, 256  ;;  %v2545_v18 = vsel %vm2543_vm7, %v4072_v14, 256 }
0x34ff   :  { %vm2546_vm8 = vcmp.lt.s32.totalorder %v2544_v16, %v2545_v18 }
0x3500   :  { %v2547_v19 = vsel %vm2546_vm8, %v2544_v16, %v2545_v18 }
0x3501   :  { %v2549_v6 = vshra.s32 %v2547_v19, 16  ;;  %v2548_v8 = vand.u32 65535, %v2547_v19 }
0x3503   :  { %v2551_v62 = vcvt.s32.f32 %v2549_v6  ;;  %v2550_v24 = vcvt.s32.f32 %v2548_v8 }
0x3505   :  { %2552 = vmin.xlane.f32.xlu1 %v2551_v62 }
0x3592   :  { %v2553_v26 = vpop.xlane.xlu1 %2552 }
0x3593   :  { %vm2554_vm9 = vcmp.eq.f32.partialorder %v2551_v62, %v2553_v26  ;;  %v2559_v42 = vcvt.f32.s32 %v2553_v26 }
0x3594   :  { %v2555_v36 = vsel %vm2554_vm9, %v2550_v24, inf }
0x3595   :  { %2556 = vmin.xlane.f32.xlu0 %v2555_v36  ;;  %v2560_v35 = vshll.u32 %v2559_v42, 16 }
0x3622   :  { %v2557_v44 = vpop.xlane.xlu0 %2556 }
0x3623   :  { %v2558_v15 = vcvt.f32.s32 %v2557_v44 }
0x3625   :  { %v2561_v27 = vadd.s32 %v2560_v35, %v2558_v15 }
0x3627   :  { %vm2562_vm10 = vcmp.eq.s32.totalorder %v4057_v10, %v2561_v27  ;;  %vm2563_vm11 = vcmp.eq.s32.totalorder %v4072_v14, %v2561_v27 }
0x3628   :  { %vm3233_vm12 = vmpackc.low %vm2562_vm10, %vm2562_vm10 }
0x3629   :  { %vm3231_vm13 = vmpackc.low %vm2563_vm11, %vm2563_vm11 }
0x362a   :  { %3232 = vmatprep.mubr.msk.bf16.mxu1 %vm3231_vm13, %v3832_v23 }
0x362b   :  { %3234 = vmatmul.mubr.msk.bf16.vlgmr.msra.gmra.mrb[60].mxu1 %vm3233_vm12, %v3832_v23 }
0x362c   :  { %2951 = vmatpush1.bf16.msra.mxu1 %v4757_v34  ;;  %2982 = vmatprep.mubr.bf16.mxu1 %v3829_v9 }
0x362d   :  { %2952 = vmatprep.subr.bf16.mxu1 %v4764_v40 }
0x3630   :  { %2953 = vmatpush1.bf16.msra.mxu1 %v4770_v39 }
0x36fe   :  { %v3461_v41 = vpop.f32.mrb[60].mxu1 }
0x36ff   :  { %v3462_v43 = vpop.f32.mrb[61].mxu1 }
0x3700   :  { %v3463_v13 = vadd.f32 %v3462_v43, %v3461_v41  ;;  %v3464_v46 = vpop.f32.mrb[62].mxu1 }
0x3701   :  { %v3465_v47 = vpop.f32.mrb[63].mxu1 }
0x3702   :  { %v2645_v53 = vadd.f32 %v3463_v13, %v2604_v51 }
0x3704   :  { %v2650_v48 = vadd.f32 %v4590_v2, %v2645_v53 }
0x3706   :  { %3788 = vtanh.f32 %v2650_v48  ;;  %v3235_v58 = vmul.f32 -1.442695, %v2650_v48 }
0x3708   :  { %3790 = vpow2.f32 %v3235_v58 }
0x3710   :  { %v3789_v52 = vpop.eup %3788 }
0x3711   :  { %2660 = vrot.lane.b32.xlu0 %v3789_v52, %s3830_s3 }
0x3712   :  { %v3791_v34 = vpop.eup %3790 }
0x3713   :  { %v2654_v9 = vadd.f32 1.0, %v3791_v34 }
0x3715   :  { %3792 = vrcp.f32 %v2654_v9 }
0x371f   :  { %v3793_v40 = vpop.eup %3792 }
0x3720   :  { %v2658_v60 = vmul.f32 %v3793_v40, %v4778_v38 }
0x3783   :  { %v2661_v59 = vpop.permute.xlu0 %2660 }
0x3784   :  { %v2663_v39 = vmul.f32 %v3793_v40, %v2661_v59 }
0x3786   :  { %2665 = vrot.lane.b32.xlu1 %v2663_v39, %s3831_s24 }
0x37f8   :  { %v2666_v55 = vpop.permute.xlu1 %2665 }
0x37f9   :  { %v4869_v51 = vadd.f32 %v2666_v55, %v2658_v60 }
0x37fb   :  { %3794 = vtanh.f32 %v4869_v51 }
0x3805   :  { %v3795_v5 = vpop.eup %3794 }
0x3806   :  { %2671 = vrot.lane.b32.xlu1 %v3795_v5, %s3830_s3 }
0x3878   :  { %v2672_v56 = vpop.permute.xlu1 %2671 }
0x3879   :  { %v2674_v57 = vmul.f32 %v3793_v40, %v2672_v56 }
0x387b   :  { %v2675_v11 = vpack.c.bf16 %v2674_v57, %v2674_v57 }
0x387d   :  { %2677 = vrot.lane.b32.xlu0 %v2675_v11, %s3831_s24 }
0x38ef   :  { %v2678_v12 = vpop.permute.xlu0 %2677 }
0x38f0   :  { %3236 = vmatmul.mubr.msk.bf16.vlgmr.msra.gmra.mrb[56].mxu0 %vm84_vm0, %v2678_v12 }
0x38f1   :  { %3625 = vmatpush3.bf16.msra.mxu0 %v4605_v45  ;;  %3628 = vmatprep.mubr.msk.bf16.mxu0 %vm3828_vm1, %v3827_v7 }
0x38f2   :  { %3626 = vmatprep.subr.bf16.mxu0 %v3827_v7 }
0x38f5   :  { %3627 = vmatpush3.bf16.msra.mxu0 %v4614_v54 }
0x38f6   :  { %3470 = vmatprep.subr.bf16.mxu0 %v4493_v49 }
0x38f8   :  { %3629 = vmatmul.mubr.msk.bf16.vlgmr.msra.gmra.mrb[60].mxu0 %vm84_vm0, %v2678_v12 }
0x38f9   :  { %3471 = vmatpush3.bf16.msra.mxu0 %v4500_v21 }
0x38fa   :  { %3472 = vmatprep.subr.bf16.mxu0 %v4506_v25 }
0x38fd   :  { %3473 = vmatpush3.bf16.msra.mxu0 %v4512_v61 }
0x38fe   :  { %3474 = vmatprep.subr.bf16.mxu0 %v4625_v63 }
0x3901   :  { %3475 = vmatpush3.bf16.msra.mxu0 %v4631_v20 }
0x3902   :  { %3476 = vmatprep.subr.bf16.mxu0 %v4637_v3 }
0x3905   :  { %3477 = vmatpush3.bf16.msra.mxu0 %v4643_v28 }
0x3906   :  { %3478 = vmatprep.subr.bf16.mxu0 %v4649_v29 }
0x3909   :  { %3479 = vmatpush3.bf16.msra.mxu0 %v4655_v30 }
0x390a   :  { %3480 = vmatprep.subr.bf16.mxu0 %v4661_v32 }
0x390d   :  { %3481 = vmatpush3.bf16.msra.mxu0 %v4667_v0 }
0x390e   :  { %3482 = vmatprep.subr.bf16.mxu0 %v4673_v1 }
0x3911   :  { %3483 = vmatpush3.bf16.msra.mxu0 %v4679_v50 }
0x3912   :  { %3484 = vmatprep.subr.bf16.mxu0 %v4685_v17 }
0x3915   :  { %3485 = vmatpush3.bf16.msra.mxu0 %v4691_v4 }
0x39c3   :  { %v2716_v7 = vpop.f32.mrb[56].mxu0 }
0x39c4   :  { %v2717_v49 = vadd.f32 %v2716_v7, %v4221_v31  ;;  %v2718_v21 = vpop.f32.mrb[57].mxu0 }
0x39c5   :  { %v2719_v25 = vadd.f32 %v2718_v21, %v4223_v33  ;;  %v2720_v61 = vpop.f32.mrb[58].mxu0 }
0x39c6   :  { %v2721_v45 = vpop.f32.mrb[59].mxu0 }
0x39c7   :  { %v2725_v54 = vcombine.low %v2717_v49, %v2719_v25  ;;  %v2726_v63 = vcombine.high %v2717_v49, %v2719_v25  ;;  %v2807_v20 = vmax.f32 %v2717_v49, %v2719_v25 }
0x39c9   :  { %v2733_v3 = vrot.slane %v2725_v54, %v4226_v37  ;;  %v2740_v28 = vrot.slane %v2726_v63, %v4226_v37  ;;  %2808 = vmax.xlane.f32.xlu1 %v2807_v20 }
0x39cb   :  { %v2741_v29 = vcombine.high %v2733_v3, %v2733_v3  ;;  %v2742_v30 = vcombine.high %v2740_v28, %v2740_v28  ;;  %v2749_v32 = vrot.slane %v2733_v3, %v4226_v37  ;;  %v2756_v0 = vrot.slane %v2740_v28, %v4226_v37  ;;  %v2872_v1 = vpop.f32.mrb[60].mxu0 }
0x39cc   :  { %v3630_v50 = vpop.f32.mrb[61].mxu0 }
0x39cd   :  { %v2763_v17 = vrot.slane %v2741_v29, %v4226_v37  ;;  %v2770_v4 = vrot.slane %v2742_v30, %v4226_v37  ;;  %v2771_v38 = vcombine.high %v2749_v32, %v2749_v32  ;;  %v2772_v16 = vcombine.high %v2756_v0, %v2756_v0  ;;  %3237 = vst.msk [vmem:[%s5015_s9 + $0x6] ss:$8 sm:$0x3] %vm4232_vm4, %v2749_v32  ;;  %v2875_v18 = vpop.f32.mrb[62].mxu0 }
0x39ce   :  { %3241 = vst.msk [vmem:[%s5015_s9 + $0x46] ss:$8 sm:$0x3] %vm4232_vm4, %v2756_v0  ;;  %v3631_v19 = vpop.f32.mrb[63].mxu0 }
0x39cf   :  { %v2773_v6 = vcombine.high %v2763_v17, %v2763_v17  ;;  %v2774_v62 = vcombine.high %v2770_v4, %v2770_v4  ;;  %3238 = vst.msk [vmem:[%s5015_s9 + $0x16] ss:$8 sm:$0x3] %vm4232_vm4, %v2763_v17  ;;  %3239 = vst.msk [vmem:[%s5015_s9 + $0x26] ss:$8 sm:$0x3] %vm4232_vm4, %v2771_v38 }
0x39d0   :  { %3242 = vst.msk [vmem:[%s5015_s9 + $0x56] ss:$8 sm:$0x3] %vm4232_vm4, %v2770_v4  ;;  %3243 = vst.msk [vmem:[%s5015_s9 + $0x66] ss:$8 sm:$0x3] %vm4232_vm4, %v2772_v16 }
0x39d1   :  { %3240 = vst.msk [vmem:[%s5015_s9 + $0x36] ss:$8 sm:$0x3] %vm4232_vm4, %v2773_v6  ;;  %3244 = vst.msk [vmem:[%s5015_s9 + $0x76] ss:$8 sm:$0x3] %vm4232_vm4, %v2774_v62 }
0x3a56   :  { %v2809_v8 = vpop.xlane.xlu1 %2808 }
0x3a57   :  { %vm2810_vm1 = vcmp.eq.f32.partialorder %v2717_v49, %v2809_v8  ;;  %vm2811_vm14 = vcmp.eq.f32.partialorder %v2719_v25, %v2809_v8 }
0x3a58   :  { %v2812_v26 = vsel %vm2810_vm1, %v4057_v10, 256  ;;  %v2813_v24 = vsel %vm2811_vm14, %v4072_v14, 256 }
0x3a59   :  { %vm2814_vm15 = vcmp.lt.s32.totalorder %v2812_v26, %v2813_v24 }
0x3a5a   :  { %v2815_v36 = vsel %vm2814_vm15, %v2812_v26, %v2813_v24 }
0x3a5b   :  { %v2817_v42 = vshra.s32 %v2815_v36, 16  ;;  %v2816_v35 = vand.u32 65535, %v2815_v36 }
0x3a5d   :  { %v2819_v44 = vcvt.s32.f32 %v2817_v42  ;;  %v2818_v27 = vcvt.s32.f32 %v2816_v35 }
0x3a5f   :  { %2820 = vmin.xlane.f32.xlu0 %v2819_v44 }
0x3aec   :  { %v2821_v15 = vpop.xlane.xlu0 %2820 }
0x3aed   :  { %vm2822_vm2 = vcmp.eq.f32.partialorder %v2819_v44, %v2821_v15  ;;  %v2827_v43 = vcvt.f32.s32 %v2821_v15 }
0x3aee   :  { %v2823_v41 = vsel %vm2822_vm2, %v2818_v27, inf }
0x3aef   :  { %2824 = vmin.xlane.f32.xlu0 %v2823_v41  ;;  %v2828_v46 = vshll.u32 %v2827_v43, 16 }
0x3b7c   :  { %v2825_v13 = vpop.xlane.xlu0 %2824 }
0x3b7d   :  { %v2826_v47 = vcvt.f32.s32 %v2825_v13 }
0x3b7f   :  { %v2829_v53 = vadd.s32 %v2828_v46, %v2826_v47 }
0x3b81   :  { %vm2830_vm3 = vcmp.eq.s32.totalorder %v4057_v10, %v2829_v53  ;;  %vm2831_vm5 = vcmp.eq.s32.totalorder %v4072_v14, %v2829_v53 }
0x3b82   :  { %vm3250_vm6 = vmpackc.low %vm2830_vm3, %vm2830_vm3 }
0x3b83   :  { %vm3248_vm7 = vmpackc.low %vm2831_vm5, %vm2831_vm5 }
0x3b84   :  { %3249 = vmatprep.mubr.msk.bf16.mxu0 %vm3248_vm7, %v3832_v23 }
0x3b85   :  { %3251 = vmatmul.mubr.msk.bf16.vlgmr.msra.gmra.mrb[64].mxu0 %vm3250_vm6, %v3832_v23 }
0x3c58   :  { %v3486_v48 = vpop.f32.mrb[64].mxu0 }
0x3c59   :  { %v3487_v52 = vpop.f32.mrb[65].mxu0 }
0x3c5a   :  { %v3488_v58 = vadd.f32 %v3487_v52, %v3486_v48  ;;  %v3489_v34 = vpop.f32.mrb[66].mxu0 }
0x3c5b   :  { %v3490_v9 = vpop.f32.mrb[67].mxu0 }
0x3c5c   :  { %v2913_v40 = vadd.f32 %v3488_v58, %v2872_v1 }
0x3c5e   :  { %v2918_v59 = vadd.f32 %v4590_v2, %v2913_v40 }
0x3c60   :  { %3796 = vtanh.f32 %v2918_v59  ;;  %v3252_v10 = vmul.f32 -1.442695, %v2918_v59 }
0x3c62   :  { %3798 = vpow2.f32 %v3252_v10 }
0x3c6a   :  { %v3797_v39 = vpop.eup %3796 }
0x3c6b   :  { %2928 = vrot.lane.b32.xlu1 %v3797_v39, %s3830_s3 }
0x3c6c   :  { %v3799_v14 = vpop.eup %3798 }
0x3c6d   :  { %v2922_v60 = vadd.f32 1.0, %v3799_v14 }
0x3c6f   :  { %3800 = vrcp.f32 %v2922_v60 }
0x3c79   :  { %v3801_v55 = vpop.eup %3800 }
0x3c7a   :  { %v2926_v56 = vmul.f32 %v3801_v55, %v4869_v51 }
0x3cdd   :  { %v2929_v5 = vpop.permute.xlu1 %2928 }
0x3cde   :  { %v2931_v23 = vmul.f32 %v3801_v55, %v2929_v5 }
0x3ce0   :  { %2933 = vrot.lane.b32.xlu0 %v2931_v23, %s3831_s24 }
0x3d52   :  { %v2934_v57 = vpop.permute.xlu0 %2933 }
0x3d53   :  { %v2936_v11 = vadd.f32 %v2934_v57, %v2926_v56 }
0x3d55   :  { %3802 = vtanh.f32 %v2936_v11 }
0x3d5f   :  { %v3803_v2 = vpop.eup %3802 }
0x3d60   :  { %2939 = vrot.lane.b32.xlu1 %v3803_v2, %s3830_s3 }
0x3dd2   :  { %v2940_v12 = vpop.permute.xlu1 %2939 }
0x3dd3   :  { %v2942_v7 = vmul.f32 %v3801_v55, %v2940_v12 }
0x3dd5   :  { %v2943_v49 = vpack.c.bf16 %v2942_v7, %v2942_v7 }
0x3dd7   :  { %2945 = vrot.lane.b32.xlu1 %v2943_v49, %s3831_s24 }
0x3e49   :  { %v2946_v21 = vpop.permute.xlu1 %2945 }
0x3e4a   :  { %3253 = vmatmul.mubr.msk.bf16.vlgmr.msra.gmra.mrb[64].mxu1 %vm84_vm0, %v2946_v21 }
0x3f1d   :  { %v2984_v25 = vpop.f32.mrb[64].mxu1 }
0x3f1e   :  { %v2985_v61 = vadd.f32 %v2984_v25, %v4221_v31  ;;  %v2986_v45 = vpop.f32.mrb[65].mxu1 }
0x3f1f   :  { %v2987_v51 = vadd.f32 %v2986_v45, %v4223_v33  ;;  %v2988_v54 = vpop.f32.mrb[66].mxu1 }
0x3f20   :  { %v2989_v63 = vpop.f32.mrb[67].mxu1 }
0x3f21   :  { %v2993_v20 = vcombine.low %v2985_v61, %v2987_v51  ;;  %v2994_v3 = vcombine.high %v2985_v61, %v2987_v51 }
0x3f23   :  { %v3001_v28 = vrot.slane %v2993_v20, %v4226_v37  ;;  %v3008_v29 = vrot.slane %v2994_v3, %v4226_v37 }
0x3f25   :  { %v3009_v30 = vcombine.high %v3001_v28, %v3001_v28  ;;  %v3010_v32 = vcombine.high %v3008_v29, %v3008_v29  ;;  %v3017_v0 = vrot.slane %v3001_v28, %v4226_v37  ;;  %v3024_v1 = vrot.slane %v3008_v29, %v4226_v37 }
0x3f27   :  { %v3031_v50 = vrot.slane %v3009_v30, %v4226_v37  ;;  %v3038_v31 = vrot.slane %v3010_v32, %v4226_v37  ;;  %v3039_v17 = vcombine.high %v3017_v0, %v3017_v0  ;;  %v3040_v33 = vcombine.high %v3024_v1, %v3024_v1  ;;  %3254 = vst.msk [vmem:[%s5015_s9 + $0x7] ss:$8 sm:$0x3] %vm4232_vm4, %v3017_v0 }
0x3f28   :  { %3258 = vst.msk [vmem:[%s5015_s9 + $0x47] ss:$8 sm:$0x3] %vm4232_vm4, %v3024_v1 }
0x3f29   :  { %v3041_v4 = vcombine.high %v3031_v50, %v3031_v50  ;;  %v3042_v38 = vcombine.high %v3038_v31, %v3038_v31  ;;  %3255 = vst.msk [vmem:[%s5015_s9 + $0x17] ss:$8 sm:$0x3] %vm4232_vm4, %v3031_v50  ;;  %3256 = vst.msk [vmem:[%s5015_s9 + $0x27] ss:$8 sm:$0x3] %vm4232_vm4, %v3039_v17 }
0x3f2a   :  { %3259 = vst.msk [vmem:[%s5015_s9 + $0x57] ss:$8 sm:$0x3] %vm4232_vm4, %v3038_v31  ;;  %3260 = vst.msk [vmem:[%s5015_s9 + $0x67] ss:$8 sm:$0x3] %vm4232_vm4, %v3040_v33 }
0x3f2b   :  { %3257 = vst.msk [vmem:[%s5015_s9 + $0x37] ss:$8 sm:$0x3] %vm4232_vm4, %v3041_v4  ;;  %3261 = vst.msk [vmem:[%s5015_s9 + $0x77] ss:$8 sm:$0x3] %vm4232_vm4, %v3042_v38 }

</bundles_post_ra>
